<compile_context>
chip_gen: v6e
topology: v6e:2x2x1
jax: 0.10.0
libtpu: 0.0.40
codegen_flags: <defaults>
</compile_context>

<pallas_src>
import math

import jax
import jax.numpy as jnp
from jax.experimental import pallas as pl
from jax.experimental.pallas import tpu as pltpu

# ---- config (small, synthetic) ----
BATCH = 2
LANG_SEQ = 8
AUDIO_SEQ = 16
HIDDEN = 32
HEADS = 4
HEAD_DIM = HIDDEN // HEADS
FF_SIZE = 64
FLAT_MLP = 32
EPS = 1e-6
NEG_INF = -1e9
SCALE = 1.0 / math.sqrt(HEAD_DIM)

# MXU operand dtype (f32 accumulation kept everywhere).  Set to jnp.float32 if
# bit-parity with an f32 reference is required.
MXU_DTYPE = jnp.bfloat16


# --------------------------------------------------------------------------
# In-kernel math helpers (operate on VALUES already loaded from VMEM refs).
# --------------------------------------------------------------------------

def _mm(a, b):
    """2-D matmul on the MXU: bf16 operands, f32 accumulation."""
    return jnp.dot(a.astype(MXU_DTYPE), b.astype(MXU_DTYPE),
                   preferred_element_type=jnp.float32)


def _layer_norm(z, g, b):
    """z: (M, H) f32; g, b: (1, H)."""
    mean = jnp.mean(z, axis=-1, keepdims=True)
    zc = z - mean
    var = jnp.mean(zc * zc, axis=-1, keepdims=True)
    return g * (zc * jax.lax.rsqrt(var + EPS)) + b


def _split_heads(t2, B, S):
    """(B*S, H) -> (HEADS*B, S, HEAD_DIM).

    Lane slices + leading-axis concat only (no 4-D transpose, which Mosaic
    does not lower); index n = h*B + b.
    """
    parts = [t2[:, h * HEAD_DIM:(h + 1) * HEAD_DIM].reshape(B, S, HEAD_DIM)
             for h in range(HEADS)]
    return jnp.concatenate(parts, axis=0)


def _merge_heads(ctx, B, S):
    """(HEADS*B, S, HEAD_DIM) -> (B*S, H) via lane-axis concat."""
    parts = [ctx[h * B:(h + 1) * B].reshape(B * S, HEAD_DIM)
             for h in range(HEADS)]
    return jnp.concatenate(parts, axis=-1)


def _mha_core(q2, k2, v2, madd_n, wm, bm, B, Sq, Sk):
    """q2:(B*Sq,H)  k2,v2:(B*Sk,H)  madd_n:(HEADS*B,1,Sk) additive key mask.

    One batched score einsum, one batched softmax, one batched PV einsum and
    ONE full (H,H) output projection (heads batched, not looped).
    """
    q = _split_heads(q2, B, Sq)
    k = _split_heads(k2, B, Sk)
    v = _split_heads(v2, B, Sk)
    s = jnp.einsum("nqd,nkd->nqk", q, k,
                   preferred_element_type=jnp.float32) * SCALE
    s = s + madd_n
    s = s - jnp.max(s, axis=-1, keepdims=True)
    e = jnp.exp(s)
    p = e * pl.reciprocal(jnp.sum(e, axis=-1, keepdims=True), approx=True)
    ctx = jnp.einsum("nqk,nkd->nqd", p, v, preferred_element_type=jnp.float32)
    return _mm(_merge_heads(ctx, B, Sq), wm) + bm


def _self_mha(x2, madd_n, wqkv, bqkv, wm, bm, B, S):
    qkv = _mm(x2, wqkv) + bqkv                     # fused QKV: one (H,3H) matmul
    q = qkv[:, :HIDDEN]
    k = qkv[:, HIDDEN:2 * HIDDEN]
    v = qkv[:, 2 * HIDDEN:]
    return _mha_core(q, k, v, madd_n, wm, bm, B, S, S)


def _cross_mha(q_in2, kv_in2, madd_n, wq, bq, wkv, bkv, wm, bm, B, Sq, Sk):
    q = _mm(q_in2, wq) + bq
    kv = _mm(kv_in2, wkv) + bkv                    # fused KV: one (H,2H) matmul
    k = kv[:, :HIDDEN]
    v = kv[:, HIDDEN:]
    return _mha_core(q, k, v, madd_n, wm, bm, B, Sq, Sk)


def _ffn(x2, w1, b1, w2, b2):
    h = jnp.maximum(_mm(x2, w1) + b1, 0.0)
    return _mm(h, w2) + b2


def _att_flatten(x2, madd_row, w1, b1, w2, b2, B, S):
    """AttFlat (glimpses == seq_len, merge=False).

    x2:(B*S,H), madd_row:(B,1,S).  No per-batch loop / stack: one minor-dim
    swap of the logits, batched lane-axis softmax, one batched einsum.
    """
    h = jnp.maximum(_mm(x2, w1) + b1, 0.0)                  # (B*S, M)
    logits = (_mm(h, w2) + b2).reshape(B, S, S)             # (B, S, G)
    a = jnp.swapaxes(logits, -1, -2) + madd_row             # (B, G, S)
    a = a - jnp.max(a, axis=-1, keepdims=True)
    e = jnp.exp(a)
    p = e * pl.reciprocal(jnp.sum(e, axis=-1, keepdims=True), approx=True)
    out = jnp.einsum("bgs,bsh->bgh", p, x2.reshape(B, S, HIDDEN),
                     preferred_element_type=jnp.float32)    # (B, G, H)
    return out.reshape(B * S, HIDDEN)


# --------------------------------------------------------------------------
# Parameter packing: 44 leaves -> 3 lane-dense slabs (static offset maps).
# --------------------------------------------------------------------------

def _pack_params(params):
    w32, w64, vec = [], [], []
    w32_off, w64_off, vec_off = {}, {}, {}
    c32 = c64 = cv = 0
    for name, arr in params.items():
        if arr.ndim == 2 and arr.shape[0] == HIDDEN:
            w32_off[name] = (c32, arr.shape[1]); w32.append(arr); c32 += arr.shape[1]
        elif arr.ndim == 2 and arr.shape[0] == FF_SIZE:
            w64_off[name] = (c64, arr.shape[1]); w64.append(arr); c64 += arr.shape[1]
        elif arr.ndim == 1:
            vec_off[name] = (cv, arr.shape[0]); vec.append(arr); cv += arr.shape[0]
        else:
            raise ValueError(f"unexpected param shape for {name}: {arr.shape}")
    w32_slab = jnp.concatenate(w32, axis=1).astype(MXU_DTYPE)   # (32, c32) bf16
    w64_slab = jnp.concatenate(w64, axis=1).astype(MXU_DTYPE)   # (64, c64) bf16
    vec_slab = jnp.concatenate(vec, axis=0).reshape(1, -1)      # (1, cv) f32
    return (w32_slab, w64_slab, vec_slab), (w32_off, w64_off, vec_off)


# --------------------------------------------------------------------------
# Single fused pallas_call for the whole Block.
# --------------------------------------------------------------------------

def block_forward(params, x, x_mask, y, y_mask, last=False):
    B, Sx, H = x.shape
    Sy = y.shape[1]

    (w32, w64, vec), (w32_off, w64_off, vec_off) = _pack_params(params)

    x2 = x.reshape(B * Sx, H)           # keep activations 2-D inside the kernel
    y2 = y.reshape(B * Sy, H)
    xm = x_mask.astype(jnp.int32)       # True (pad) -> 1
    ym = y_mask.astype(jnp.int32)

    def kernel(x_ref, y_ref, xm_ref, ym_ref, w32_ref, w64_ref, vec_ref,
               ox_ref, oy_ref):

        def W(name):                    # weight slab lookup (static slices)
            if name in w32_off:
                o, n = w32_off[name]
                return w32_ref[:, o:o + n]
            o, n = w64_off[name]
            return w64_ref[:, o:o + n]

        def V(name):                    # bias / LN vector lookup -> (1, n)
            o, n = vec_off[name]
            return vec_ref[:, o:o + n]

        # ---- prologue: additive masks built & broadcast ONCE ----
        xmadd = jnp.where(xm_ref[...] != 0, NEG_INF, 0.0).astype(jnp.float32)
        ymadd = jnp.where(ym_ref[...] != 0, NEG_INF, 0.0).astype(jnp.float32)
        xmadd_row = xmadd[:, None, :]                       # (B, 1, Sx)
        ymadd_row = ymadd[:, None, :]                       # (B, 1, Sy)
        xmadd_n = jnp.broadcast_to(xmadd[None, :, None, :],
                                   (HEADS, B, 1, Sx)).reshape(HEADS * B, 1, Sx)
        ymadd_n = jnp.broadcast_to(ymadd[None, :, None, :],
                                   (HEADS, B, 1, Sy)).reshape(HEADS * B, 1, Sy)

        x_in = x_ref[...]
        y_in = y_ref[...]

        # ---- SelfAttention (sa1) on x ----
        a = _self_mha(x_in, xmadd_n, W("sa1_wqkv"), V("sa1_bqkv"),
                      W("sa1_wm"), V("sa1_bm"), B, Sx)
        x1 = _layer_norm(x_in + a, V("sa1_n1_g"), V("sa1_n1_b"))
        xs = _layer_norm(
            x1 + _ffn(x1, W("sa1_ffn_w1"), V("sa1_ffn_b1"),
                      W("sa1_ffn_w2"), V("sa1_ffn_b2")),
            V("sa1_n2_g"), V("sa1_n2_b"))

        # ---- SelfGuidedAttention (sa3) on y: self-attn, cross-attn y<-x, FFN ----
        a = _self_mha(y_in, ymadd_n, W("sa3_mh1_wqkv"), V("sa3_mh1_bqkv"),
                      W("sa3_mh1_wm"), V("sa3_mh1_bm"), B, Sy)
        y1 = _layer_norm(y_in + a, V("sa3_n1_g"), V("sa3_n1_b"))
        a = _cross_mha(y1, x_in, xmadd_n,
                       W("sa3_mh2_wq"), V("sa3_mh2_bq"),
                       W("sa3_mh2_wkv"), V("sa3_mh2_bkv"),
                       W("sa3_mh2_wm"), V("sa3_mh2_bm"), B, Sy, Sx)
        yq = _layer_norm(y1 + a, V("sa3_n2_g"), V("sa3_n2_b"))
        ys = _layer_norm(
            yq + _ffn(yq, W("sa3_ffn_w1"), V("sa3_ffn_b1"),
                      W("sa3_ffn_w2"), V("sa3_ffn_b2")),
            V("sa3_n3_g"), V("sa3_n3_b"))

        xr = x_in + xs
        yr = y_in + ys

        if last:
            ox_ref[...] = xr
            oy_ref[...] = yr
            return

        ax = _att_flatten(xr, xmadd_row, W("attL_w1"), V("attL_b1"),
                          W("attL_w2"), V("attL_b2"), B, Sx)
        ay = _att_flatten(yr, ymadd_row, W("attA_w1"), V("attA_b1"),
                          W("attA_w2"), V("attA_b2"), B, Sy)
        # dropout is identity in eval mode
        ox_ref[...] = _layer_norm(xr + ax, V("norm_l_g"), V("norm_l_b"))
        oy_ref[...] = _layer_norm(yr + ay, V("norm_i_g"), V("norm_i_b"))

    vmem = pl.BlockSpec(memory_space=pltpu.MemorySpace.VMEM)
    ox, oy = pl.pallas_call(
        kernel,
        out_shape=(jax.ShapeDtypeStruct((B * Sx, H), jnp.float32),
                   jax.ShapeDtypeStruct((B * Sy, H), jnp.float32)),
        in_specs=[vmem] * 7,
        out_specs=(vmem, vmem),
    )(x2, y2, xm, ym, w32, w64, vec)
    return ox.reshape(B, Sx, H), oy.reshape(B, Sy, H)


# ----------------------------- params -----------------------------

def _glorot(key, shape):
    lim = math.sqrt(6.0 / (shape[0] + shape[1]))
    return jax.random.uniform(key, shape, jnp.float32, -lim, lim)


def _bias(key, n):
    return 0.01 * jax.random.normal(key, (n,), jnp.float32)


def init_block_params(key):
    ks = iter(jax.random.split(key, 64))
    p = {}

    def self_mh(prefix):
        wq = _glorot(next(ks), (HIDDEN, HIDDEN))
        wk = _glorot(next(ks), (HIDDEN, HIDDEN))
        wv = _glorot(next(ks), (HIDDEN, HIDDEN))
        p[prefix + "_wqkv"] = jnp.concatenate([wq, wk, wv], axis=1)
        p[prefix + "_bqkv"] = jnp.concatenate(
            [_bias(next(ks), HIDDEN) for _ in range(3)])
        p[prefix + "_wm"] = _glorot(next(ks), (HIDDEN, HIDDEN))
        p[prefix + "_bm"] = _bias(next(ks), HIDDEN)

    def two_layer(prefix, din, dmid, dout):
        p[prefix + "_w1"] = _glorot(next(ks), (din, dmid))
        p[prefix + "_b1"] = _bias(next(ks), dmid)
        p[prefix + "_w2"] = _glorot(next(ks), (dmid, dout))
        p[prefix + "_b2"] = _bias(next(ks), dout)

    def ln(prefix):
        p[prefix + "_g"] = jnp.ones((HIDDEN,), jnp.float32)
        p[prefix + "_b"] = jnp.zeros((HIDDEN,), jnp.float32)

    # SelfAttention block
    self_mh("sa1")
    two_layer("sa1_ffn", HIDDEN, FF_SIZE, HIDDEN)
    ln("sa1_n1"); ln("sa1_n2")

    # SelfGuidedAttention block
    self_mh("sa3_mh1")
    p["sa3_mh2_wq"] = _glorot(next(ks), (HIDDEN, HIDDEN))
    p["sa3_mh2_bq"] = _bias(next(ks), HIDDEN)
    p["sa3_mh2_wkv"] = jnp.concatenate([_glorot(next(ks), (HIDDEN, HIDDEN)),
                                        _glorot(next(ks), (HIDDEN, HIDDEN))],
                                       axis=1)
    p["sa3_mh2_bkv"] = jnp.concatenate([_bias(next(ks), HIDDEN),
                                        _bias(next(ks), HIDDEN)])
    p["sa3_mh2_wm"] = _glorot(next(ks), (HIDDEN, HIDDEN))
    p["sa3_mh2_bm"] = _bias(next(ks), HIDDEN)
    two_layer("sa3_ffn", HIDDEN, FF_SIZE, HIDDEN)
    ln("sa3_n1"); ln("sa3_n2"); ln("sa3_n3")

    # Attention flattening + final norms
    two_layer("attL", HIDDEN, FLAT_MLP, LANG_SEQ)
    two_layer("attA", HIDDEN, FLAT_MLP, AUDIO_SEQ)
    ln("norm_l"); ln("norm_i")
    return p


# ----------------------------- main -----------------------------

if __name__ == "__main__":
    key = jax.random.PRNGKey(0)
    kp, kx, ky = jax.random.split(key, 3)
    params = init_block_params(kp)

    x = jax.random.normal(kx, (BATCH, LANG_SEQ, HIDDEN), jnp.float32)
    y = jax.random.normal(ky, (BATCH, AUDIO_SEQ, HIDDEN), jnp.float32)

    lang_len = jnp.array([LANG_SEQ, 5])
    audio_len = jnp.array([AUDIO_SEQ, 10])
    x_mask = jnp.arange(LANG_SEQ)[None, :] >= lang_len[:, None]    # True = padding
    y_mask = jnp.arange(AUDIO_SEQ)[None, :] >= audio_len[:, None]

    out_x, out_y = block_forward(params, x, x_mask, y, y_mask, last=False)
    jax.block_until_ready((out_x, out_y))

    assert out_x.shape == (BATCH, LANG_SEQ, HIDDEN)
    assert out_y.shape == (BATCH, AUDIO_SEQ, HIDDEN)
    assert jnp.all(jnp.isfinite(out_x)) and jnp.all(jnp.isfinite(out_y))
    print("KERNEL_OK")
</pallas_src>

<mosaic_0001>
module attributes {stable_mosaic.version = 11 : i64} {
  func.func @kernel(%arg0: memref<16x32xf32, #tpu.memory_space<vmem>>, %arg1: memref<32x32xf32, #tpu.memory_space<vmem>>, %arg2: memref<2x8xi32, #tpu.memory_space<vmem>>, %arg3: memref<2x16xi32, #tpu.memory_space<vmem>>, %arg4: memref<32x600xbf16, #tpu.memory_space<vmem>>, %arg5: memref<64x64xbf16, #tpu.memory_space<vmem>>, %arg6: memref<1x1112xf32, #tpu.memory_space<vmem>>, %arg7: memref<16x32xf32, #tpu.memory_space<vmem>>, %arg8: memref<32x32xf32, #tpu.memory_space<vmem>>) attributes {dimension_semantics = [], scalar_prefetch = 0 : i64, scratch_operands = 0 : i64, tpu.core_type = #tpu.core_type<tc>} {
    %c0 = arith.constant 0 : index
    %c0_0 = arith.constant 0 : index
    %0 = vector.load %arg2[%c0, %c0_0] : memref<2x8xi32, #tpu.memory_space<vmem>>, vector<2x8xi32>
    %c0_i32 = arith.constant 0 : i32
    %1 = vector.broadcast %c0_i32 : i32 to vector<2x8xi32>
    %2 = arith.cmpi ne, %0, %1 : vector<2x8xi32>
    %cst = arith.constant -1.000000e+09 : f32
    %cst_1 = arith.constant 0.000000e+00 : f32
    %3 = vector.broadcast %cst : f32 to vector<2x8xf32>
    %4 = vector.broadcast %cst_1 : f32 to vector<2x8xf32>
    %5 = arith.select %2, %3, %4 : vector<2x8xi1>, vector<2x8xf32>
    %c0_2 = arith.constant 0 : index
    %c0_3 = arith.constant 0 : index
    %6 = vector.load %arg3[%c0_2, %c0_3] : memref<2x16xi32, #tpu.memory_space<vmem>>, vector<2x16xi32>
    %c0_i32_4 = arith.constant 0 : i32
    %7 = vector.broadcast %c0_i32_4 : i32 to vector<2x16xi32>
    %8 = arith.cmpi ne, %6, %7 : vector<2x16xi32>
    %cst_5 = arith.constant -1.000000e+09 : f32
    %cst_6 = arith.constant 0.000000e+00 : f32
    %9 = vector.broadcast %cst_5 : f32 to vector<2x16xf32>
    %10 = vector.broadcast %cst_6 : f32 to vector<2x16xf32>
    %11 = arith.select %8, %9, %10 : vector<2x16xi1>, vector<2x16xf32>
    %12 = vector.shape_cast %5 : vector<2x8xf32> to vector<2x1x8xf32>
    %13 = vector.shape_cast %11 : vector<2x16xf32> to vector<2x1x16xf32>
    %14 = vector.shape_cast %5 : vector<2x8xf32> to vector<1x2x1x8xf32>
    %15 = vector.shape_cast %14 : vector<1x2x1x8xf32> to vector<1x2x1x8xf32>
    %16 = vector.broadcast %15 : vector<1x2x1x8xf32> to vector<4x2x1x8xf32>
    %17 = vector.shape_cast %16 : vector<4x2x1x8xf32> to vector<8x1x8xf32>
    %18 = vector.shape_cast %11 : vector<2x16xf32> to vector<1x2x1x16xf32>
    %19 = vector.shape_cast %18 : vector<1x2x1x16xf32> to vector<1x2x1x16xf32>
    %20 = vector.broadcast %19 : vector<1x2x1x16xf32> to vector<4x2x1x16xf32>
    %21 = vector.shape_cast %20 : vector<4x2x1x16xf32> to vector<8x1x16xf32>
    %c0_7 = arith.constant 0 : index
    %c0_8 = arith.constant 0 : index
    %22 = vector.load %arg0[%c0_7, %c0_8] : memref<16x32xf32, #tpu.memory_space<vmem>>, vector<16x32xf32>
    %c0_9 = arith.constant 0 : index
    %c0_10 = arith.constant 0 : index
    %23 = vector.load %arg1[%c0_9, %c0_10] : memref<32x32xf32, #tpu.memory_space<vmem>>, vector<32x32xf32>
    %c0_11 = arith.constant 0 : index
    %c0_12 = arith.constant 0 : index
    %24 = vector.load %arg4[%c0_11, %c0_12] : memref<32x600xbf16, #tpu.memory_space<vmem>>, vector<32x96xbf16>
    %c0_13 = arith.constant 0 : index
    %c0_14 = arith.constant 0 : index
    %25 = vector.load %arg6[%c0_13, %c0_14] : memref<1x1112xf32, #tpu.memory_space<vmem>>, vector<1x96xf32>
    %c0_15 = arith.constant 0 : index
    %c96 = arith.constant 96 : index
    %26 = vector.load %arg4[%c0_15, %c96] : memref<32x600xbf16, #tpu.memory_space<vmem>>, vector<32x32xbf16>
    %c0_16 = arith.constant 0 : index
    %c96_17 = arith.constant 96 : index
    %27 = vector.load %arg6[%c0_16, %c96_17] : memref<1x1112xf32, #tpu.memory_space<vmem>>, vector<1x32xf32>
    %28 = arith.truncf %22 : vector<16x32xf32> to vector<16x32xbf16>
    %cst_18 = arith.constant dense<0.000000e+00> : vector<16x96xf32>
    %29 = tpu.matmul %28, %24, %cst_18 {dimension_numbers = #tpu.dot_dimension_numbers<[1], [0], [0], [1], [0, 0, 1, 1], [], []>} : vector<16x32xbf16>, vector<32x96xbf16>, vector<16x96xf32> -> vector<16x96xf32>
    %30 = vector.broadcast %25 : vector<1x96xf32> to vector<16x96xf32>
    %31 = arith.addf %29, %30 : vector<16x96xf32>
    %32 = vector.extract_strided_slice %31 {offsets = [0, 0], sizes = [16, 32], strides = [1, 1]} : vector<16x96xf32> to vector<16x32xf32>
    %33 = vector.extract_strided_slice %31 {offsets = [0, 32], sizes = [16, 32], strides = [1, 1]} : vector<16x96xf32> to vector<16x32xf32>
    %34 = vector.extract_strided_slice %31 {offsets = [0, 64], sizes = [16, 32], strides = [1, 1]} : vector<16x96xf32> to vector<16x32xf32>
    %35 = vector.extract_strided_slice %32 {offsets = [0, 0], sizes = [16, 8], strides = [1, 1]} : vector<16x32xf32> to vector<16x8xf32>
    %36 = vector.shape_cast %35 : vector<16x8xf32> to vector<2x8x8xf32>
    %37 = vector.extract_strided_slice %32 {offsets = [0, 8], sizes = [16, 8], strides = [1, 1]} : vector<16x32xf32> to vector<16x8xf32>
    %38 = vector.shape_cast %37 : vector<16x8xf32> to vector<2x8x8xf32>
    %39 = vector.extract_strided_slice %32 {offsets = [0, 16], sizes = [16, 8], strides = [1, 1]} : vector<16x32xf32> to vector<16x8xf32>
    %40 = vector.shape_cast %39 : vector<16x8xf32> to vector<2x8x8xf32>
    %41 = vector.extract_strided_slice %32 {offsets = [0, 24], sizes = [16, 8], strides = [1, 1]} : vector<16x32xf32> to vector<16x8xf32>
    %42 = vector.shape_cast %41 : vector<16x8xf32> to vector<2x8x8xf32>
    %43 = tpu.concatenate %36, %38, %40, %42 in 0 : vector<2x8x8xf32>, vector<2x8x8xf32>, vector<2x8x8xf32>, vector<2x8x8xf32> -> vector<8x8x8xf32>
    %44 = vector.extract_strided_slice %33 {offsets = [0, 0], sizes = [16, 8], strides = [1, 1]} : vector<16x32xf32> to vector<16x8xf32>
    %45 = vector.shape_cast %44 : vector<16x8xf32> to vector<2x8x8xf32>
    %46 = vector.extract_strided_slice %33 {offsets = [0, 8], sizes = [16, 8], strides = [1, 1]} : vector<16x32xf32> to vector<16x8xf32>
    %47 = vector.shape_cast %46 : vector<16x8xf32> to vector<2x8x8xf32>
    %48 = vector.extract_strided_slice %33 {offsets = [0, 16], sizes = [16, 8], strides = [1, 1]} : vector<16x32xf32> to vector<16x8xf32>
    %49 = vector.shape_cast %48 : vector<16x8xf32> to vector<2x8x8xf32>
    %50 = vector.extract_strided_slice %33 {offsets = [0, 24], sizes = [16, 8], strides = [1, 1]} : vector<16x32xf32> to vector<16x8xf32>
    %51 = vector.shape_cast %50 : vector<16x8xf32> to vector<2x8x8xf32>
    %52 = tpu.concatenate %45, %47, %49, %51 in 0 : vector<2x8x8xf32>, vector<2x8x8xf32>, vector<2x8x8xf32>, vector<2x8x8xf32> -> vector<8x8x8xf32>
    %53 = vector.extract_strided_slice %34 {offsets = [0, 0], sizes = [16, 8], strides = [1, 1]} : vector<16x32xf32> to vector<16x8xf32>
    %54 = vector.shape_cast %53 : vector<16x8xf32> to vector<2x8x8xf32>
    %55 = vector.extract_strided_slice %34 {offsets = [0, 8], sizes = [16, 8], strides = [1, 1]} : vector<16x32xf32> to vector<16x8xf32>
    %56 = vector.shape_cast %55 : vector<16x8xf32> to vector<2x8x8xf32>
    %57 = vector.extract_strided_slice %34 {offsets = [0, 16], sizes = [16, 8], strides = [1, 1]} : vector<16x32xf32> to vector<16x8xf32>
    %58 = vector.shape_cast %57 : vector<16x8xf32> to vector<2x8x8xf32>
    %59 = vector.extract_strided_slice %34 {offsets = [0, 24], sizes = [16, 8], strides = [1, 1]} : vector<16x32xf32> to vector<16x8xf32>
    %60 = vector.shape_cast %59 : vector<16x8xf32> to vector<2x8x8xf32>
    %61 = tpu.concatenate %54, %56, %58, %60 in 0 : vector<2x8x8xf32>, vector<2x8x8xf32>, vector<2x8x8xf32>, vector<2x8x8xf32> -> vector<8x8x8xf32>
    "tpu.trace_start"() <{level = 10 : i32, message = "nqd,nkd->nqk"}> : () -> ()
    %cst_19 = arith.constant dense<0.000000e+00> : vector<8x8x8xf32>
    %62 = tpu.matmul %43, %52, %cst_19 {dimension_numbers = #tpu.dot_dimension_numbers<[2], [2], [1], [1], [0, 0, 0, 1, 1, 1], [0], [0]>} : vector<8x8x8xf32>, vector<8x8x8xf32>, vector<8x8x8xf32> -> vector<8x8x8xf32>
    "tpu.trace_stop"() : () -> ()
    %cst_20 = arith.constant 0.353553385 : f32
    %63 = vector.broadcast %cst_20 : f32 to vector<8x8x8xf32>
    %64 = arith.mulf %62, %63 : vector<8x8x8xf32>
    %65 = vector.broadcast %17 : vector<8x1x8xf32> to vector<8x8x8xf32>
    %66 = arith.addf %64, %65 : vector<8x8x8xf32>
    %cst_21 = arith.constant dense<0xFF800000> : vector<8x8xf32>
    %67 = vector.multi_reduction <maximumf>, %66, %cst_21 [2] : vector<8x8x8xf32> to vector<8x8xf32>
    %68 = vector.shape_cast %67 : vector<8x8xf32> to vector<8x8x1xf32>
    %69 = vector.broadcast %68 : vector<8x8x1xf32> to vector<8x8x8xf32>
    %70 = arith.subf %66, %69 : vector<8x8x8xf32>
    %71 = math.exp %70 : vector<8x8x8xf32>
    %cst_22 = arith.constant dense<0.000000e+00> : vector<8x8xf32>
    %72 = vector.multi_reduction <add>, %71, %cst_22 [2] : vector<8x8x8xf32> to vector<8x8xf32>
    %73 = vector.shape_cast %72 : vector<8x8xf32> to vector<8x8x1xf32>
    %74 = tpu.reciprocal %73 {approx = true} : vector<8x8x1xf32> -> vector<8x8x1xf32>
    %75 = vector.broadcast %74 : vector<8x8x1xf32> to vector<8x8x8xf32>
    %76 = arith.mulf %71, %75 : vector<8x8x8xf32>
    "tpu.trace_start"() <{level = 10 : i32, message = "nqk,nkd->nqd"}> : () -> ()
    %cst_23 = arith.constant dense<0.000000e+00> : vector<8x8x8xf32>
    %77 = tpu.matmul %76, %61, %cst_23 {dimension_numbers = #tpu.dot_dimension_numbers<[2], [1], [1], [2], [0, 0, 0, 1, 1, 2], [0], [0]>} : vector<8x8x8xf32>, vector<8x8x8xf32>, vector<8x8x8xf32> -> vector<8x8x8xf32>
    "tpu.trace_stop"() : () -> ()
    %78 = vector.extract_strided_slice %77 {offsets = [0, 0, 0], sizes = [2, 8, 8], strides = [1, 1, 1]} : vector<8x8x8xf32> to vector<2x8x8xf32>
    %79 = vector.shape_cast %78 : vector<2x8x8xf32> to vector<16x8xf32>
    %80 = vector.extract_strided_slice %77 {offsets = [2, 0, 0], sizes = [2, 8, 8], strides = [1, 1, 1]} : vector<8x8x8xf32> to vector<2x8x8xf32>
    %81 = vector.shape_cast %80 : vector<2x8x8xf32> to vector<16x8xf32>
    %82 = vector.extract_strided_slice %77 {offsets = [4, 0, 0], sizes = [2, 8, 8], strides = [1, 1, 1]} : vector<8x8x8xf32> to vector<2x8x8xf32>
    %83 = vector.shape_cast %82 : vector<2x8x8xf32> to vector<16x8xf32>
    %84 = vector.extract_strided_slice %77 {offsets = [6, 0, 0], sizes = [2, 8, 8], strides = [1, 1, 1]} : vector<8x8x8xf32> to vector<2x8x8xf32>
    %85 = vector.shape_cast %84 : vector<2x8x8xf32> to vector<16x8xf32>
    %86 = tpu.concatenate %79, %81, %83, %85 in 1 : vector<16x8xf32>, vector<16x8xf32>, vector<16x8xf32>, vector<16x8xf32> -> vector<16x32xf32>
    %87 = arith.truncf %86 : vector<16x32xf32> to vector<16x32xbf16>
    %cst_24 = arith.constant dense<0.000000e+00> : vector<16x32xf32>
    %88 = tpu.matmul %87, %26, %cst_24 {dimension_numbers = #tpu.dot_dimension_numbers<[1], [0], [0], [1], [0, 0, 1, 1], [], []>} : vector<16x32xbf16>, vector<32x32xbf16>, vector<16x32xf32> -> vector<16x32xf32>
    %89 = vector.broadcast %27 : vector<1x32xf32> to vector<16x32xf32>
    %90 = arith.addf %88, %89 : vector<16x32xf32>
    %91 = arith.addf %22, %90 : vector<16x32xf32>
    %c0_25 = arith.constant 0 : index
    %c224 = arith.constant 224 : index
    %92 = vector.load %arg6[%c0_25, %c224] : memref<1x1112xf32, #tpu.memory_space<vmem>>, vector<1x32xf32>
    %c0_26 = arith.constant 0 : index
    %c256 = arith.constant 256 : index
    %93 = vector.load %arg6[%c0_26, %c256] : memref<1x1112xf32, #tpu.memory_space<vmem>>, vector<1x32xf32>
    %cst_27 = arith.constant dense<0.000000e+00> : vector<16xf32>
    %94 = vector.multi_reduction <add>, %91, %cst_27 [1] : vector<16x32xf32> to vector<16xf32>
    %95 = vector.shape_cast %94 : vector<16xf32> to vector<16x1xf32>
    %cst_28 = arith.constant 3.200000e+01 : f32
    %96 = vector.broadcast %cst_28 : f32 to vector<16x1xf32>
    %97 = arith.divf %95, %96 : vector<16x1xf32>
    %98 = vector.broadcast %97 : vector<16x1xf32> to vector<16x32xf32>
    %99 = arith.subf %91, %98 : vector<16x32xf32>
    %100 = arith.mulf %99, %99 : vector<16x32xf32>
    %cst_29 = arith.constant dense<0.000000e+00> : vector<16xf32>
    %101 = vector.multi_reduction <add>, %100, %cst_29 [1] : vector<16x32xf32> to vector<16xf32>
    %102 = vector.shape_cast %101 : vector<16xf32> to vector<16x1xf32>
    %cst_30 = arith.constant 3.200000e+01 : f32
    %103 = vector.broadcast %cst_30 : f32 to vector<16x1xf32>
    %104 = arith.divf %102, %103 : vector<16x1xf32>
    %cst_31 = arith.constant 9.99999997E-7 : f32
    %105 = vector.broadcast %cst_31 : f32 to vector<16x1xf32>
    %106 = arith.addf %104, %105 : vector<16x1xf32>
    %107 = math.rsqrt %106 : vector<16x1xf32>
    %108 = vector.broadcast %107 : vector<16x1xf32> to vector<16x32xf32>
    %109 = arith.mulf %99, %108 : vector<16x32xf32>
    %110 = vector.broadcast %92 : vector<1x32xf32> to vector<16x32xf32>
    %111 = arith.mulf %110, %109 : vector<16x32xf32>
    %112 = vector.broadcast %93 : vector<1x32xf32> to vector<16x32xf32>
    %113 = arith.addf %111, %112 : vector<16x32xf32>
    %c0_32 = arith.constant 0 : index
    %c128 = arith.constant 128 : index
    %114 = vector.load %arg4[%c0_32, %c128] : memref<32x600xbf16, #tpu.memory_space<vmem>>, vector<32x64xbf16>
    %c0_33 = arith.constant 0 : index
    %c128_34 = arith.constant 128 : index
    %115 = vector.load %arg6[%c0_33, %c128_34] : memref<1x1112xf32, #tpu.memory_space<vmem>>, vector<1x64xf32>
    %c0_35 = arith.constant 0 : index
    %c0_36 = arith.constant 0 : index
    %116 = vector.load %arg5[%c0_35, %c0_36] : memref<64x64xbf16, #tpu.memory_space<vmem>>, vector<64x32xbf16>
    %c0_37 = arith.constant 0 : index
    %c192 = arith.constant 192 : index
    %117 = vector.load %arg6[%c0_37, %c192] : memref<1x1112xf32, #tpu.memory_space<vmem>>, vector<1x32xf32>
    %118 = arith.truncf %113 : vector<16x32xf32> to vector<16x32xbf16>
    %cst_38 = arith.constant dense<0.000000e+00> : vector<16x64xf32>
    %119 = tpu.matmul %118, %114, %cst_38 {dimension_numbers = #tpu.dot_dimension_numbers<[1], [0], [0], [1], [0, 0, 1, 1], [], []>} : vector<16x32xbf16>, vector<32x64xbf16>, vector<16x64xf32> -> vector<16x64xf32>
    %120 = vector.broadcast %115 : vector<1x64xf32> to vector<16x64xf32>
    %121 = arith.addf %119, %120 : vector<16x64xf32>
    %cst_39 = arith.constant 0.000000e+00 : f32
    %122 = vector.broadcast %cst_39 : f32 to vector<16x64xf32>
    %123 = arith.maximumf %121, %122 : vector<16x64xf32>
    %124 = arith.truncf %123 : vector<16x64xf32> to vector<16x64xbf16>
    %cst_40 = arith.constant dense<0.000000e+00> : vector<16x32xf32>
    %125 = tpu.matmul %124, %116, %cst_40 {dimension_numbers = #tpu.dot_dimension_numbers<[1], [0], [0], [1], [0, 0, 1, 1], [], []>} : vector<16x64xbf16>, vector<64x32xbf16>, vector<16x32xf32> -> vector<16x32xf32>
    %126 = vector.broadcast %117 : vector<1x32xf32> to vector<16x32xf32>
    %127 = arith.addf %125, %126 : vector<16x32xf32>
    %128 = arith.addf %113, %127 : vector<16x32xf32>
    %c0_41 = arith.constant 0 : index
    %c288 = arith.constant 288 : index
    %129 = vector.load %arg6[%c0_41, %c288] : memref<1x1112xf32, #tpu.memory_space<vmem>>, vector<1x32xf32>
    %c0_42 = arith.constant 0 : index
    %c320 = arith.constant 320 : index
    %130 = vector.load %arg6[%c0_42, %c320] : memref<1x1112xf32, #tpu.memory_space<vmem>>, vector<1x32xf32>
    %cst_43 = arith.constant dense<0.000000e+00> : vector<16xf32>
    %131 = vector.multi_reduction <add>, %128, %cst_43 [1] : vector<16x32xf32> to vector<16xf32>
    %132 = vector.shape_cast %131 : vector<16xf32> to vector<16x1xf32>
    %cst_44 = arith.constant 3.200000e+01 : f32
    %133 = vector.broadcast %cst_44 : f32 to vector<16x1xf32>
    %134 = arith.divf %132, %133 : vector<16x1xf32>
    %135 = vector.broadcast %134 : vector<16x1xf32> to vector<16x32xf32>
    %136 = arith.subf %128, %135 : vector<16x32xf32>
    %137 = arith.mulf %136, %136 : vector<16x32xf32>
    %cst_45 = arith.constant dense<0.000000e+00> : vector<16xf32>
    %138 = vector.multi_reduction <add>, %137, %cst_45 [1] : vector<16x32xf32> to vector<16xf32>
    %139 = vector.shape_cast %138 : vector<16xf32> to vector<16x1xf32>
    %cst_46 = arith.constant 3.200000e+01 : f32
    %140 = vector.broadcast %cst_46 : f32 to vector<16x1xf32>
    %141 = arith.divf %139, %140 : vector<16x1xf32>
    %cst_47 = arith.constant 9.99999997E-7 : f32
    %142 = vector.broadcast %cst_47 : f32 to vector<16x1xf32>
    %143 = arith.addf %141, %142 : vector<16x1xf32>
    %144 = math.rsqrt %143 : vector<16x1xf32>
    %145 = vector.broadcast %144 : vector<16x1xf32> to vector<16x32xf32>
    %146 = arith.mulf %136, %145 : vector<16x32xf32>
    %147 = vector.broadcast %129 : vector<1x32xf32> to vector<16x32xf32>
    %148 = arith.mulf %147, %146 : vector<16x32xf32>
    %149 = vector.broadcast %130 : vector<1x32xf32> to vector<16x32xf32>
    %150 = arith.addf %148, %149 : vector<16x32xf32>
    %c0_48 = arith.constant 0 : index
    %c192_49 = arith.constant 192 : index
    %151 = vector.load %arg4[%c0_48, %c192_49] : memref<32x600xbf16, #tpu.memory_space<vmem>>, vector<32x96xbf16>
    %c0_50 = arith.constant 0 : index
    %c352 = arith.constant 352 : index
    %152 = vector.load %arg6[%c0_50, %c352] : memref<1x1112xf32, #tpu.memory_space<vmem>>, vector<1x96xf32>
    %c0_51 = arith.constant 0 : index
    %c288_52 = arith.constant 288 : index
    %153 = vector.load %arg4[%c0_51, %c288_52] : memref<32x600xbf16, #tpu.memory_space<vmem>>, vector<32x32xbf16>
    %c0_53 = arith.constant 0 : index
    %c448 = arith.constant 448 : index
    %154 = vector.load %arg6[%c0_53, %c448] : memref<1x1112xf32, #tpu.memory_space<vmem>>, vector<1x32xf32>
    %155 = arith.truncf %23 : vector<32x32xf32> to vector<32x32xbf16>
    %cst_54 = arith.constant dense<0.000000e+00> : vector<32x96xf32>
    %156 = tpu.matmul %155, %151, %cst_54 {dimension_numbers = #tpu.dot_dimension_numbers<[1], [0], [0], [1], [0, 0, 1, 1], [], []>} : vector<32x32xbf16>, vector<32x96xbf16>, vector<32x96xf32> -> vector<32x96xf32>
    %157 = vector.broadcast %152 : vector<1x96xf32> to vector<32x96xf32>
    %158 = arith.addf %156, %157 : vector<32x96xf32>
    %159 = vector.extract_strided_slice %158 {offsets = [0, 0], sizes = [32, 32], strides = [1, 1]} : vector<32x96xf32> to vector<32x32xf32>
    %160 = vector.extract_strided_slice %158 {offsets = [0, 32], sizes = [32, 32], strides = [1, 1]} : vector<32x96xf32> to vector<32x32xf32>
    %161 = vector.extract_strided_slice %158 {offsets = [0, 64], sizes = [32, 32], strides = [1, 1]} : vector<32x96xf32> to vector<32x32xf32>
    %162 = vector.extract_strided_slice %159 {offsets = [0, 0], sizes = [32, 8], strides = [1, 1]} : vector<32x32xf32> to vector<32x8xf32>
    %163 = vector.shape_cast %162 : vector<32x8xf32> to vector<2x16x8xf32>
    %164 = vector.extract_strided_slice %159 {offsets = [0, 8], sizes = [32, 8], strides = [1, 1]} : vector<32x32xf32> to vector<32x8xf32>
    %165 = vector.shape_cast %164 : vector<32x8xf32> to vector<2x16x8xf32>
    %166 = vector.extract_strided_slice %159 {offsets = [0, 16], sizes = [32, 8], strides = [1, 1]} : vector<32x32xf32> to vector<32x8xf32>
    %167 = vector.shape_cast %166 : vector<32x8xf32> to vector<2x16x8xf32>
    %168 = vector.extract_strided_slice %159 {offsets = [0, 24], sizes = [32, 8], strides = [1, 1]} : vector<32x32xf32> to vector<32x8xf32>
    %169 = vector.shape_cast %168 : vector<32x8xf32> to vector<2x16x8xf32>
    %170 = tpu.concatenate %163, %165, %167, %169 in 0 : vector<2x16x8xf32>, vector<2x16x8xf32>, vector<2x16x8xf32>, vector<2x16x8xf32> -> vector<8x16x8xf32>
    %171 = vector.extract_strided_slice %160 {offsets = [0, 0], sizes = [32, 8], strides = [1, 1]} : vector<32x32xf32> to vector<32x8xf32>
    %172 = vector.shape_cast %171 : vector<32x8xf32> to vector<2x16x8xf32>
    %173 = vector.extract_strided_slice %160 {offsets = [0, 8], sizes = [32, 8], strides = [1, 1]} : vector<32x32xf32> to vector<32x8xf32>
    %174 = vector.shape_cast %173 : vector<32x8xf32> to vector<2x16x8xf32>
    %175 = vector.extract_strided_slice %160 {offsets = [0, 16], sizes = [32, 8], strides = [1, 1]} : vector<32x32xf32> to vector<32x8xf32>
    %176 = vector.shape_cast %175 : vector<32x8xf32> to vector<2x16x8xf32>
    %177 = vector.extract_strided_slice %160 {offsets = [0, 24], sizes = [32, 8], strides = [1, 1]} : vector<32x32xf32> to vector<32x8xf32>
    %178 = vector.shape_cast %177 : vector<32x8xf32> to vector<2x16x8xf32>
    %179 = tpu.concatenate %172, %174, %176, %178 in 0 : vector<2x16x8xf32>, vector<2x16x8xf32>, vector<2x16x8xf32>, vector<2x16x8xf32> -> vector<8x16x8xf32>
    %180 = vector.extract_strided_slice %161 {offsets = [0, 0], sizes = [32, 8], strides = [1, 1]} : vector<32x32xf32> to vector<32x8xf32>
    %181 = vector.shape_cast %180 : vector<32x8xf32> to vector<2x16x8xf32>
    %182 = vector.extract_strided_slice %161 {offsets = [0, 8], sizes = [32, 8], strides = [1, 1]} : vector<32x32xf32> to vector<32x8xf32>
    %183 = vector.shape_cast %182 : vector<32x8xf32> to vector<2x16x8xf32>
    %184 = vector.extract_strided_slice %161 {offsets = [0, 16], sizes = [32, 8], strides = [1, 1]} : vector<32x32xf32> to vector<32x8xf32>
    %185 = vector.shape_cast %184 : vector<32x8xf32> to vector<2x16x8xf32>
    %186 = vector.extract_strided_slice %161 {offsets = [0, 24], sizes = [32, 8], strides = [1, 1]} : vector<32x32xf32> to vector<32x8xf32>
    %187 = vector.shape_cast %186 : vector<32x8xf32> to vector<2x16x8xf32>
    %188 = tpu.concatenate %181, %183, %185, %187 in 0 : vector<2x16x8xf32>, vector<2x16x8xf32>, vector<2x16x8xf32>, vector<2x16x8xf32> -> vector<8x16x8xf32>
    "tpu.trace_start"() <{level = 10 : i32, message = "nqd,nkd->nqk"}> : () -> ()
    %cst_55 = arith.constant dense<0.000000e+00> : vector<8x16x16xf32>
    %189 = tpu.matmul %170, %179, %cst_55 {dimension_numbers = #tpu.dot_dimension_numbers<[2], [2], [1], [1], [0, 0, 0, 1, 1, 1], [0], [0]>} : vector<8x16x8xf32>, vector<8x16x8xf32>, vector<8x16x16xf32> -> vector<8x16x16xf32>
    "tpu.trace_stop"() : () -> ()
    %cst_56 = arith.constant 0.353553385 : f32
    %190 = vector.broadcast %cst_56 : f32 to vector<8x16x16xf32>
    %191 = arith.mulf %189, %190 : vector<8x16x16xf32>
    %192 = vector.broadcast %21 : vector<8x1x16xf32> to vector<8x16x16xf32>
    %193 = arith.addf %191, %192 : vector<8x16x16xf32>
    %cst_57 = arith.constant dense<0xFF800000> : vector<8x16xf32>
    %194 = vector.multi_reduction <maximumf>, %193, %cst_57 [2] : vector<8x16x16xf32> to vector<8x16xf32>
    %195 = vector.shape_cast %194 : vector<8x16xf32> to vector<8x16x1xf32>
    %196 = vector.broadcast %195 : vector<8x16x1xf32> to vector<8x16x16xf32>
    %197 = arith.subf %193, %196 : vector<8x16x16xf32>
    %198 = math.exp %197 : vector<8x16x16xf32>
    %cst_58 = arith.constant dense<0.000000e+00> : vector<8x16xf32>
    %199 = vector.multi_reduction <add>, %198, %cst_58 [2] : vector<8x16x16xf32> to vector<8x16xf32>
    %200 = vector.shape_cast %199 : vector<8x16xf32> to vector<8x16x1xf32>
    %201 = tpu.reciprocal %200 {approx = true} : vector<8x16x1xf32> -> vector<8x16x1xf32>
    %202 = vector.broadcast %201 : vector<8x16x1xf32> to vector<8x16x16xf32>
    %203 = arith.mulf %198, %202 : vector<8x16x16xf32>
    "tpu.trace_start"() <{level = 10 : i32, message = "nqk,nkd->nqd"}> : () -> ()
    %cst_59 = arith.constant dense<0.000000e+00> : vector<8x16x8xf32>
    %204 = tpu.matmul %203, %188, %cst_59 {dimension_numbers = #tpu.dot_dimension_numbers<[2], [1], [1], [2], [0, 0, 0, 1, 1, 2], [0], [0]>} : vector<8x16x16xf32>, vector<8x16x8xf32>, vector<8x16x8xf32> -> vector<8x16x8xf32>
    "tpu.trace_stop"() : () -> ()
    %205 = vector.extract_strided_slice %204 {offsets = [0, 0, 0], sizes = [2, 16, 8], strides = [1, 1, 1]} : vector<8x16x8xf32> to vector<2x16x8xf32>
    %206 = vector.shape_cast %205 : vector<2x16x8xf32> to vector<32x8xf32>
    %207 = vector.extract_strided_slice %204 {offsets = [2, 0, 0], sizes = [2, 16, 8], strides = [1, 1, 1]} : vector<8x16x8xf32> to vector<2x16x8xf32>
    %208 = vector.shape_cast %207 : vector<2x16x8xf32> to vector<32x8xf32>
    %209 = vector.extract_strided_slice %204 {offsets = [4, 0, 0], sizes = [2, 16, 8], strides = [1, 1, 1]} : vector<8x16x8xf32> to vector<2x16x8xf32>
    %210 = vector.shape_cast %209 : vector<2x16x8xf32> to vector<32x8xf32>
    %211 = vector.extract_strided_slice %204 {offsets = [6, 0, 0], sizes = [2, 16, 8], strides = [1, 1, 1]} : vector<8x16x8xf32> to vector<2x16x8xf32>
    %212 = vector.shape_cast %211 : vector<2x16x8xf32> to vector<32x8xf32>
    %213 = tpu.concatenate %206, %208, %210, %212 in 1 : vector<32x8xf32>, vector<32x8xf32>, vector<32x8xf32>, vector<32x8xf32> -> vector<32x32xf32>
    %214 = arith.truncf %213 : vector<32x32xf32> to vector<32x32xbf16>
    %cst_60 = arith.constant dense<0.000000e+00> : vector<32x32xf32>
    %215 = tpu.matmul %214, %153, %cst_60 {dimension_numbers = #tpu.dot_dimension_numbers<[1], [0], [0], [1], [0, 0, 1, 1], [], []>} : vector<32x32xbf16>, vector<32x32xbf16>, vector<32x32xf32> -> vector<32x32xf32>
    %216 = vector.broadcast %154 : vector<1x32xf32> to vector<32x32xf32>
    %217 = arith.addf %215, %216 : vector<32x32xf32>
    %218 = arith.addf %23, %217 : vector<32x32xf32>
    %c0_61 = arith.constant 0 : index
    %c704 = arith.constant 704 : index
    %219 = vector.load %arg6[%c0_61, %c704] : memref<1x1112xf32, #tpu.memory_space<vmem>>, vector<1x32xf32>
    %c0_62 = arith.constant 0 : index
    %c736 = arith.constant 736 : index
    %220 = vector.load %arg6[%c0_62, %c736] : memref<1x1112xf32, #tpu.memory_space<vmem>>, vector<1x32xf32>
    %cst_63 = arith.constant dense<0.000000e+00> : vector<32xf32>
    %221 = vector.multi_reduction <add>, %218, %cst_63 [1] : vector<32x32xf32> to vector<32xf32>
    %222 = vector.shape_cast %221 : vector<32xf32> to vector<32x1xf32>
    %cst_64 = arith.constant 3.200000e+01 : f32
    %223 = vector.broadcast %cst_64 : f32 to vector<32x1xf32>
    %224 = arith.divf %222, %223 : vector<32x1xf32>
    %225 = vector.broadcast %224 : vector<32x1xf32> to vector<32x32xf32>
    %226 = arith.subf %218, %225 : vector<32x32xf32>
    %227 = arith.mulf %226, %226 : vector<32x32xf32>
    %cst_65 = arith.constant dense<0.000000e+00> : vector<32xf32>
    %228 = vector.multi_reduction <add>, %227, %cst_65 [1] : vector<32x32xf32> to vector<32xf32>
    %229 = vector.shape_cast %228 : vector<32xf32> to vector<32x1xf32>
    %cst_66 = arith.constant 3.200000e+01 : f32
    %230 = vector.broadcast %cst_66 : f32 to vector<32x1xf32>
    %231 = arith.divf %229, %230 : vector<32x1xf32>
    %cst_67 = arith.constant 9.99999997E-7 : f32
    %232 = vector.broadcast %cst_67 : f32 to vector<32x1xf32>
    %233 = arith.addf %231, %232 : vector<32x1xf32>
    %234 = math.rsqrt %233 : vector<32x1xf32>
    %235 = vector.broadcast %234 : vector<32x1xf32> to vector<32x32xf32>
    %236 = arith.mulf %226, %235 : vector<32x32xf32>
    %237 = vector.broadcast %219 : vector<1x32xf32> to vector<32x32xf32>
    %238 = arith.mulf %237, %236 : vector<32x32xf32>
    %239 = vector.broadcast %220 : vector<1x32xf32> to vector<32x32xf32>
    %240 = arith.addf %238, %239 : vector<32x32xf32>
    %c0_68 = arith.constant 0 : index
    %c320_69 = arith.constant 320 : index
    %241 = vector.load %arg4[%c0_68, %c320_69] : memref<32x600xbf16, #tpu.memory_space<vmem>>, vector<32x32xbf16>
    %c0_70 = arith.constant 0 : index
    %c480 = arith.constant 480 : index
    %242 = vector.load %arg6[%c0_70, %c480] : memref<1x1112xf32, #tpu.memory_space<vmem>>, vector<1x32xf32>
    %c0_71 = arith.constant 0 : index
    %c352_72 = arith.constant 352 : index
    %243 = vector.load %arg4[%c0_71, %c352_72] : memref<32x600xbf16, #tpu.memory_space<vmem>>, vector<32x64xbf16>
    %c0_73 = arith.constant 0 : index
    %c512 = arith.constant 512 : index
    %244 = vector.load %arg6[%c0_73, %c512] : memref<1x1112xf32, #tpu.memory_space<vmem>>, vector<1x64xf32>
    %c0_74 = arith.constant 0 : index
    %c416 = arith.constant 416 : index
    %245 = vector.load %arg4[%c0_74, %c416] : memref<32x600xbf16, #tpu.memory_space<vmem>>, vector<32x32xbf16>
    %c0_75 = arith.constant 0 : index
    %c576 = arith.constant 576 : index
    %246 = vector.load %arg6[%c0_75, %c576] : memref<1x1112xf32, #tpu.memory_space<vmem>>, vector<1x32xf32>
    %247 = arith.truncf %240 : vector<32x32xf32> to vector<32x32xbf16>
    %cst_76 = arith.constant dense<0.000000e+00> : vector<32x32xf32>
    %248 = tpu.matmul %247, %241, %cst_76 {dimension_numbers = #tpu.dot_dimension_numbers<[1], [0], [0], [1], [0, 0, 1, 1], [], []>} : vector<32x32xbf16>, vector<32x32xbf16>, vector<32x32xf32> -> vector<32x32xf32>
    %249 = vector.broadcast %242 : vector<1x32xf32> to vector<32x32xf32>
    %250 = arith.addf %248, %249 : vector<32x32xf32>
    %251 = arith.truncf %22 : vector<16x32xf32> to vector<16x32xbf16>
    %cst_77 = arith.constant dense<0.000000e+00> : vector<16x64xf32>
    %252 = tpu.matmul %251, %243, %cst_77 {dimension_numbers = #tpu.dot_dimension_numbers<[1], [0], [0], [1], [0, 0, 1, 1], [], []>} : vector<16x32xbf16>, vector<32x64xbf16>, vector<16x64xf32> -> vector<16x64xf32>
    %253 = vector.broadcast %244 : vector<1x64xf32> to vector<16x64xf32>
    %254 = arith.addf %252, %253 : vector<16x64xf32>
    %255 = vector.extract_strided_slice %254 {offsets = [0, 0], sizes = [16, 32], strides = [1, 1]} : vector<16x64xf32> to vector<16x32xf32>
    %256 = vector.extract_strided_slice %254 {offsets = [0, 32], sizes = [16, 32], strides = [1, 1]} : vector<16x64xf32> to vector<16x32xf32>
    %257 = vector.extract_strided_slice %250 {offsets = [0, 0], sizes = [32, 8], strides = [1, 1]} : vector<32x32xf32> to vector<32x8xf32>
    %258 = vector.shape_cast %257 : vector<32x8xf32> to vector<2x16x8xf32>
    %259 = vector.extract_strided_slice %250 {offsets = [0, 8], sizes = [32, 8], strides = [1, 1]} : vector<32x32xf32> to vector<32x8xf32>
    %260 = vector.shape_cast %259 : vector<32x8xf32> to vector<2x16x8xf32>
    %261 = vector.extract_strided_slice %250 {offsets = [0, 16], sizes = [32, 8], strides = [1, 1]} : vector<32x32xf32> to vector<32x8xf32>
    %262 = vector.shape_cast %261 : vector<32x8xf32> to vector<2x16x8xf32>
    %263 = vector.extract_strided_slice %250 {offsets = [0, 24], sizes = [32, 8], strides = [1, 1]} : vector<32x32xf32> to vector<32x8xf32>
    %264 = vector.shape_cast %263 : vector<32x8xf32> to vector<2x16x8xf32>
    %265 = tpu.concatenate %258, %260, %262, %264 in 0 : vector<2x16x8xf32>, vector<2x16x8xf32>, vector<2x16x8xf32>, vector<2x16x8xf32> -> vector<8x16x8xf32>
    %266 = vector.extract_strided_slice %255 {offsets = [0, 0], sizes = [16, 8], strides = [1, 1]} : vector<16x32xf32> to vector<16x8xf32>
    %267 = vector.shape_cast %266 : vector<16x8xf32> to vector<2x8x8xf32>
    %268 = vector.extract_strided_slice %255 {offsets = [0, 8], sizes = [16, 8], strides = [1, 1]} : vector<16x32xf32> to vector<16x8xf32>
    %269 = vector.shape_cast %268 : vector<16x8xf32> to vector<2x8x8xf32>
    %270 = vector.extract_strided_slice %255 {offsets = [0, 16], sizes = [16, 8], strides = [1, 1]} : vector<16x32xf32> to vector<16x8xf32>
    %271 = vector.shape_cast %270 : vector<16x8xf32> to vector<2x8x8xf32>
    %272 = vector.extract_strided_slice %255 {offsets = [0, 24], sizes = [16, 8], strides = [1, 1]} : vector<16x32xf32> to vector<16x8xf32>
    %273 = vector.shape_cast %272 : vector<16x8xf32> to vector<2x8x8xf32>
    %274 = tpu.concatenate %267, %269, %271, %273 in 0 : vector<2x8x8xf32>, vector<2x8x8xf32>, vector<2x8x8xf32>, vector<2x8x8xf32> -> vector<8x8x8xf32>
    %275 = vector.extract_strided_slice %256 {offsets = [0, 0], sizes = [16, 8], strides = [1, 1]} : vector<16x32xf32> to vector<16x8xf32>
    %276 = vector.shape_cast %275 : vector<16x8xf32> to vector<2x8x8xf32>
    %277 = vector.extract_strided_slice %256 {offsets = [0, 8], sizes = [16, 8], strides = [1, 1]} : vector<16x32xf32> to vector<16x8xf32>
    %278 = vector.shape_cast %277 : vector<16x8xf32> to vector<2x8x8xf32>
    %279 = vector.extract_strided_slice %256 {offsets = [0, 16], sizes = [16, 8], strides = [1, 1]} : vector<16x32xf32> to vector<16x8xf32>
    %280 = vector.shape_cast %279 : vector<16x8xf32> to vector<2x8x8xf32>
    %281 = vector.extract_strided_slice %256 {offsets = [0, 24], sizes = [16, 8], strides = [1, 1]} : vector<16x32xf32> to vector<16x8xf32>
    %282 = vector.shape_cast %281 : vector<16x8xf32> to vector<2x8x8xf32>
    %283 = tpu.concatenate %276, %278, %280, %282 in 0 : vector<2x8x8xf32>, vector<2x8x8xf32>, vector<2x8x8xf32>, vector<2x8x8xf32> -> vector<8x8x8xf32>
    "tpu.trace_start"() <{level = 10 : i32, message = "nqd,nkd->nqk"}> : () -> ()
    %cst_78 = arith.constant dense<0.000000e+00> : vector<8x16x8xf32>
    %284 = tpu.matmul %265, %274, %cst_78 {dimension_numbers = #tpu.dot_dimension_numbers<[2], [2], [1], [1], [0, 0, 0, 1, 1, 1], [0], [0]>} : vector<8x16x8xf32>, vector<8x8x8xf32>, vector<8x16x8xf32> -> vector<8x16x8xf32>
    "tpu.trace_stop"() : () -> ()
    %cst_79 = arith.constant 0.353553385 : f32
    %285 = vector.broadcast %cst_79 : f32 to vector<8x16x8xf32>
    %286 = arith.mulf %284, %285 : vector<8x16x8xf32>
    %287 = vector.broadcast %17 : vector<8x1x8xf32> to vector<8x16x8xf32>
    %288 = arith.addf %286, %287 : vector<8x16x8xf32>
    %cst_80 = arith.constant dense<0xFF800000> : vector<8x16xf32>
    %289 = vector.multi_reduction <maximumf>, %288, %cst_80 [2] : vector<8x16x8xf32> to vector<8x16xf32>
    %290 = vector.shape_cast %289 : vector<8x16xf32> to vector<8x16x1xf32>
    %291 = vector.broadcast %290 : vector<8x16x1xf32> to vector<8x16x8xf32>
    %292 = arith.subf %288, %291 : vector<8x16x8xf32>
    %293 = math.exp %292 : vector<8x16x8xf32>
    %cst_81 = arith.constant dense<0.000000e+00> : vector<8x16xf32>
    %294 = vector.multi_reduction <add>, %293, %cst_81 [2] : vector<8x16x8xf32> to vector<8x16xf32>
    %295 = vector.shape_cast %294 : vector<8x16xf32> to vector<8x16x1xf32>
    %296 = tpu.reciprocal %295 {approx = true} : vector<8x16x1xf32> -> vector<8x16x1xf32>
    %297 = vector.broadcast %296 : vector<8x16x1xf32> to vector<8x16x8xf32>
    %298 = arith.mulf %293, %297 : vector<8x16x8xf32>
    "tpu.trace_start"() <{level = 10 : i32, message = "nqk,nkd->nqd"}> : () -> ()
    %cst_82 = arith.constant dense<0.000000e+00> : vector<8x16x8xf32>
    %299 = tpu.matmul %298, %283, %cst_82 {dimension_numbers = #tpu.dot_dimension_numbers<[2], [1], [1], [2], [0, 0, 0, 1, 1, 2], [0], [0]>} : vector<8x16x8xf32>, vector<8x8x8xf32>, vector<8x16x8xf32> -> vector<8x16x8xf32>
    "tpu.trace_stop"() : () -> ()
    %300 = vector.extract_strided_slice %299 {offsets = [0, 0, 0], sizes = [2, 16, 8], strides = [1, 1, 1]} : vector<8x16x8xf32> to vector<2x16x8xf32>
    %301 = vector.shape_cast %300 : vector<2x16x8xf32> to vector<32x8xf32>
    %302 = vector.extract_strided_slice %299 {offsets = [2, 0, 0], sizes = [2, 16, 8], strides = [1, 1, 1]} : vector<8x16x8xf32> to vector<2x16x8xf32>
    %303 = vector.shape_cast %302 : vector<2x16x8xf32> to vector<32x8xf32>
    %304 = vector.extract_strided_slice %299 {offsets = [4, 0, 0], sizes = [2, 16, 8], strides = [1, 1, 1]} : vector<8x16x8xf32> to vector<2x16x8xf32>
    %305 = vector.shape_cast %304 : vector<2x16x8xf32> to vector<32x8xf32>
    %306 = vector.extract_strided_slice %299 {offsets = [6, 0, 0], sizes = [2, 16, 8], strides = [1, 1, 1]} : vector<8x16x8xf32> to vector<2x16x8xf32>
    %307 = vector.shape_cast %306 : vector<2x16x8xf32> to vector<32x8xf32>
    %308 = tpu.concatenate %301, %303, %305, %307 in 1 : vector<32x8xf32>, vector<32x8xf32>, vector<32x8xf32>, vector<32x8xf32> -> vector<32x32xf32>
    %309 = arith.truncf %308 : vector<32x32xf32> to vector<32x32xbf16>
    %cst_83 = arith.constant dense<0.000000e+00> : vector<32x32xf32>
    %310 = tpu.matmul %309, %245, %cst_83 {dimension_numbers = #tpu.dot_dimension_numbers<[1], [0], [0], [1], [0, 0, 1, 1], [], []>} : vector<32x32xbf16>, vector<32x32xbf16>, vector<32x32xf32> -> vector<32x32xf32>
    %311 = vector.broadcast %246 : vector<1x32xf32> to vector<32x32xf32>
    %312 = arith.addf %310, %311 : vector<32x32xf32>
    %313 = arith.addf %240, %312 : vector<32x32xf32>
    %c0_84 = arith.constant 0 : index
    %c768 = arith.constant 768 : index
    %314 = vector.load %arg6[%c0_84, %c768] : memref<1x1112xf32, #tpu.memory_space<vmem>>, vector<1x32xf32>
    %c0_85 = arith.constant 0 : index
    %c800 = arith.constant 800 : index
    %315 = vector.load %arg6[%c0_85, %c800] : memref<1x1112xf32, #tpu.memory_space<vmem>>, vector<1x32xf32>
    %cst_86 = arith.constant dense<0.000000e+00> : vector<32xf32>
    %316 = vector.multi_reduction <add>, %313, %cst_86 [1] : vector<32x32xf32> to vector<32xf32>
    %317 = vector.shape_cast %316 : vector<32xf32> to vector<32x1xf32>
    %cst_87 = arith.constant 3.200000e+01 : f32
    %318 = vector.broadcast %cst_87 : f32 to vector<32x1xf32>
    %319 = arith.divf %317, %318 : vector<32x1xf32>
    %320 = vector.broadcast %319 : vector<32x1xf32> to vector<32x32xf32>
    %321 = arith.subf %313, %320 : vector<32x32xf32>
    %322 = arith.mulf %321, %321 : vector<32x32xf32>
    %cst_88 = arith.constant dense<0.000000e+00> : vector<32xf32>
    %323 = vector.multi_reduction <add>, %322, %cst_88 [1] : vector<32x32xf32> to vector<32xf32>
    %324 = vector.shape_cast %323 : vector<32xf32> to vector<32x1xf32>
    %cst_89 = arith.constant 3.200000e+01 : f32
    %325 = vector.broadcast %cst_89 : f32 to vector<32x1xf32>
    %326 = arith.divf %324, %325 : vector<32x1xf32>
    %cst_90 = arith.constant 9.99999997E-7 : f32
    %327 = vector.broadcast %cst_90 : f32 to vector<32x1xf32>
    %328 = arith.addf %326, %327 : vector<32x1xf32>
    %329 = math.rsqrt %328 : vector<32x1xf32>
    %330 = vector.broadcast %329 : vector<32x1xf32> to vector<32x32xf32>
    %331 = arith.mulf %321, %330 : vector<32x32xf32>
    %332 = vector.broadcast %314 : vector<1x32xf32> to vector<32x32xf32>
    %333 = arith.mulf %332, %331 : vector<32x32xf32>
    %334 = vector.broadcast %315 : vector<1x32xf32> to vector<32x32xf32>
    %335 = arith.addf %333, %334 : vector<32x32xf32>
    %c0_91 = arith.constant 0 : index
    %c448_92 = arith.constant 448 : index
    %336 = vector.load %arg4[%c0_91, %c448_92] : memref<32x600xbf16, #tpu.memory_space<vmem>>, vector<32x64xbf16>
    %c0_93 = arith.constant 0 : index
    %c608 = arith.constant 608 : index
    %337 = vector.load %arg6[%c0_93, %c608] : memref<1x1112xf32, #tpu.memory_space<vmem>>, vector<1x64xf32>
    %c0_94 = arith.constant 0 : index
    %c32 = arith.constant 32 : index
    %338 = vector.load %arg5[%c0_94, %c32] : memref<64x64xbf16, #tpu.memory_space<vmem>>, vector<64x32xbf16>
    %c0_95 = arith.constant 0 : index
    %c672 = arith.constant 672 : index
    %339 = vector.load %arg6[%c0_95, %c672] : memref<1x1112xf32, #tpu.memory_space<vmem>>, vector<1x32xf32>
    %340 = arith.truncf %335 : vector<32x32xf32> to vector<32x32xbf16>
    %cst_96 = arith.constant dense<0.000000e+00> : vector<32x64xf32>
    %341 = tpu.matmul %340, %336, %cst_96 {dimension_numbers = #tpu.dot_dimension_numbers<[1], [0], [0], [1], [0, 0, 1, 1], [], []>} : vector<32x32xbf16>, vector<32x64xbf16>, vector<32x64xf32> -> vector<32x64xf32>
    %342 = vector.broadcast %337 : vector<1x64xf32> to vector<32x64xf32>
    %343 = arith.addf %341, %342 : vector<32x64xf32>
    %cst_97 = arith.constant 0.000000e+00 : f32
    %344 = vector.broadcast %cst_97 : f32 to vector<32x64xf32>
    %345 = arith.maximumf %343, %344 : vector<32x64xf32>
    %346 = arith.truncf %345 : vector<32x64xf32> to vector<32x64xbf16>
    %cst_98 = arith.constant dense<0.000000e+00> : vector<32x32xf32>
    %347 = tpu.matmul %346, %338, %cst_98 {dimension_numbers = #tpu.dot_dimension_numbers<[1], [0], [0], [1], [0, 0, 1, 1], [], []>} : vector<32x64xbf16>, vector<64x32xbf16>, vector<32x32xf32> -> vector<32x32xf32>
    %348 = vector.broadcast %339 : vector<1x32xf32> to vector<32x32xf32>
    %349 = arith.addf %347, %348 : vector<32x32xf32>
    %350 = arith.addf %335, %349 : vector<32x32xf32>
    %c0_99 = arith.constant 0 : index
    %c832 = arith.constant 832 : index
    %351 = vector.load %arg6[%c0_99, %c832] : memref<1x1112xf32, #tpu.memory_space<vmem>>, vector<1x32xf32>
    %c0_100 = arith.constant 0 : index
    %c864 = arith.constant 864 : index
    %352 = vector.load %arg6[%c0_100, %c864] : memref<1x1112xf32, #tpu.memory_space<vmem>>, vector<1x32xf32>
    %cst_101 = arith.constant dense<0.000000e+00> : vector<32xf32>
    %353 = vector.multi_reduction <add>, %350, %cst_101 [1] : vector<32x32xf32> to vector<32xf32>
    %354 = vector.shape_cast %353 : vector<32xf32> to vector<32x1xf32>
    %cst_102 = arith.constant 3.200000e+01 : f32
    %355 = vector.broadcast %cst_102 : f32 to vector<32x1xf32>
    %356 = arith.divf %354, %355 : vector<32x1xf32>
    %357 = vector.broadcast %356 : vector<32x1xf32> to vector<32x32xf32>
    %358 = arith.subf %350, %357 : vector<32x32xf32>
    %359 = arith.mulf %358, %358 : vector<32x32xf32>
    %cst_103 = arith.constant dense<0.000000e+00> : vector<32xf32>
    %360 = vector.multi_reduction <add>, %359, %cst_103 [1] : vector<32x32xf32> to vector<32xf32>
    %361 = vector.shape_cast %360 : vector<32xf32> to vector<32x1xf32>
    %cst_104 = arith.constant 3.200000e+01 : f32
    %362 = vector.broadcast %cst_104 : f32 to vector<32x1xf32>
    %363 = arith.divf %361, %362 : vector<32x1xf32>
    %cst_105 = arith.constant 9.99999997E-7 : f32
    %364 = vector.broadcast %cst_105 : f32 to vector<32x1xf32>
    %365 = arith.addf %363, %364 : vector<32x1xf32>
    %366 = math.rsqrt %365 : vector<32x1xf32>
    %367 = vector.broadcast %366 : vector<32x1xf32> to vector<32x32xf32>
    %368 = arith.mulf %358, %367 : vector<32x32xf32>
    %369 = vector.broadcast %351 : vector<1x32xf32> to vector<32x32xf32>
    %370 = arith.mulf %369, %368 : vector<32x32xf32>
    %371 = vector.broadcast %352 : vector<1x32xf32> to vector<32x32xf32>
    %372 = arith.addf %370, %371 : vector<32x32xf32>
    %373 = arith.addf %22, %150 : vector<16x32xf32>
    %374 = arith.addf %23, %372 : vector<32x32xf32>
    %c0_106 = arith.constant 0 : index
    %c512_107 = arith.constant 512 : index
    %375 = vector.load %arg4[%c0_106, %c512_107] : memref<32x600xbf16, #tpu.memory_space<vmem>>, vector<32x32xbf16>
    %c0_108 = arith.constant 0 : index
    %c896 = arith.constant 896 : index
    %376 = vector.load %arg6[%c0_108, %c896] : memref<1x1112xf32, #tpu.memory_space<vmem>>, vector<1x32xf32>
    %c0_109 = arith.constant 0 : index
    %c544 = arith.constant 544 : index
    %377 = vector.load %arg4[%c0_109, %c544] : memref<32x600xbf16, #tpu.memory_space<vmem>>, vector<32x8xbf16>
    %c0_110 = arith.constant 0 : index
    %c928 = arith.constant 928 : index
    %378 = vector.load %arg6[%c0_110, %c928] : memref<1x1112xf32, #tpu.memory_space<vmem>>, vector<1x8xf32>
    %379 = arith.truncf %373 : vector<16x32xf32> to vector<16x32xbf16>
    %cst_111 = arith.constant dense<0.000000e+00> : vector<16x32xf32>
    %380 = tpu.matmul %379, %375, %cst_111 {dimension_numbers = #tpu.dot_dimension_numbers<[1], [0], [0], [1], [0, 0, 1, 1], [], []>} : vector<16x32xbf16>, vector<32x32xbf16>, vector<16x32xf32> -> vector<16x32xf32>
    %381 = vector.broadcast %376 : vector<1x32xf32> to vector<16x32xf32>
    %382 = arith.addf %380, %381 : vector<16x32xf32>
    %cst_112 = arith.constant 0.000000e+00 : f32
    %383 = vector.broadcast %cst_112 : f32 to vector<16x32xf32>
    %384 = arith.maximumf %382, %383 : vector<16x32xf32>
    %385 = arith.truncf %384 : vector<16x32xf32> to vector<16x32xbf16>
    %cst_113 = arith.constant dense<0.000000e+00> : vector<16x8xf32>
    %386 = tpu.matmul %385, %377, %cst_113 {dimension_numbers = #tpu.dot_dimension_numbers<[1], [0], [0], [1], [0, 0, 1, 1], [], []>} : vector<16x32xbf16>, vector<32x8xbf16>, vector<16x8xf32> -> vector<16x8xf32>
    %387 = vector.broadcast %378 : vector<1x8xf32> to vector<16x8xf32>
    %388 = arith.addf %386, %387 : vector<16x8xf32>
    %389 = vector.shape_cast %388 : vector<16x8xf32> to vector<2x8x8xf32>
    %390 = tpu.transpose %389, [0, 2, 1] : vector<2x8x8xf32> -> vector<2x8x8xf32>
    %391 = vector.broadcast %12 : vector<2x1x8xf32> to vector<2x8x8xf32>
    %392 = arith.addf %390, %391 : vector<2x8x8xf32>
    %cst_114 = arith.constant dense<0xFF800000> : vector<2x8xf32>
    %393 = vector.multi_reduction <maximumf>, %392, %cst_114 [2] : vector<2x8x8xf32> to vector<2x8xf32>
    %394 = vector.shape_cast %393 : vector<2x8xf32> to vector<2x8x1xf32>
    %395 = vector.broadcast %394 : vector<2x8x1xf32> to vector<2x8x8xf32>
    %396 = arith.subf %392, %395 : vector<2x8x8xf32>
    %397 = math.exp %396 : vector<2x8x8xf32>
    %cst_115 = arith.constant dense<0.000000e+00> : vector<2x8xf32>
    %398 = vector.multi_reduction <add>, %397, %cst_115 [2] : vector<2x8x8xf32> to vector<2x8xf32>
    %399 = vector.shape_cast %398 : vector<2x8xf32> to vector<2x8x1xf32>
    %400 = tpu.reciprocal %399 {approx = true} : vector<2x8x1xf32> -> vector<2x8x1xf32>
    %401 = vector.broadcast %400 : vector<2x8x1xf32> to vector<2x8x8xf32>
    %402 = arith.mulf %397, %401 : vector<2x8x8xf32>
    %403 = vector.shape_cast %373 : vector<16x32xf32> to vector<2x8x32xf32>
    "tpu.trace_start"() <{level = 10 : i32, message = "bgs,bsh->bgh"}> : () -> ()
    %cst_116 = arith.constant dense<0.000000e+00> : vector<2x8x32xf32>
    %404 = tpu.matmul %402, %403, %cst_116 {dimension_numbers = #tpu.dot_dimension_numbers<[2], [1], [1], [2], [0, 0, 0, 1, 1, 2], [0], [0]>} : vector<2x8x8xf32>, vector<2x8x32xf32>, vector<2x8x32xf32> -> vector<2x8x32xf32>
    "tpu.trace_stop"() : () -> ()
    %405 = vector.shape_cast %404 : vector<2x8x32xf32> to vector<16x32xf32>
    %c0_117 = arith.constant 0 : index
    %c552 = arith.constant 552 : index
    %406 = vector.load %arg4[%c0_117, %c552] : memref<32x600xbf16, #tpu.memory_space<vmem>>, vector<32x32xbf16>
    %c0_118 = arith.constant 0 : index
    %c936 = arith.constant 936 : index
    %407 = vector.load %arg6[%c0_118, %c936] : memref<1x1112xf32, #tpu.memory_space<vmem>>, vector<1x32xf32>
    %c0_119 = arith.constant 0 : index
    %c584 = arith.constant 584 : index
    %408 = vector.load %arg4[%c0_119, %c584] : memref<32x600xbf16, #tpu.memory_space<vmem>>, vector<32x16xbf16>
    %c0_120 = arith.constant 0 : index
    %c968 = arith.constant 968 : index
    %409 = vector.load %arg6[%c0_120, %c968] : memref<1x1112xf32, #tpu.memory_space<vmem>>, vector<1x16xf32>
    %410 = arith.truncf %374 : vector<32x32xf32> to vector<32x32xbf16>
    %cst_121 = arith.constant dense<0.000000e+00> : vector<32x32xf32>
    %411 = tpu.matmul %410, %406, %cst_121 {dimension_numbers = #tpu.dot_dimension_numbers<[1], [0], [0], [1], [0, 0, 1, 1], [], []>} : vector<32x32xbf16>, vector<32x32xbf16>, vector<32x32xf32> -> vector<32x32xf32>
    %412 = vector.broadcast %407 : vector<1x32xf32> to vector<32x32xf32>
    %413 = arith.addf %411, %412 : vector<32x32xf32>
    %cst_122 = arith.constant 0.000000e+00 : f32
    %414 = vector.broadcast %cst_122 : f32 to vector<32x32xf32>
    %415 = arith.maximumf %413, %414 : vector<32x32xf32>
    %416 = arith.truncf %415 : vector<32x32xf32> to vector<32x32xbf16>
    %cst_123 = arith.constant dense<0.000000e+00> : vector<32x16xf32>
    %417 = tpu.matmul %416, %408, %cst_123 {dimension_numbers = #tpu.dot_dimension_numbers<[1], [0], [0], [1], [0, 0, 1, 1], [], []>} : vector<32x32xbf16>, vector<32x16xbf16>, vector<32x16xf32> -> vector<32x16xf32>
    %418 = vector.broadcast %409 : vector<1x16xf32> to vector<32x16xf32>
    %419 = arith.addf %417, %418 : vector<32x16xf32>
    %420 = vector.shape_cast %419 : vector<32x16xf32> to vector<2x16x16xf32>
    %421 = tpu.transpose %420, [0, 2, 1] : vector<2x16x16xf32> -> vector<2x16x16xf32>
    %422 = vector.broadcast %13 : vector<2x1x16xf32> to vector<2x16x16xf32>
    %423 = arith.addf %421, %422 : vector<2x16x16xf32>
    %cst_124 = arith.constant dense<0xFF800000> : vector<2x16xf32>
    %424 = vector.multi_reduction <maximumf>, %423, %cst_124 [2] : vector<2x16x16xf32> to vector<2x16xf32>
    %425 = vector.shape_cast %424 : vector<2x16xf32> to vector<2x16x1xf32>
    %426 = vector.broadcast %425 : vector<2x16x1xf32> to vector<2x16x16xf32>
    %427 = arith.subf %423, %426 : vector<2x16x16xf32>
    %428 = math.exp %427 : vector<2x16x16xf32>
    %cst_125 = arith.constant dense<0.000000e+00> : vector<2x16xf32>
    %429 = vector.multi_reduction <add>, %428, %cst_125 [2] : vector<2x16x16xf32> to vector<2x16xf32>
    %430 = vector.shape_cast %429 : vector<2x16xf32> to vector<2x16x1xf32>
    %431 = tpu.reciprocal %430 {approx = true} : vector<2x16x1xf32> -> vector<2x16x1xf32>
    %432 = vector.broadcast %431 : vector<2x16x1xf32> to vector<2x16x16xf32>
    %433 = arith.mulf %428, %432 : vector<2x16x16xf32>
    %434 = vector.shape_cast %374 : vector<32x32xf32> to vector<2x16x32xf32>
    "tpu.trace_start"() <{level = 10 : i32, message = "bgs,bsh->bgh"}> : () -> ()
    %cst_126 = arith.constant dense<0.000000e+00> : vector<2x16x32xf32>
    %435 = tpu.matmul %433, %434, %cst_126 {dimension_numbers = #tpu.dot_dimension_numbers<[2], [1], [1], [2], [0, 0, 0, 1, 1, 2], [0], [0]>} : vector<2x16x16xf32>, vector<2x16x32xf32>, vector<2x16x32xf32> -> vector<2x16x32xf32>
    "tpu.trace_stop"() : () -> ()
    %436 = vector.shape_cast %435 : vector<2x16x32xf32> to vector<32x32xf32>
    %437 = arith.addf %373, %405 : vector<16x32xf32>
    %c0_127 = arith.constant 0 : index
    %c984 = arith.constant 984 : index
    %438 = vector.load %arg6[%c0_127, %c984] : memref<1x1112xf32, #tpu.memory_space<vmem>>, vector<1x32xf32>
    %c0_128 = arith.constant 0 : index
    %c1016 = arith.constant 1016 : index
    %439 = vector.load %arg6[%c0_128, %c1016] : memref<1x1112xf32, #tpu.memory_space<vmem>>, vector<1x32xf32>
    %cst_129 = arith.constant dense<0.000000e+00> : vector<16xf32>
    %440 = vector.multi_reduction <add>, %437, %cst_129 [1] : vector<16x32xf32> to vector<16xf32>
    %441 = vector.shape_cast %440 : vector<16xf32> to vector<16x1xf32>
    %cst_130 = arith.constant 3.200000e+01 : f32
    %442 = vector.broadcast %cst_130 : f32 to vector<16x1xf32>
    %443 = arith.divf %441, %442 : vector<16x1xf32>
    %444 = vector.broadcast %443 : vector<16x1xf32> to vector<16x32xf32>
    %445 = arith.subf %437, %444 : vector<16x32xf32>
    %446 = arith.mulf %445, %445 : vector<16x32xf32>
    %cst_131 = arith.constant dense<0.000000e+00> : vector<16xf32>
    %447 = vector.multi_reduction <add>, %446, %cst_131 [1] : vector<16x32xf32> to vector<16xf32>
    %448 = vector.shape_cast %447 : vector<16xf32> to vector<16x1xf32>
    %cst_132 = arith.constant 3.200000e+01 : f32
    %449 = vector.broadcast %cst_132 : f32 to vector<16x1xf32>
    %450 = arith.divf %448, %449 : vector<16x1xf32>
    %cst_133 = arith.constant 9.99999997E-7 : f32
    %451 = vector.broadcast %cst_133 : f32 to vector<16x1xf32>
    %452 = arith.addf %450, %451 : vector<16x1xf32>
    %453 = math.rsqrt %452 : vector<16x1xf32>
    %454 = vector.broadcast %453 : vector<16x1xf32> to vector<16x32xf32>
    %455 = arith.mulf %445, %454 : vector<16x32xf32>
    %456 = vector.broadcast %438 : vector<1x32xf32> to vector<16x32xf32>
    %457 = arith.mulf %456, %455 : vector<16x32xf32>
    %458 = vector.broadcast %439 : vector<1x32xf32> to vector<16x32xf32>
    %459 = arith.addf %457, %458 : vector<16x32xf32>
    %c0_134 = arith.constant 0 : index
    %c0_135 = arith.constant 0 : index
    %460 = vector.load %arg7[%c0_134, %c0_135] : memref<16x32xf32, #tpu.memory_space<vmem>>, vector<16x32xf32>
    tpu.vector_store %arg7[%c0_134, %c0_135], %459 {strides = array<i32>} : memref<16x32xf32, #tpu.memory_space<vmem>>, vector<16x32xf32>,
    %461 = arith.addf %374, %436 : vector<32x32xf32>
    %c0_136 = arith.constant 0 : index
    %c1048 = arith.constant 1048 : index
    %462 = vector.load %arg6[%c0_136, %c1048] : memref<1x1112xf32, #tpu.memory_space<vmem>>, vector<1x32xf32>
    %c0_137 = arith.constant 0 : index
    %c1080 = arith.constant 1080 : index
    %463 = vector.load %arg6[%c0_137, %c1080] : memref<1x1112xf32, #tpu.memory_space<vmem>>, vector<1x32xf32>
    %cst_138 = arith.constant dense<0.000000e+00> : vector<32xf32>
    %464 = vector.multi_reduction <add>, %461, %cst_138 [1] : vector<32x32xf32> to vector<32xf32>
    %465 = vector.shape_cast %464 : vector<32xf32> to vector<32x1xf32>
    %cst_139 = arith.constant 3.200000e+01 : f32
    %466 = vector.broadcast %cst_139 : f32 to vector<32x1xf32>
    %467 = arith.divf %465, %466 : vector<32x1xf32>
    %468 = vector.broadcast %467 : vector<32x1xf32> to vector<32x32xf32>
    %469 = arith.subf %461, %468 : vector<32x32xf32>
    %470 = arith.mulf %469, %469 : vector<32x32xf32>
    %cst_140 = arith.constant dense<0.000000e+00> : vector<32xf32>
    %471 = vector.multi_reduction <add>, %470, %cst_140 [1] : vector<32x32xf32> to vector<32xf32>
    %472 = vector.shape_cast %471 : vector<32xf32> to vector<32x1xf32>
    %cst_141 = arith.constant 3.200000e+01 : f32
    %473 = vector.broadcast %cst_141 : f32 to vector<32x1xf32>
    %474 = arith.divf %472, %473 : vector<32x1xf32>
    %cst_142 = arith.constant 9.99999997E-7 : f32
    %475 = vector.broadcast %cst_142 : f32 to vector<32x1xf32>
    %476 = arith.addf %474, %475 : vector<32x1xf32>
    %477 = math.rsqrt %476 : vector<32x1xf32>
    %478 = vector.broadcast %477 : vector<32x1xf32> to vector<32x32xf32>
    %479 = arith.mulf %469, %478 : vector<32x32xf32>
    %480 = vector.broadcast %462 : vector<1x32xf32> to vector<32x32xf32>
    %481 = arith.mulf %480, %479 : vector<32x32xf32>
    %482 = vector.broadcast %463 : vector<1x32xf32> to vector<32x32xf32>
    %483 = arith.addf %481, %482 : vector<32x32xf32>
    %c0_143 = arith.constant 0 : index
    %c0_144 = arith.constant 0 : index
    %484 = vector.load %arg8[%c0_143, %c0_144] : memref<32x32xf32, #tpu.memory_space<vmem>>, vector<32x32xf32>
    tpu.vector_store %arg8[%c0_143, %c0_144], %483 {strides = array<i32>} : memref<32x32xf32, #tpu.memory_space<vmem>>, vector<32x32xf32>,
    return
  }
}

</mosaic_0001>

<bundles_post_ra>
// kernel: tpu_custom_call.1
= control target key start
LH: loop header
LB: loop body
LE: loop exit
PB: predicated region body
PF: predicated region fallthrough
CT: control target
= control target key end

     0   :  { %14 = vsyncpa [#allocation3], 0  ;;  %s10166_s0 = inlined_call_operand.hbm [shape: f32[16,32], index: 0, kind: input, shape index: {}]   ;;  %s10167_s1 = inlined_call_operand.hbm [shape: f32[32,32], index: 1, kind: input, shape index: {}]   ;;  %s10168_s2 = inlined_call_operand.hbm [shape: s32[2,8], index: 2, kind: input, shape index: {}]   ;;  %s10169_s3 = inlined_call_operand.hbm [shape: s32[2,16], index: 3, kind: input, shape index: {}]   ;;  %s10170_s4 = inlined_call_operand.hbm [shape: bf16[32,600], index: 4, kind: input, shape index: {}]   ;;  %s10171_s5 = inlined_call_operand.hbm [shape: bf16[64,64], index: 5, kind: input, shape index: {}]   ;;  %s10172_s6 = inlined_call_operand.vmem [shape: f32[1,1112], index: 6, kind: input, shape index: {}]   ;;  %s10173_s7 = inlined_call_operand.hbm [shape: f32[16,32], index: 7, kind: output, shape index: {0}]   ;;  %s10174_s8 = inlined_call_operand.hbm [shape: f32[32,32], index: 8, kind: output, shape index: {1}]  }
   0x1   :  { %15 = vsyncpa [#allocation6], 0 }
   0x2   :  { %16 = vsyncpa [#allocation9], 0 }
   0x3   :  { %17 = vsyncpa [#allocation12], 0 }
   0x4   :  { %18 = vsyncpa [#allocation4], 0 }
   0x5   :  { %19 = vsyncpa [#allocation15], 0  ;;  %s8631_s27 = smov [#allocation5]   ;;  %s8632_s29 = smov [#allocation8]  }
   0x6   :  { %s37_s28 = sshll.u32 %s8631_s27, 4  ;;  %s60_s30 = sshll.u32 %s8632_s29, 4  ;;  %s38_s28 = int_to_ptr.vmem [resolvable:$true] %s37_s28  ;;  %s61_s30 = int_to_ptr.vmem [resolvable:$true] %s60_s30 }
   0x7   :  { %s8467_s9 = scalar_lea.vmem %s38_s28, 512  ;;  %p8472_p1 = scmp.lt.s32.totalorder %s38_s28, %s38_s28 }
   0x8   :  { %p8468_p0 = scmp.ne.s32.totalorder %s38_s28, %s8467_s9  ;;  %p8473_p2 = scmp.lt.s32.totalorder %s8467_s9, %s8467_s9 }
   0xa   :  { %p8474_p3 = por %p8473_p2, %p8472_p1 }
   0xc   :  { %p8475_p4 = pnand %p8474_p3, %p8468_p0 }
   0xe   :  { %8478 = shalt.err (!%p8475_p4)
}
   0xf   :  { %s8633_s10 = smov 128   ;;  %s8634_s11 = smov 8  }
  0x10   :  { %43 = dma.hbm_to_vmem [thread:$0]  %s10167_s1, 512, %s38_s28, [#allocation6], %s8633_s10, %s8633_s10, %s8634_s11  }
  0x11   :  { %s8487_s14 = scalar_lea.vmem %s61_s30, 32  ;;  %p8492_p6 = scmp.lt.s32.totalorder %s61_s30, %s61_s30 }
  0x12   :  { %p8488_p5 = scmp.ne.s32.totalorder %s61_s30, %s8487_s14  ;;  %p8493_p7 = scmp.lt.s32.totalorder %s8487_s14, %s8487_s14 }
  0x14   :  { %p8494_p8 = por %p8493_p7, %p8492_p6 }
  0x16   :  { %p8495_p9 = pnand %p8494_p8, %p8488_p5 }
  0x18   :  { %8498 = shalt.err (!%p8495_p9)
}
  0x19   :  { %63 = dma.hbm_to_vmem [thread:$0]  %s10169_s3, 32, %s61_s30, [#allocation9]  }
  0x1a   :  { %s8635_s17 = smov [#allocation2]   ;;  %s8636_s19 = smov [#allocation7]  }
  0x1b   :  { %s25_s18 = sshll.u32 %s8635_s17, 4  ;;  %s50_s20 = sshll.u32 %s8636_s19, 4  ;;  %s26_s18 = int_to_ptr.vmem [resolvable:$true] %s25_s18  ;;  %s51_s20 = int_to_ptr.vmem [resolvable:$true] %s50_s20 }
  0x1c   :  { %s8507_s21 = scalar_lea.vmem %s26_s18, 256  ;;  %p8512_p11 = scmp.lt.s32.totalorder %s26_s18, %s26_s18 }
  0x1d   :  { %p8508_p10 = scmp.ne.s32.totalorder %s26_s18, %s8507_s21  ;;  %p8513_p12 = scmp.lt.s32.totalorder %s8507_s21, %s8507_s21 }
  0x1f   :  { %p8514_p13 = por %p8513_p12, %p8512_p11 }
  0x21   :  { %p8515_p0 = pnand %p8514_p13, %p8508_p10 }
  0x23   :  { %8518 = shalt.err (!%p8515_p0)
}
  0x24   :  { %31 = dma.hbm_to_vmem [thread:$0]  %s10166_s0, 256, %s26_s18, [#allocation3], %s8633_s10, %s8633_s10, %s8634_s11  }
  0x25   :  { %s8527_s3 = scalar_lea.vmem %s51_s20, 32  ;;  %p8532_p2 = scmp.lt.s32.totalorder %s51_s20, %s51_s20 }
  0x26   :  { %p8528_p1 = scmp.ne.s32.totalorder %s51_s20, %s8527_s3  ;;  %p8533_p3 = scmp.lt.s32.totalorder %s8527_s3, %s8527_s3 }
  0x28   :  { %p8534_p4 = por %p8533_p3, %p8532_p2 }
  0x2a   :  { %p8535_p5 = pnand %p8534_p4, %p8528_p1 }
  0x2c   :  { %8538 = shalt.err (!%p8535_p5)
}
  0x2d   :  { %53 = dma.hbm_to_vmem [thread:$0]  %s10168_s2, 32, %s51_s20, [#allocation6]  }
  0x2e   :  { %s8637_s25 = smov [#allocation10]  }
  0x2f   :  { %s69_s26 = sshll.u32 %s8637_s25, 4  ;;  %s70_s26 = int_to_ptr.vmem [resolvable:$true] %s69_s26 }
  0x30   :  { %s8547_s27 = scalar_lea.vmem %s70_s26, 1280  ;;  %p8552_p7 = scmp.lt.s32.totalorder %s70_s26, %s70_s26 }
  0x31   :  { %p8548_p6 = scmp.ne.s32.totalorder %s70_s26, %s8547_s27  ;;  %p8553_p8 = scmp.lt.s32.totalorder %s8547_s27, %s8547_s27 }
  0x33   :  { %p8554_p9 = por %p8553_p8, %p8552_p7 }
  0x35   :  { %p8555_p10 = pnand %p8554_p9, %p8548_p6 }
  0x37   :  { %8558 = shalt.err (!%p8555_p10)
}
  0x38   :  { %s8638_s0 = smov 320   ;;  %s8639_s28 = smov 20  }
  0x39   :  { %75 = dma.hbm_to_vmem [thread:$0]  %s10170_s4, 1280, %s70_s26, [#allocation9], %s8638_s0, %s8638_s0, %s8639_s28  }
  0x3a   :  { %s8640_s9 = smov [#allocation11]  }
  0x3b   :  { %s81_s12 = sshll.u32 %s8640_s9, 4  ;;  %s82_s12 = int_to_ptr.vmem [resolvable:$true] %s81_s12 }
  0x3c   :  { %s8567_s2 = scalar_lea.vmem %s82_s12, 512  ;;  %p8572_p12 = scmp.lt.s32.totalorder %s82_s12, %s82_s12 }
  0x3d   :  { %p8568_p11 = scmp.ne.s32.totalorder %s82_s12, %s8567_s2  ;;  %p8573_p13 = scmp.lt.s32.totalorder %s8567_s2, %s8567_s2 }
  0x3f   :  { %p8574_p0 = por %p8573_p13, %p8572_p12 }
  0x41   :  { %p8575_p1 = pnand %p8574_p0, %p8568_p11 }
  0x43   :  { %8578 = shalt.err (!%p8575_p1)
}
  0x44   :  { %s8641_s13 = smov 64   ;;  %s8642_s14 = smov 4  }
  0x45   :  { %87 = dma.hbm_to_vmem [thread:$0]  %s10171_s5, 512, %s82_s12, [#allocation12], %s8641_s13, %s8641_s13, %s8642_s14  }
  0x46   :  { %8619 = dma.done.wait [#allocation3], 256  }
  0x47   :  { %8620 = vsyncadd [#allocation3], 4294967040 }
  0x48   :  { %8621 = dma.done.wait [#allocation6], 544  }
  0x49   :  { %8622 = vsyncadd [#allocation6], 4294966752 }
  0x4a   :  { %8623 = dma.done.wait [#allocation9], 1312  }
  0x4b   :  { %8624 = vsyncadd [#allocation9], 4294965984 }
  0x4c   :  { %8625 = dma.done.wait [#allocation12], 512  }
  0x4d   :  { %8626 = vsyncadd [#allocation12], 4294966784  ;;  %v8643_v0 = vmov 0.0   ;;  %vm8644_vm0 = vmmov 0   ;;  %v8735_v1 = vld [vmem:[#allocation10 + $0x28] ss:$20 sps:$4 sm:$0xff]   ;;  %v119_v29 = vlaneseq }
  0x4e   :  { %7657 = vmatprep.subr.bf16.mxu0 %v8643_v0  ;;  %7661 = vmatprep.mubr.msk.bf16.mxu0 %vm8644_vm0, %v8643_v0  ;;  %v8738_v2 = vld [vmem:[#allocation10] ss:$20 sps:$4 sm:$0xff]   ;;  %v8740_v3 = vld [vmem:[#allocation2] sm:$0xff]  ;;  %vm191_vm1 = vcmask 261120   ;;  %s8645_s17 = smov 112   ;;  %s8646_s18 = smov 120  }
  0x4f   :  { %7665 = vmatprep.subr.mxu1 %v8643_v0  ;;  %7667 = vmatprep.mubr.msk.f32.mxu1 %vm8644_vm0, %v8643_v0  ;;  %v8742_v4 = vld [vmem:[#allocation2 + $0x8] sm:$0xff]  ;;  %v8758_v6 = vld [vmem:[%s10172_s6] ss:$0 sm:$0xff]  ;;  %s8647_s19 = smov 104   ;;  %s8648_s20 = smov 96   ;;  %vm252_vm2 = vcmask 64512  }
  0x50   :  { %7658 = vmatpush3.bf16.msra.mxu0 %v8735_v1  ;;  %v8747_v5 = vpack.c.bf16 %v8742_v4, %v8740_v3  ;;  %v8649_v27 = vmov 1966171168   ;;  %v109_v30 = vld [vmem:[#allocation7] sm:$0x3]  ;;  %v8854_v32 = vshrl.u32 %v119_v29, 7  ;;  %s8650_s21 = smov 32  }
  0x51   :  { %7659 = vmatprep.subr.bf16.mxu0 %v8643_v0  ;;  %v117_v28 = vunpack.c.l.s4 %v8649_v27  ;;  %vm110_vm3 = vcmp.ne.s32.totalorder %v109_v30, 0  ;;  %s8651_s1 = smov 16   ;;  %s8652_s22 = smov 24   ;;  %vm1607_vm4 = vcmask 130048   ;;  %vm1610_vm5 = vcmask 195584  }
  0x52   :  { %v111_v34 = vsel %vm110_vm3, -1e+09, %v8643_v0  ;;  %v8863_v37 = vsub.s32 0, %v8854_v32  ;;  %vm1826_vm6 = vcmask 523264   ;;  %s8653_s24 = smov 88   ;;  %vm7097_vm8 = vcmask 785408  }
  0x53   :  { %v118_v31 = vunpack.c.0.s8 %v117_v28 }
  0x54   :  { %7660 = vmatpush3.bf16.msra.mxu0 %v8738_v2 }
  0x55   :  { %7680 = vmatprep.subr.mxu0 %v8643_v0  ;;  %v8857_v33 = vsub.s32 %v118_v31, %v8854_v32 }
  0x57   :  { %7662 = vmatmul.mubr.msk.bf16.vlgmr.msra.gmra.mxu0 %vm191_vm1, %v8747_v5  ;;  %v122_v35 = vrot.slane %v111_v34, %v8857_v33 }
  0x58   :  { %7682 = vmatprep.mubr.msk.f32.mxu0 %vm8644_vm0, %v8643_v0 }
  0x59   :  { %v130_v36 = vrot.slane %v122_v35, %v8857_v33  ;;  %v123_v38 = vcombine.high %v122_v35, %v122_v35 }
  0x5b   :  { %v8866_v39 = vrot.slane %v130_v36, %v8863_v37  ;;  %v137_v40 = vrot.slane %v123_v38, %v8857_v33 }
  0x5d   :  { %v8871_v45 = vrot.slane %v137_v40, %v8863_v37 }
 0x117   :  { %v229_v7 = vpop.f32.mrf.mxu0 }
 0x118   :  { %v8761_v8 = vadd.f32 %v8758_v6, %v229_v7 }
 0x119   :  { %v7663_v9 = vpop.f32.mrf.mxu0 }
 0x11a   :  { %242 = vrot.lane.b32.xlu1 %v8761_v8, %s8645_s17  ;;  %238 = vrot.lane.b32.xlu0 %v8761_v8, %s8646_s18 }
 0x11b   :  { %v232_v10 = vpop.f32.mrf.mxu0 }
 0x11c   :  { %v8768_v11 = vadd.f32 %v8758_v6, %v232_v10 }
 0x11d   :  { %v7664_v12 = vpop.f32.mrf.mxu0 }
 0x11e   :  { %244 = vrot.lane.b32.xlu1 %v8768_v11, %s8645_s17  ;;  %240 = vrot.lane.b32.xlu0 %v8768_v11, %s8646_s18 }
 0x122   :  { %248 = vrot.lane.b32.xlu1 %v8768_v11, %s8647_s19  ;;  %246 = vrot.lane.b32.xlu0 %v8761_v8, %s8647_s19 }
 0x126   :  { %327 = vrot.lane.b32.xlu1 %v8768_v11, %s8648_s20  ;;  %250 = vrot.lane.b32.xlu0 %v8761_v8, %s8648_s20 }
 0x18c   :  { %v8782_v13 = vpop.permute.xlu1 %242  ;;  %v8784_v14 = vpop.permute.xlu0 %238 }
 0x18d   :  { %403 = vrot.lane.b32.xlu0 %v8784_v14, %s8648_s20 }
 0x190   :  { %v8788_v15 = vpop.permute.xlu1 %244  ;;  %v8790_v16 = vpop.permute.xlu0 %240 }
 0x191   :  { %555 = vrot.lane.b32.xlu0 %v8782_v13, %s8648_s20  ;;  %479 = vrot.lane.b32.xlu1 %v8790_v16, %s8648_s20 }
 0x194   :  { %v8796_v17 = vpop.permute.xlu0 %246  ;;  %v8802_v18 = vpop.permute.xlu1 %248 }
 0x195   :  { %631 = vrot.lane.b32.xlu1 %v8788_v15, %s8648_s20  ;;  %707 = vrot.lane.b32.xlu0 %v8796_v17, %s8648_s20 }
 0x198   :  { %v251_v19 = vpop.permute.xlu0 %250  ;;  %v328_v20 = vpop.permute.xlu1 %327 }
 0x199   :  { %783 = vrot.lane.b32.xlu1 %v8802_v18, %s8648_s20  ;;  %7666 = vmatpush3.xpose.msk.msra.mxu1 %vm252_vm2, %v251_v19 }
 0x19a   :  { %7670 = vmatprep.subr.mxu1 %v8643_v0 }
 0x19c   :  { %7668 = vmatmul.mubr.msk.f32.vlgmr.msra.gmra.mxu1 %vm252_vm2, %v8761_v8 }
 0x19d   :  { %7671 = vmatpush3.xpose.msk.msra.mxu1 %vm252_vm2, %v328_v20  ;;  %7672 = vmatprep.mubr.msk.f32.mxu1 %vm8644_vm0, %v8643_v0 }
 0x19e   :  { %7675 = vmatprep.subr.mxu1 %v8643_v0 }
 0x1a0   :  { %7673 = vmatmul.mubr.msk.f32.vlgmr.msra.gmra.mxu1 %vm252_vm2, %v8768_v11 }
 0x1a1   :  { %7677 = vmatprep.mubr.msk.f32.mxu1 %vm8644_vm0, %v8643_v0 }
 0x1ff   :  { %v404_v21 = vpop.permute.xlu0 %403 }
 0x200   :  { %7676 = vmatpush3.xpose.msk.msra.mxu1 %vm252_vm2, %v404_v21 }
 0x201   :  { %7685 = vmatprep.subr.mxu1 %v8643_v0 }
 0x203   :  { %v480_v22 = vpop.permute.xlu1 %479  ;;  %7678 = vmatmul.mubr.msk.f32.vlgmr.msra.gmra.mxu1 %vm252_vm2, %v8784_v14  ;;  %v556_v23 = vpop.permute.xlu0 %555 }
 0x204   :  { %7681 = vmatpush3.xpose.msk.msra.mxu0 %vm252_vm2, %v480_v22  ;;  %7686 = vmatpush3.xpose.msk.msra.mxu1 %vm252_vm2, %v556_v23 }
 0x205   :  { %7687 = vmatprep.mubr.msk.f32.mxu1 %vm8644_vm0, %v8643_v0  ;;  %7690 = vmatprep.subr.mxu0 %v8643_v0 }
 0x206   :  { %7695 = vmatprep.subr.mxu1 %v8643_v0 }
 0x207   :  { %7683 = vmatmul.mubr.msk.f32.vlgmr.msra.gmra.mxu0 %vm252_vm2, %v8790_v16  ;;  %v632_v24 = vpop.permute.xlu1 %631  ;;  %7688 = vmatmul.mubr.msk.f32.vlgmr.msra.gmra.mxu1 %vm252_vm2, %v8782_v13  ;;  %v708_v25 = vpop.permute.xlu0 %707 }
 0x208   :  { %7691 = vmatpush3.xpose.msk.msra.mxu0 %vm252_vm2, %v632_v24  ;;  %7696 = vmatpush3.xpose.msk.msra.mxu1 %vm252_vm2, %v708_v25 }
 0x209   :  { %7692 = vmatprep.mubr.msk.f32.mxu0 %vm8644_vm0, %v8643_v0  ;;  %7697 = vmatprep.mubr.msk.f32.mxu1 %vm8644_vm0, %v8643_v0 }
 0x20a   :  { %7700 = vmatprep.subr.mxu0 %v8643_v0  ;;  %7705 = vmatprep.subr.mxu1 %v8643_v0 }
 0x20b   :  { %7693 = vmatmul.mubr.msk.f32.vlgmr.msra.gmra.mxu0 %vm252_vm2, %v8788_v15  ;;  %v784_v26 = vpop.permute.xlu1 %783  ;;  %7698 = vmatmul.mubr.msk.f32.vlgmr.msra.gmra.mxu1 %vm252_vm2, %v8796_v17 }
 0x20c   :  { %7701 = vmatpush3.xpose.msk.msra.mxu0 %vm252_vm2, %v784_v26  ;;  %7702 = vmatprep.mubr.msk.f32.mxu0 %vm8644_vm0, %v8643_v0 }
 0x20d   :  { %7710 = vmatprep.subr.mxu0 %v8643_v0  ;;  %7707 = vmatprep.mubr.msk.f32.mxu1 %vm8644_vm0, %v8643_v0 }
 0x20f   :  { %7703 = vmatmul.mubr.msk.f32.vlgmr.msra.gmra.mxu0 %vm252_vm2, %v8802_v18 }
 0x210   :  { %7712 = vmatprep.mubr.msk.f32.mxu0 %vm8644_vm0, %v8643_v0 }
 0x25c   :  { %v323_v41 = vpop.f32.mrf.mxu1 }
 0x25d   :  { %v859_v42 = vmul.f32 0.35355338, %v323_v41 }
 0x25e   :  { %v7669_v43 = vpop.f32.mrf.mxu1 }
 0x25f   :  { %v877_v44 = vadd.f32 %v8866_v39, %v859_v42 }
 0x260   :  { %v399_v46 = vpop.f32.mrf.mxu1 }
 0x261   :  { %v860_v47 = vmul.f32 0.35355338, %v399_v46  ;;  %v885_v48 = vsel %vm252_vm2, %v877_v44, -inf }
 0x262   :  { %v7674_v49 = vpop.f32.mrf.mxu1  ;;  %886 = vmax.xlane.f32.xlu0 %v885_v48 }
 0x263   :  { %v878_v50 = vadd.f32 %v8871_v45, %v860_v47 }
 0x265   :  { %v888_v51 = vsel %vm252_vm2, %v878_v50, -inf }
 0x266   :  { %889 = vmax.xlane.f32.xlu1 %v888_v51 }
 0x2c3   :  { %v475_v52 = vpop.f32.mrf.mxu1 }
 0x2c4   :  { %v861_v53 = vmul.f32 0.35355338, %v475_v52 }
 0x2c5   :  { %v7679_v54 = vpop.f32.mrf.mxu1 }
 0x2c6   :  { %v879_v55 = vadd.f32 %v8866_v39, %v861_v53 }
 0x2c7   :  { %v551_v56 = vpop.f32.mrf.mxu0  ;;  %v627_v57 = vpop.f32.mrf.mxu1 }
 0x2c8   :  { %v862_v58 = vmul.f32 0.35355338, %v551_v56  ;;  %v863_v59 = vmul.f32 0.35355338, %v627_v57  ;;  %v891_v60 = vsel %vm252_vm2, %v879_v55, -inf }
 0x2c9   :  { %v7684_v61 = vpop.f32.mrf.mxu0  ;;  %v7689_v62 = vpop.f32.mrf.mxu1  ;;  %892 = vmax.xlane.f32.xlu0 %v891_v60 }
 0x2ca   :  { %v880_v63 = vadd.f32 %v8871_v45, %v862_v58  ;;  %v881_v7 = vadd.f32 %v8866_v39, %v863_v59 }
 0x2cb   :  { %v703_v9 = vpop.f32.mrf.mxu0  ;;  %v779_v10 = vpop.f32.mrf.mxu1 }
 0x2cc   :  { %v864_v12 = vmul.f32 0.35355338, %v703_v9  ;;  %v865_v19 = vmul.f32 0.35355338, %v779_v10  ;;  %v894_v20 = vsel %vm252_vm2, %v880_v63, -inf  ;;  %v897_v21 = vsel %vm252_vm2, %v881_v7, -inf }
 0x2cd   :  { %v7694_v22 = vpop.f32.mrf.mxu0  ;;  %v7699_v23 = vpop.f32.mrf.mxu1  ;;  %895 = vmax.xlane.f32.xlu0 %v894_v20  ;;  %898 = vmax.xlane.f32.xlu1 %v897_v21 }
 0x2ce   :  { %v882_v24 = vadd.f32 %v8871_v45, %v864_v12  ;;  %v883_v25 = vadd.f32 %v8866_v39, %v865_v19 }
 0x2cf   :  { %v855_v26 = vpop.f32.mrf.mxu0 }
 0x2d0   :  { %v866_v27 = vmul.f32 0.35355338, %v855_v26  ;;  %v900_v28 = vsel %vm252_vm2, %v882_v24, -inf  ;;  %v903_v29 = vsel %vm252_vm2, %v883_v25, -inf }
 0x2d1   :  { %v7704_v30 = vpop.f32.mrf.mxu0  ;;  %901 = vmax.xlane.f32.xlu0 %v900_v28  ;;  %904 = vmax.xlane.f32.xlu1 %v903_v29 }
 0x2d2   :  { %v884_v31 = vadd.f32 %v8871_v45, %v866_v27 }
 0x2d4   :  { %v906_v34 = vsel %vm252_vm2, %v884_v31, -inf }
 0x2d5   :  { %907 = vmax.xlane.f32.xlu0 %v906_v34 }
 0x2e2   :  { %973 = vrot.lane.b32.xlu1 %v8761_v8, %s8641_s13 }
 0x2e6   :  { %1125 = vrot.lane.b32.xlu1 %v8784_v14, %s8641_s13 }
 0x2ea   :  { %1201 = vrot.lane.b32.xlu1 %v8790_v16, %s8641_s13 }
 0x2eb   :  { %1049 = vrot.lane.b32.xlu0 %v8768_v11, %s8641_s13  ;;  %v887_v38 = vpop.xlane.xlu0 %886 }
 0x2ec   :  { %v909_v40 = vsub.f32 %v877_v44, %v887_v38 }
 0x2ee   :  { %1353 = vrot.lane.b32.xlu1 %v8788_v15, %s8641_s13  ;;  %v917_v41 = vmul.f32 1.442695, %v909_v40 }
 0x2ef   :  { %1277 = vrot.lane.b32.xlu0 %v8782_v13, %s8641_s13  ;;  %v890_v35 = vpop.xlane.xlu1 %889 }
 0x2f0   :  { %v910_v36 = vsub.f32 %v878_v50, %v890_v35 }
 0x2f2   :  { %v919_v8 = vmul.f32 1.442695, %v910_v36 }
 0x2f4   :  { %8219 = vpow2.f32 %v919_v8 }
 0x2f5   :  { %8221 = vpow2.f32 %v917_v41 }
 0x301   :  { %v8900_v14 = vpop.eup %8219 }
 0x302   :  { %v936_v16 = vsel %vm252_vm2, %v8900_v14, 0.0  ;;  %v8904_v11 = vpop.eup %8221 }
 0x303   :  { %v933_v15 = vsel %vm252_vm2, %v8904_v11, 0.0 }
 0x30e   :  { %937 = vadd.xlane.f32.xlu0 %v936_v16 }
 0x312   :  { %934 = vadd.xlane.f32.xlu1 %v933_v15 }
 0x352   :  { %v893_v13 = vpop.xlane.xlu0 %892 }
 0x353   :  { %v911_v42 = vsub.f32 %v879_v55, %v893_v13 }
 0x355   :  { %v921_v43 = vmul.f32 1.442695, %v911_v42 }
 0x356   :  { %v896_v44 = vpop.xlane.xlu0 %895  ;;  %v899_v46 = vpop.xlane.xlu1 %898 }
 0x357   :  { %8223 = vpow2.f32 %v921_v43  ;;  %v912_v47 = vsub.f32 %v880_v63, %v896_v44  ;;  %v913_v48 = vsub.f32 %v881_v7, %v899_v46 }
 0x359   :  { %v923_v49 = vmul.f32 1.442695, %v912_v47  ;;  %v925_v50 = vmul.f32 1.442695, %v913_v48 }
 0x35a   :  { %v902_v51 = vpop.xlane.xlu0 %901  ;;  %v905_v52 = vpop.xlane.xlu1 %904 }
 0x35b   :  { %8225 = vpow2.f32 %v923_v49  ;;  %v914_v53 = vsub.f32 %v882_v24, %v902_v51  ;;  %v915_v54 = vsub.f32 %v883_v25, %v905_v52 }
 0x35c   :  { %8227 = vpow2.f32 %v925_v50 }
 0x35d   :  { %v927_v56 = vmul.f32 1.442695, %v914_v53  ;;  %v929_v57 = vmul.f32 1.442695, %v915_v54 }
 0x35e   :  { %v908_v58 = vpop.xlane.xlu0 %907  ;;  %v974_v59 = vpop.permute.xlu1 %973 }
 0x35f   :  { %8229 = vpow2.f32 %v927_v56  ;;  %v916_v55 = vsub.f32 %v884_v31, %v908_v58  ;;  %7706 = vmatpush3.msra.mxu1 %v974_v59 }
 0x360   :  { %8231 = vpow2.f32 %v929_v57  ;;  %7715 = vmatprep.subr.mxu1 %v8643_v0 }
 0x361   :  { %v931_v60 = vmul.f32 1.442695, %v916_v55 }
 0x362   :  { %v1050_v61 = vpop.permute.xlu0 %1049  ;;  %v1126_v25 = vpop.permute.xlu1 %1125 }
 0x363   :  { %8233 = vpow2.f32 %v931_v60  ;;  %7711 = vmatpush3.msra.mxu0 %v1050_v61 }
 0x364   :  { %v8224_v62 = vpop.eup %8223  ;;  %7720 = vmatprep.subr.mxu0 %v8643_v0 }
 0x365   :  { %v939_v63 = vsel %vm252_vm2, %v8224_v62, 0.0 }
 0x366   :  { %940 = vadd.xlane.f32.xlu1 %v939_v63  ;;  %v1202_v26 = vpop.permute.xlu1 %1201  ;;  %v1278_v27 = vpop.permute.xlu0 %1277 }
 0x368   :  { %v8226_v7 = vpop.eup %8225 }
 0x369   :  { %v8228_v9 = vpop.eup %8227  ;;  %v942_v10 = vsel %vm252_vm2, %v8226_v7, 0.0 }
 0x36a   :  { %943 = vadd.xlane.f32.xlu0 %v942_v10  ;;  %v945_v12 = vsel %vm252_vm2, %v8228_v9, 0.0  ;;  %v1354_v28 = vpop.permute.xlu1 %1353 }
 0x36b   :  { %946 = vadd.xlane.f32.xlu1 %v945_v12 }
 0x36c   :  { %v8230_v19 = vpop.eup %8229 }
 0x36d   :  { %v8913_v20 = vpop.eup %8231  ;;  %v948_v21 = vsel %vm252_vm2, %v8230_v19, 0.0 }
 0x36e   :  { %949 = vadd.xlane.f32.xlu0 %v948_v21  ;;  %v951_v22 = vsel %vm252_vm2, %v8913_v20, 0.0 }
 0x36f   :  { %952 = vadd.xlane.f32.xlu1 %v951_v22 }
 0x370   :  { %v8918_v23 = vpop.eup %8233 }
 0x371   :  { %v954_v24 = vsel %vm252_vm2, %v8918_v23, 0.0 }
 0x372   :  { %955 = vadd.xlane.f32.xlu0 %v954_v24 }
 0x380   :  { %1505 = vrot.lane.b32.xlu1 %v8802_v18, %s8641_s13 }
 0x388   :  { %1429 = vrot.lane.b32.xlu0 %v8796_v17, %s8641_s13 }
 0x38c   :  { %1616 = vrot.lane.b32.xlu0 %v8735_v1, %s8650_s21 }
 0x397   :  { %v938_v29 = vpop.xlane.xlu0 %937 }
 0x398   :  { %8235 = vrcp.f32 %v938_v29 }
 0x39b   :  { %v935_v30 = vpop.xlane.xlu1 %934 }
 0x39c   :  { %8237 = vrcp.f32 %v935_v30 }
 0x3a5   :  { %v8236_v31 = vpop.eup %8235 }
 0x3a6   :  { %v966_v34 = vmul.f32 %v8236_v31, %v8900_v14 }
 0x3a8   :  { %7713 = vmatmul.mubr.msk.f32.vlgmr.msra.gmra.mxu0 %vm252_vm2, %v966_v34 }
 0x3a9   :  { %v8238_v35 = vpop.eup %8237  ;;  %7721 = vmatpush3.msra.mxu0 %v1202_v26  ;;  %7722 = vmatprep.mubr.msk.f32.mxu0 %vm8644_vm0, %v8643_v0 }
 0x3aa   :  { %v965_v17 = vmul.f32 %v8238_v35, %v8904_v11  ;;  %7730 = vmatprep.subr.mxu0 %v8643_v0 }
 0x3ac   :  { %7708 = vmatmul.mubr.msk.f32.vlgmr.msra.gmra.mxu1 %vm252_vm2, %v965_v17 }
 0x3ad   :  { %7716 = vmatpush3.msra.mxu1 %v1126_v25  ;;  %7717 = vmatprep.mubr.msk.f32.mxu1 %vm8644_vm0, %v8643_v0 }
 0x3ae   :  { %7725 = vmatprep.subr.mxu1 %v8643_v0 }
 0x3ef   :  { %v941_v18 = vpop.xlane.xlu1 %940 }
 0x3f0   :  { %8239 = vrcp.f32 %v941_v18 }
 0x3f3   :  { %v944_v36 = vpop.xlane.xlu0 %943 }
 0x3f4   :  { %8241 = vrcp.f32 %v944_v36  ;;  %v947_v38 = vpop.xlane.xlu1 %946 }
 0x3f5   :  { %8243 = vrcp.f32 %v947_v38 }
 0x3f7   :  { %v950_v40 = vpop.xlane.xlu0 %949 }
 0x3f8   :  { %8245 = vrcp.f32 %v950_v40  ;;  %v953_v8 = vpop.xlane.xlu1 %952 }
 0x3f9   :  { %8247 = vrcp.f32 %v953_v8 }
 0x3fb   :  { %v956_v41 = vpop.xlane.xlu0 %955 }
 0x3fc   :  { %8249 = vrcp.f32 %v956_v41  ;;  %v1506_v49 = vpop.permute.xlu1 %1505 }
 0x3fd   :  { %v8240_v14 = vpop.eup %8239 }
 0x3fe   :  { %v967_v16 = vmul.f32 %v8240_v14, %v8224_v62 }
 0x3ff   :  { %v1430_v44 = vpop.permute.xlu0 %1429 }
 0x400   :  { %7718 = vmatmul.mubr.msk.f32.vlgmr.msra.gmra.mxu1 %vm252_vm2, %v967_v16 }
 0x401   :  { %v8242_v11 = vpop.eup %8241  ;;  %7726 = vmatpush3.msra.mxu1 %v1278_v27  ;;  %7727 = vmatprep.mubr.msk.f32.mxu1 %vm8644_vm0, %v8643_v0 }
 0x402   :  { %v8244_v15 = vpop.eup %8243  ;;  %7735 = vmatprep.subr.mxu1 %v8643_v0  ;;  %v968_v13 = vmul.f32 %v8242_v11, %v8226_v7 }
 0x403   :  { %v969_v42 = vmul.f32 %v8244_v15, %v8228_v9  ;;  %v1617_v57 = vpop.permute.xlu0 %1616 }
 0x404   :  { %7723 = vmatmul.mubr.msk.f32.vlgmr.msra.gmra.mxu0 %vm252_vm2, %v968_v13 }
 0x405   :  { %v8246_v43 = vpop.eup %8245  ;;  %7728 = vmatmul.mubr.msk.f32.vlgmr.msra.gmra.mxu1 %vm252_vm2, %v969_v42  ;;  %7731 = vmatpush3.msra.mxu0 %v1354_v28 }
 0x406   :  { %v8248_v46 = vpop.eup %8247  ;;  %7736 = vmatpush3.msra.mxu1 %v1430_v44  ;;  %7732 = vmatprep.mubr.msk.f32.mxu0 %vm8644_vm0, %v8643_v0  ;;  %v970_v47 = vmul.f32 %v8246_v43, %v8230_v19 }
 0x407   :  { %7737 = vmatprep.mubr.msk.f32.mxu1 %vm8644_vm0, %v8643_v0  ;;  %7740 = vmatprep.subr.mxu0 %v8643_v0  ;;  %v971_v48 = vmul.f32 %v8248_v46, %v8913_v20 }
 0x408   :  { %7733 = vmatmul.mubr.msk.f32.vlgmr.msra.gmra.mxu0 %vm252_vm2, %v970_v47  ;;  %7745 = vmatprep.subr.bf16.mxu1 %v8643_v0 }
 0x409   :  { %v8250_v50 = vpop.eup %8249  ;;  %7738 = vmatmul.mubr.msk.f32.vlgmr.msra.gmra.mxu1 %vm252_vm2, %v971_v48  ;;  %7741 = vmatpush3.msra.mxu0 %v1506_v49 }
 0x40a   :  { %7742 = vmatprep.mubr.msk.f32.mxu0 %vm8644_vm0, %v8643_v0  ;;  %v972_v51 = vmul.f32 %v8250_v50, %v8918_v23  ;;  %7749 = vmatprep.mubr.msk.bf16.mxu1 %vm8644_vm0, %v8643_v0 }
 0x40b   :  { %7753 = vmatprep.subr.bf16.mxu0 %v8643_v0  ;;  %7746 = vmatpush3.bf16.msra.mxu1 %v1617_v57 }
 0x40c   :  { %7743 = vmatmul.mubr.msk.f32.vlgmr.msra.gmra.mxu0 %vm252_vm2, %v972_v51  ;;  %7747 = vmatprep.subr.bf16.mxu1 %v8643_v0 }
 0x40d   :  { %7757 = vmatprep.mubr.msk.bf16.mxu0 %vm8644_vm0, %v8643_v0 }
 0x468   :  { %v1121_v52 = vpop.f32.mrf.mxu0 }
 0x46a   :  { %v7714_v53 = vpop.f32.mrf.mxu0 }
 0x46c   :  { %v1045_v54 = vpop.f32.mrf.mxu1 }
 0x46e   :  { %v7709_v56 = vpop.f32.mrf.mxu1 }
 0x4c0   :  { %v1197_v58 = vpop.f32.mrf.mxu1 }
 0x4c2   :  { %v7719_v59 = vpop.f32.mrf.mxu1 }
 0x4c4   :  { %v1273_v55 = vpop.f32.mrf.mxu0 }
 0x4c5   :  { %v8108_v60 = vpack.i.bf16 %v1273_v55, %v1197_v58  ;;  %v1349_v61 = vpop.f32.mrf.mxu1 }
 0x4c6   :  { %v7724_v62 = vpop.f32.mrf.mxu0 }
 0x4c7   :  { %v7729_v63 = vpop.f32.mrf.mxu1  ;;  %8109 = vrot.lane.b32.xlu1 %v8108_v60, %s8634_s11  ;;  %v7288_v62 = vld [vmem:[%s10172_s6 + $0x2] ss:$0 sm:$0xff] }
 0x4c8   :  { %v1425_v7 = vpop.f32.mrf.mxu0  ;;  %v8191_v63 = vld [vmem:[#allocation10 + $0x2c] ss:$20 sps:$4 sm:$0xff]  }
 0x4c9   :  { %v8113_v9 = vpack.i.bf16 %v1425_v7, %v1349_v61  ;;  %v1501_v1 = vpop.f32.mrf.mxu1  ;;  %7754 = vmatpush3.bf16.msra.mxu0 %v8191_v63 }
 0x4ca   :  { %v7734_v10 = vpop.f32.mrf.mxu0  ;;  %7755 = vmatprep.subr.bf16.mxu0 %v8643_v0 }
 0x4cb   :  { %v7739_v12 = vpop.f32.mrf.mxu1  ;;  %8114 = vrot.lane.b32.xlu0 %v8113_v9, %s8651_s1  ;;  %v8192_v9 = vld [vmem:[#allocation10 + $0x4] ss:$20 sps:$4 sm:$0xff]  }
 0x4cc   :  { %v1577_v19 = vpop.f32.mrf.mxu0  ;;  %v8187_v10 = vld [vmem:[#allocation10 + $0x30] ss:$20 sps:$4 sm:$0xff]  }
 0x4cd   :  { %v8118_v20 = vpack.i.bf16 %v1577_v19, %v1501_v1  ;;  %v8185_v1 = vld [vmem:[#allocation10 + $0x2c] ss:$20 sps:$4 sm:$0xff]   ;;  %7756 = vmatpush3.bf16.msra.mxu0 %v8192_v9  ;;  %v8188_v12 = vld [vmem:[#allocation10 + $0x4] ss:$20 sps:$4 sm:$0xff]  }
 0x4ce   :  { %v7744_v21 = vpop.f32.mrf.mxu0 }
 0x4cf   :  { %8119 = vrot.lane.b32.xlu1 %v8118_v20, %s8652_s22  ;;  %1614 = vrot.lane.b32.xlu0 %v8738_v2, %s8650_s21  ;;  %v7287_v20 = vld [vmem:[%s10172_s6 + $0x1] ss:$0 sm:$0xff] }
 0x4d3   :  { %1620 = vrot.lane.b32.xlu1 %v8758_v6, %s8650_s21 }
 0x539   :  { %v8110_v22 = vpop.permute.xlu1 %8109 }
 0x53a   :  { %v8112_v24 = vunpack.i.h.bf16 %v8110_v22  ;;  %v8111_v25 = vunpack.i.l.bf16 %v8110_v22 }
 0x53c   :  { %v1606_v30 = vsel %vm252_vm2, %v1121_v52, %v8112_v24  ;;  %v1605_v31 = vsel %vm252_vm2, %v1045_v54, %v8111_v25 }
 0x53d   :  { %v8115_v23 = vpop.permute.xlu0 %8114 }
 0x53e   :  { %v8117_v26 = vunpack.i.h.bf16 %v8115_v23  ;;  %v8116_v27 = vunpack.i.l.bf16 %v8115_v23 }
 0x540   :  { %v1608_v2 = vsel %vm1607_vm4, %v1605_v31, %v8116_v27  ;;  %v1609_v6 = vsel %vm1607_vm4, %v1606_v30, %v8117_v26  ;;  %v1940_v27 = vld [vmem:[%s10172_s6 + $0x2] sm:$0x3] }
 0x541   :  { %v8120_v28 = vpop.permute.xlu1 %8119  ;;  %v1615_v29 = vpop.permute.xlu0 %1614  ;;  %v1952_v31 = vrot.slane %v1940_v27, %v8863_v37 }
 0x542   :  { %v8122_v34 = vunpack.i.h.bf16 %v8120_v28  ;;  %v8121_v35 = vunpack.i.l.bf16 %v8120_v28  ;;  %7748 = vmatpush3.bf16.msra.mxu1 %v1615_v29  ;;  %v8193_v28 = vld [vmem:[#allocation11 + $0x18] sm:$0xff]  }
 0x543   :  { %7761 = vmatprep.subr.bf16.mxu1 %v8643_v0 }
 0x544   :  { %v1611_v17 = vsel %vm1610_vm5, %v1608_v2, %v8121_v35  ;;  %v1612_v18 = vsel %vm1610_vm5, %v1609_v6, %v8122_v34  ;;  %v8190_v2 = vld [vmem:[#allocation10 + $0x8] ss:$20 sps:$4 sm:$0xff]   ;;  %v9017_v6 = vsub.s32 1, %v8854_v32  ;;  %v165_v32 = vld [vmem:[#allocation5 + $0x10] sm:$0xff] }
 0x545   :  { %v1613_v36 = vpack.c.bf16 %v1612_v18, %v1611_v17  ;;  %v1621_v38 = vpop.permute.xlu1 %1620  ;;  %v163_v18 = vld [vmem:[#allocation5] sm:$0xff] }
 0x546   :  { %v1956_v17 = vrot.slane %v1940_v27, %v9017_v6 }
 0x547   :  { %7750 = vmatmul.mubr.msk.bf16.vlgmr.msra.gmra.mxu1 %vm191_vm1, %v1613_v36  ;;  %v164_v36 = vld [vmem:[#allocation5 + $0x8] sm:$0xff] }
 0x548   :  { %7769 = vmatprep.mubr.msk.bf16.mxu1 %vm8644_vm0, %v8643_v0  ;;  %7762 = vmatpush3.bf16.msra.mxu1 %v8193_v28 }
 0x549   :  { %7763 = vmatprep.subr.bf16.mxu1 %v8643_v0 }
 0x607   :  { %v1660_v40 = vpop.f32.mrf.mxu1 }
 0x608   :  { %v1661_v8 = vadd.f32 %v1660_v40, %v1621_v38 }
 0x609   :  { %v7751_v41 = vpop.f32.mrf.mxu1 }
 0x60a   :  { %v1667_v14 = vadd.f32 %v1661_v8, %v8740_v3  ;;  %v166_v41 = vld [vmem:[#allocation5 + $0x18] sm:$0xff] }
 0x60b   :  { %v1663_v16 = vpop.f32.mrf.mxu1 }
 0x60c   :  { %v1664_v11 = vadd.f32 %v1663_v16, %v1621_v38  ;;  %v1671_v15 = vsel %vm191_vm1, %v1667_v14, 0.0  ;;  %v1946_v38 = vpack.c.bf16 %v164_v36, %v163_v18 }
 0x60d   :  { %1672 = vadd.xlane.f32.xlu0 %v1671_v15  ;;  %v7752_v13 = vpop.f32.mrf.mxu1  ;;  %v8194_v15 = vld [vmem:[#allocation11 + $0x10] sm:$0xff]  }
 0x60e   :  { %v1668_v42 = vadd.f32 %v1664_v11, %v8742_v4  ;;  %v1947_v11 = vpack.c.bf16 %v166_v41, %v165_v32  ;;  %7764 = vmatpush3.bf16.msra.mxu1 %v8194_v15  ;;  %v8195_v13 = vld [vmem:[#allocation11 + $0x8] sm:$0xff]  }
 0x60f   :  { %7765 = vmatprep.subr.bf16.mxu1 %v8643_v0 }
 0x610   :  { %v1674_v43 = vsel %vm191_vm1, %v1668_v42, 0.0 }
 0x611   :  { %1675 = vadd.xlane.f32.xlu1 %v1674_v43 }
 0x612   :  { %7766 = vmatpush3.bf16.msra.mxu1 %v8195_v13 }
 0x613   :  { %7767 = vmatprep.subr.bf16.mxu1 %v8643_v0 }
 0x696   :  { %v1673_v44 = vpop.xlane.xlu0 %1672 }
 0x697   :  { %v1678_v46 = vmul.f32 0.03125, %v1673_v44 }
 0x699   :  { %v1680_v47 = vsub.f32 %v1667_v14, %v1678_v46 }
 0x69a   :  { %v1676_v48 = vpop.xlane.xlu1 %1675 }
 0x69b   :  { %v1679_v49 = vmul.f32 0.03125, %v1676_v48  ;;  %v1682_v50 = vmul.f32 %v1680_v47, %v1680_v47 }
 0x69d   :  { %v1681_v51 = vsub.f32 %v1668_v42, %v1679_v49  ;;  %v1684_v3 = vsel %vm191_vm1, %v1682_v50, 0.0  ;;  %v8196_v42 = vld [vmem:[#allocation11] sm:$0xff]  }
 0x69e   :  { %1685 = vadd.xlane.f32.xlu0 %v1684_v3  ;;  %7768 = vmatpush3.bf16.msra.mxu1 %v8196_v42 }
 0x69f   :  { %v1683_v52 = vmul.f32 %v1681_v51, %v1681_v51 }
 0x6a1   :  { %v1687_v53 = vsel %vm191_vm1, %v1683_v52, 0.0 }
 0x6a2   :  { %1688 = vadd.xlane.f32.xlu0 %v1687_v53 }
 0x727   :  { %v1686_v54 = vpop.xlane.xlu0 %1685 }
 0x728   :  { %v1690_v56 = vmul.f32 0.03125, %v1686_v54 }
 0x72a   :  { %v1692_v4 = vadd.f32 1e-06, %v1690_v56 }
 0x72b   :  { %v1689_v57 = vpop.xlane.xlu0 %1688 }
 0x72c   :  { %8251 = vrsqrt.f32 %v1692_v4  ;;  %v1691_v58 = vmul.f32 0.03125, %v1689_v57 }
 0x72e   :  { %v1693_v59 = vadd.f32 1e-06, %v1691_v58 }
 0x730   :  { %8253 = vrsqrt.f32 %v1693_v59 }
 0x739   :  { %v8252_v55 = vpop.eup %8251 }
 0x73a   :  { %v1696_v60 = vmul.f32 %v8252_v55, %v1680_v47 }
 0x73c   :  { %1706 = vrot.lane.b32.xlu1 %v1696_v60, %s8648_s20 }
 0x73d   :  { %v8254_v61 = vpop.eup %8253 }
 0x73e   :  { %v1697_v7 = vmul.f32 %v8254_v61, %v1681_v51 }
 0x740   :  { %1719 = vrot.lane.b32.xlu1 %v7288_v62, %s8648_s20  ;;  %1708 = vrot.lane.b32.xlu0 %v1697_v7, %s8648_s20 }
 0x744   :  { %1977 = vrot.lane.b32.xlu1 %v8185_v1, %s8641_s13  ;;  %1979 = vrot.lane.b32.xlu0 %v8187_v10, %s8641_s13 }
 0x748   :  { %1973 = vrot.lane.b32.xlu0 %v8188_v12, %s8641_s13 }
 0x74c   :  { %1986 = vrot.lane.b32.xlu0 %v1952_v31, %s8650_s21 }
 0x7ae   :  { %v1707_v19 = vpop.permute.xlu1 %1706 }
 0x7af   :  { %v1712_v23 = vmul.f32 %v7287_v20, %v1707_v19 }
 0x7b2   :  { %v1709_v21 = vpop.permute.xlu0 %1708  ;;  %v8999_v22 = vpop.permute.xlu1 %1719 }
 0x7b3   :  { %v1713_v24 = vmul.f32 %v7287_v20, %v1709_v21  ;;  %v9002_v25 = vadd.f32 %v8999_v22, %v1712_v23 }
 0x7b5   :  { %v9005_v26 = vadd.f32 %v8999_v22, %v1713_v24 }
 0x7b6   :  { %v1978_v29 = vpop.permute.xlu1 %1977  ;;  %v1980_v30 = vpop.permute.xlu0 %1979 }
 0x7b7   :  { %v1736_v34 = vpack.c.bf16 %v9005_v26, %v9002_v25  ;;  %v1983_v35 = vsel %vm1826_vm6, %v1978_v29, %v1980_v30 }
 0x7b8   :  { %7773 = vmatprep.subr.bf16.mxu0 %v1983_v35 }
 0x7b9   :  { %1738 = vrot.lane.b32.xlu1 %v1736_v34, %s8650_s21 }
 0x7ba   :  { %v1974_v8 = vpop.permute.xlu0 %1973 }
 0x7bd   :  { %1975 = vrot.lane.b32.xlu1 %v8190_v2, %s8641_s13 }
 0x7be   :  { %v1987_v47 = vpop.permute.xlu0 %1986 }
 0x7c1   :  { %1988 = vrot.lane.b32.xlu1 %v1956_v17, %s8650_s21 }
 0x82b   :  { %v1739_v40 = vpop.permute.xlu1 %1738 }
 0x82c   :  { %7758 = vmatmul.mubr.msk.bf16.vlgmr.msra.gmra.mxu0 %vm191_vm1, %v1739_v40 }
 0x82d   :  { %7774 = vmatpush3.bf16.msra.mxu0 %v1983_v35  ;;  %7777 = vmatprep.mubr.msk.bf16.mxu0 %vm191_vm1, %v1946_v38 }
 0x82f   :  { %v1976_v14 = vpop.permute.xlu1 %1975 }
 0x830   :  { %v1982_v16 = vsel %vm1826_vm6, %v1974_v8, %v1976_v14 }
 0x831   :  { %7775 = vmatprep.subr.bf16.mxu0 %v1982_v16 }
 0x832   :  { %7776 = vmatpush3.bf16.msra.mxu0 %v1982_v16 }
 0x833   :  { %v1989_v49 = vpop.permute.xlu1 %1988 }
 0x834   :  { %v1990_v53 = vsel %vm191_vm1, %v1987_v47, %v1989_v49 }
 0x835   :  { %7778 = vmatmul.mubr.msk.bf16.vlgmr.msra.gmra.mxu0 %vm191_vm1, %v1947_v11 }
 0x8ec   :  { %v1789_v43 = vpop.f32.mrf.mxu0 }
 0x8ed   :  { %v1790_v46 = vadd.f32 %v7287_v20, %v1789_v43 }
 0x8ee   :  { %v7759_v44 = vpop.f32.mrf.mxu0 }
 0x8ef   :  { %v1796_v3 = vmax.f32 %v1790_v46, 0.0 }
 0x8f0   :  { %v1792_v48 = vpop.f32.mrf.mxu0 }
 0x8f1   :  { %v1793_v50 = vadd.f32 %v7287_v20, %v1792_v48  ;;  %v112_v48 = vld [vmem:[#allocation8] sm:$0x3] }
 0x8f2   :  { %v7760_v51 = vpop.f32.mrf.mxu0  ;;  %vm113_vm7 = vcmp.ne.s32.totalorder %v112_v48, 0 }
 0x8f3   :  { %v1797_v52 = vmax.f32 %v1793_v50, 0.0  ;;  %v114_v49 = vsel %vm113_vm7, -1e+09, %v8643_v0 }
 0x8f4   :  { %v145_v50 = vrot.slane %v114_v49, %v8857_v33 }
 0x8f5   :  { %v1798_v54 = vpack.c.bf16 %v1797_v52, %v1796_v3  ;;  %v7779_v56 = vpop.f32.mrf.mxu0 }
 0x8f6   :  { %v9030_v4 = vadd.f32 %v7779_v56, %v1990_v53  ;;  %v146_v51 = vcombine.high %v145_v50, %v145_v50  ;;  %v153_v52 = vrot.slane %v145_v50, %v8857_v33 }
 0x8f7   :  { %7770 = vmatmul.mubr.msk.bf16.vlgmr.msra.gmra.mxu1 %vm1826_vm6, %v1798_v54  ;;  %v2032_v57 = vpop.f32.mrf.mxu0 }
 0x8f8   :  { %v2033_v58 = vadd.f32 %v2032_v57, %v1990_v53  ;;  %7792 = vmatprep.mubr.msk.f32.mxu1 %vm252_vm2, %v9030_v4  ;;  %v160_v3 = vrot.slane %v146_v51, %v8857_v33 }
 0x8f9   :  { %v7780_v59 = vpop.f32.mrf.mxu0 }
 0x8fa   :  { %v2044_v55 = vadd.f32 %v7780_v59, %v1990_v53  ;;  %7785 = vmatprep.mubr.msk.f32.mxu0 %vm252_vm2, %v2033_v58 }
 0x8fb   :  { %v2035_v60 = vpop.f32.mrf.mxu0 }
 0x8fc   :  { %v2036_v61 = vadd.f32 %v2035_v60, %v1990_v53  ;;  %2057 = vrot.lane.b32.xlu1 %v2044_v55, %s8646_s18  ;;  %v9184_v53 = vrot.slane %v160_v3, %v8863_v37 }
 0x8fe   :  { %2053 = vrot.lane.b32.xlu0 %v2036_v61, %s8646_s18 }
 0x900   :  { %2055 = vrot.lane.b32.xlu1 %v9030_v4, %s8646_s18 }
 0x902   :  { %2051 = vrot.lane.b32.xlu0 %v2033_v58, %s8646_s18 }
 0x904   :  { %2065 = vrot.lane.b32.xlu1 %v2044_v55, %s8645_s17 }
 0x906   :  { %2061 = vrot.lane.b32.xlu0 %v2036_v61, %s8645_s17 }
 0x908   :  { %2063 = vrot.lane.b32.xlu1 %v9030_v4, %s8645_s17 }
 0x90a   :  { %2059 = vrot.lane.b32.xlu0 %v2033_v58, %s8645_s17 }
 0x90c   :  { %2073 = vrot.lane.b32.xlu1 %v2044_v55, %s8647_s19 }
 0x90e   :  { %2069 = vrot.lane.b32.xlu0 %v2036_v61, %s8647_s19 }
 0x910   :  { %2071 = vrot.lane.b32.xlu1 %v9030_v4, %s8647_s19 }
 0x912   :  { %2067 = vrot.lane.b32.xlu0 %v2033_v58, %s8647_s19 }
 0x914   :  { %2164 = vrot.lane.b32.xlu1 %v2044_v55, %s8648_s20 }
 0x916   :  { %2077 = vrot.lane.b32.xlu0 %v2036_v61, %s8648_s20 }
 0x918   :  { %2162 = vrot.lane.b32.xlu1 %v9030_v4, %s8648_s20 }
 0x91a   :  { %2075 = vrot.lane.b32.xlu0 %v2033_v58, %s8648_s20 }
 0x96e   :  { %v9056_v62 = vpop.permute.xlu1 %2057 }
 0x96f   :  { %2338 = vrot.lane.b32.xlu1 %v9056_v62, %s8648_s20 }
 0x970   :  { %v9060_v63 = vpop.permute.xlu0 %2053 }
 0x971   :  { %2251 = vrot.lane.b32.xlu0 %v9060_v63, %s8648_s20 }
 0x972   :  { %v2056_v7 = vpop.permute.xlu1 %2055 }
 0x973   :  { %2336 = vrot.lane.b32.xlu1 %v2056_v7, %s8648_s20 }
 0x974   :  { %v2052_v9 = vpop.permute.xlu0 %2051 }
 0x975   :  { %2249 = vrot.lane.b32.xlu0 %v2052_v9, %s8648_s20 }
 0x976   :  { %v9066_v1 = vpop.permute.xlu1 %2065 }
 0x977   :  { %2512 = vrot.lane.b32.xlu1 %v9066_v1, %s8648_s20 }
 0x978   :  { %v9070_v10 = vpop.permute.xlu0 %2061 }
 0x979   :  { %2425 = vrot.lane.b32.xlu0 %v9070_v10, %s8648_s20 }
 0x97a   :  { %v9074_v12 = vpop.permute.xlu1 %2063 }
 0x97b   :  { %2510 = vrot.lane.b32.xlu1 %v9074_v12, %s8648_s20 }
 0x97c   :  { %v9078_v19 = vpop.permute.xlu0 %2059 }
 0x97d   :  { %2423 = vrot.lane.b32.xlu0 %v9078_v19, %s8648_s20 }
 0x97e   :  { %v9082_v20 = vpop.permute.xlu1 %2073 }
 0x97f   :  { %2686 = vrot.lane.b32.xlu1 %v9082_v20, %s8648_s20 }
 0x980   :  { %v9086_v21 = vpop.permute.xlu0 %2069 }
 0x981   :  { %2599 = vrot.lane.b32.xlu0 %v9086_v21, %s8648_s20 }
 0x982   :  { %v9090_v23 = vpop.permute.xlu1 %2071 }
 0x983   :  { %2684 = vrot.lane.b32.xlu1 %v9090_v23, %s8648_s20 }
 0x984   :  { %v9094_v24 = vpop.permute.xlu0 %2067 }
 0x985   :  { %2597 = vrot.lane.b32.xlu0 %v9094_v24, %s8648_s20 }
 0x986   :  { %v2165_v27 = vpop.permute.xlu1 %2164 }
 0x987   :  { %2991 = vrot.lane.b32.xlu1 %v2036_v61, %s8641_s13  ;;  %7788 = vmatprep.subr.msk.mxu1 %vm252_vm2, %v2165_v27 }
 0x988   :  { %7789 = vmatpush3.xpose.msk.msra.mxu1 %vm252_vm2, %v2165_v27  ;;  %v2078_v28 = vpop.permute.xlu0 %2077 }
 0x989   :  { %2989 = vrot.lane.b32.xlu0 %v2033_v58, %s8641_s13  ;;  %7781 = vmatprep.subr.msk.mxu0 %vm252_vm2, %v2078_v28 }
 0x98a   :  { %v2163_v29 = vpop.permute.xlu1 %2162  ;;  %7782 = vmatpush3.xpose.msk.msra.mxu0 %vm252_vm2, %v2078_v28 }
 0x98b   :  { %3078 = vrot.lane.b32.xlu1 %v2044_v55, %s8641_s13  ;;  %7790 = vmatprep.subr.msk.mxu1 %vm252_vm2, %v2163_v29 }
 0x98c   :  { %7791 = vmatpush3.xpose.msk.msra.mxu1 %vm252_vm2, %v2163_v29  ;;  %v2076_v30 = vpop.permute.xlu0 %2075 }
 0x98d   :  { %3163 = vrot.lane.b32.xlu0 %v2052_v9, %s8641_s13  ;;  %7783 = vmatprep.subr.msk.mxu0 %vm252_vm2, %v2076_v30 }
 0x98e   :  { %7784 = vmatpush3.xpose.msk.msra.mxu0 %vm252_vm2, %v2076_v30 }
 0x98f   :  { %3076 = vrot.lane.b32.xlu1 %v9030_v4, %s8641_s13  ;;  %7793 = vmatmul.mubr.msk.f32.vlgmr.msra.gmra.mxu1 %vm252_vm2, %v2044_v55  ;;  %v9187_v4 = vrot.slane %v153_v52, %v8863_v37 }
 0x990   :  { %7806 = vmatprep.mubr.msk.f32.mxu1 %vm252_vm2, %v2056_v7 }
 0x991   :  { %3165 = vrot.lane.b32.xlu0 %v9060_v63, %s8641_s13  ;;  %7786 = vmatmul.mubr.msk.f32.vlgmr.msra.gmra.mxu0 %vm252_vm2, %v2036_v61 }
 0x992   :  { %7799 = vmatprep.mubr.msk.f32.mxu0 %vm252_vm2, %v2052_v9 }
 0x993   :  { %3252 = vrot.lane.b32.xlu1 %v9056_v62, %s8641_s13 }
 0x995   :  { %3339 = vrot.lane.b32.xlu0 %v9070_v10, %s8641_s13 }
 0x997   :  { %3250 = vrot.lane.b32.xlu1 %v2056_v7, %s8641_s13 }
 0x99b   :  { %3426 = vrot.lane.b32.xlu1 %v9066_v1, %s8641_s13 }
 0x9b7   :  { %v9125_v31 = vpop.f32.mrf.mxu1 }
 0x9b9   :  { %v7771_v34 = vpop.f32.mrf.mxu1 }
 0x9bb   :  { %v9127_v35 = vpop.f32.mrf.mxu1 }
 0x9bd   :  { %v7772_v2 = vpop.f32.mrf.mxu1 }
 0x9e1   :  { %v2339_v17 = vpop.permute.xlu1 %2338 }
 0x9e2   :  { %7802 = vmatprep.subr.msk.mxu1 %vm252_vm2, %v2339_v17 }
 0x9e3   :  { %7803 = vmatpush3.xpose.msk.msra.mxu1 %vm252_vm2, %v2339_v17  ;;  %v2252_v18 = vpop.permute.xlu0 %2251 }
 0x9e4   :  { %7795 = vmatprep.subr.msk.mxu0 %vm252_vm2, %v2252_v18 }
 0x9e5   :  { %v2337_v36 = vpop.permute.xlu1 %2336  ;;  %7796 = vmatpush3.xpose.msk.msra.mxu0 %vm252_vm2, %v2252_v18 }
 0x9e6   :  { %7804 = vmatprep.subr.msk.mxu1 %vm252_vm2, %v2337_v36 }
 0x9e7   :  { %7805 = vmatpush3.xpose.msk.msra.mxu1 %vm252_vm2, %v2337_v36  ;;  %v2250_v38 = vpop.permute.xlu0 %2249 }
 0x9e8   :  { %7797 = vmatprep.subr.msk.mxu0 %vm252_vm2, %v2250_v38 }
 0x9e9   :  { %v2513_v40 = vpop.permute.xlu1 %2512  ;;  %7798 = vmatpush3.xpose.msk.msra.mxu0 %vm252_vm2, %v2250_v38 }
 0x9ea   :  { %7807 = vmatmul.mubr.msk.f32.vlgmr.msra.gmra.mxu1 %vm252_vm2, %v9056_v62  ;;  %7816 = vmatprep.subr.msk.mxu1 %vm252_vm2, %v2513_v40 }
 0x9eb   :  { %7817 = vmatpush3.xpose.msk.msra.mxu1 %vm252_vm2, %v2513_v40  ;;  %7820 = vmatprep.mubr.msk.f32.mxu1 %vm252_vm2, %v9074_v12  ;;  %v2426_v8 = vpop.permute.xlu0 %2425 }
 0x9ec   :  { %7800 = vmatmul.mubr.msk.f32.vlgmr.msra.gmra.mxu0 %vm252_vm2, %v9060_v63  ;;  %7809 = vmatprep.subr.msk.mxu0 %vm252_vm2, %v2426_v8 }
 0x9ed   :  { %v2511_v32 = vpop.permute.xlu1 %2510  ;;  %7810 = vmatpush3.xpose.msk.msra.mxu0 %vm252_vm2, %v2426_v8  ;;  %7813 = vmatprep.mubr.msk.f32.mxu0 %vm252_vm2, %v9078_v19 }
 0x9ee   :  { %7818 = vmatprep.subr.msk.mxu1 %vm252_vm2, %v2511_v32 }
 0x9ef   :  { %7819 = vmatpush3.xpose.msk.msra.mxu1 %vm252_vm2, %v2511_v32  ;;  %v2424_v41 = vpop.permute.xlu0 %2423 }
 0x9f0   :  { %7811 = vmatprep.subr.msk.mxu0 %vm252_vm2, %v2424_v41 }
 0x9f1   :  { %v2687_v14 = vpop.permute.xlu1 %2686  ;;  %7812 = vmatpush3.xpose.msk.msra.mxu0 %vm252_vm2, %v2424_v41 }
 0x9f2   :  { %7821 = vmatmul.mubr.msk.f32.vlgmr.msra.gmra.mxu1 %vm252_vm2, %v9066_v1  ;;  %7830 = vmatprep.subr.msk.mxu1 %vm252_vm2, %v2687_v14 }
 0x9f3   :  { %7831 = vmatpush3.xpose.msk.msra.mxu1 %vm252_vm2, %v2687_v14  ;;  %7834 = vmatprep.mubr.msk.f32.mxu1 %vm252_vm2, %v9090_v23  ;;  %v2600_v16 = vpop.permute.xlu0 %2599 }
 0x9f4   :  { %7814 = vmatmul.mubr.msk.f32.vlgmr.msra.gmra.mxu0 %vm252_vm2, %v9070_v10  ;;  %7823 = vmatprep.subr.msk.mxu0 %vm252_vm2, %v2600_v16 }
 0x9f5   :  { %v2685_v11 = vpop.permute.xlu1 %2684  ;;  %7824 = vmatpush3.xpose.msk.msra.mxu0 %vm252_vm2, %v2600_v16  ;;  %7827 = vmatprep.mubr.msk.f32.mxu0 %vm252_vm2, %v9094_v24 }
 0x9f6   :  { %7832 = vmatprep.subr.msk.mxu1 %vm252_vm2, %v2685_v11 }
 0x9f7   :  { %7833 = vmatpush3.xpose.msk.msra.mxu1 %vm252_vm2, %v2685_v11  ;;  %v2598_v15 = vpop.permute.xlu0 %2597 }
 0x9f8   :  { %7825 = vmatprep.subr.msk.mxu0 %vm252_vm2, %v2598_v15 }
 0x9f9   :  { %v2992_v13 = vpop.permute.xlu1 %2991  ;;  %7826 = vmatpush3.xpose.msk.msra.mxu0 %vm252_vm2, %v2598_v15 }
 0x9fa   :  { %7835 = vmatmul.mubr.msk.f32.vlgmr.msra.gmra.mxu1 %vm252_vm2, %v9082_v20  ;;  %7837 = vmatprep.subr.mxu0 %v2992_v13 }
 0x9fb   :  { %v2990_v42 = vpop.permute.xlu0 %2989 }
 0x9fc   :  { %7828 = vmatmul.mubr.msk.f32.vlgmr.msra.gmra.mxu0 %vm252_vm2, %v9086_v21 }
 0x9fd   :  { %7838 = vmatpush3.msra.mxu0 %v2992_v13  ;;  %v9173_v43 = vpop.permute.xlu1 %3078 }
 0x9fe   :  { %7839 = vmatprep.subr.mxu0 %v2990_v42 }
 0x9ff   :  { %v3164_v44 = vpop.permute.xlu0 %3163  ;;  %7840 = vmatpush3.msra.mxu0 %v2990_v42 }
 0xa00   :  { %7844 = vmatprep.subr.mxu0 %v9173_v43 }
 0xa03   :  { %v3166_v46 = vpop.permute.xlu0 %3165 }
 0xa04   :  { %7851 = vmatprep.subr.mxu1 %v3166_v46 }
 0xa05   :  { %7852 = vmatpush3.msra.mxu1 %v3166_v46 }
 0xa06   :  { %7853 = vmatprep.subr.mxu1 %v3164_v44 }
 0xa07   :  { %7854 = vmatpush3.msra.mxu1 %v3164_v44  ;;  %v9176_v47 = vpop.permute.xlu0 %3339 }
 0xa08   :  { %7865 = vmatprep.subr.mxu1 %v9176_v47 }
 0xa4f   :  { %v7794_v54 = vpop.f32.mrf.mxu1 }
 0xa50   :  { %v2774_v56 = vmul.f32 0.35355338, %v7794_v54 }
 0xa51   :  { %v7787_v57 = vpop.f32.mrf.mxu0  ;;  %v2240_v58 = vpop.f32.mrf.mxu1 }
 0xa52   :  { %v2772_v59 = vmul.f32 0.35355338, %v7787_v57  ;;  %v2773_v55 = vmul.f32 0.35355338, %v2240_v58  ;;  %v9190_v60 = vadd.f32 %v9184_v53, %v2774_v56 }
 0xa53   :  { %v2153_v61 = vpop.f32.mrf.mxu0 }
 0xa54   :  { %v9193_v62 = vadd.f32 %v9187_v4, %v2772_v59  ;;  %v2771_v33 = vmul.f32 0.35355338, %v2153_v61  ;;  %v2822_v63 = vsel %vm1607_vm4, %v9190_v60, -inf  ;;  %v9198_v7 = vadd.f32 %v9184_v53, %v2773_v55 }
 0xa55   :  { %2823 = vmax.xlane.f32.xlu0 %v2822_v63 }
 0xa56   :  { %v2816_v9 = vsel %vm1607_vm4, %v9193_v62, -inf  ;;  %v9203_v1 = vadd.f32 %v9187_v4, %v2771_v33  ;;  %v2819_v10 = vsel %vm1607_vm4, %v9198_v7, -inf }
 0xa57   :  { %2817 = vmax.xlane.f32.xlu1 %v2816_v9 }
 0xa58   :  { %v2813_v27 = vsel %vm1607_vm4, %v9203_v1, -inf }
 0xa59   :  { %2820 = vmax.xlane.f32.xlu0 %v2819_v10 }
 0xa5d   :  { %2814 = vmax.xlane.f32.xlu0 %v2813_v27 }
 0xaaa   :  { %v7808_v28 = vpop.f32.mrf.mxu1 }
 0xaab   :  { %v2778_v29 = vmul.f32 0.35355338, %v7808_v28 }
 0xaac   :  { %v7801_v30 = vpop.f32.mrf.mxu0  ;;  %v2414_v34 = vpop.f32.mrf.mxu1 }
 0xaad   :  { %v9210_v2 = vadd.f32 %v9184_v53, %v2778_v29  ;;  %v2776_v17 = vmul.f32 0.35355338, %v7801_v30  ;;  %v2777_v18 = vmul.f32 0.35355338, %v2414_v34  ;;  %v9259_v29 = vpop.permute.xlu1 %3076 }
 0xaae   :  { %v2327_v36 = vpop.f32.mrf.mxu0 }
 0xaaf   :  { %v9213_v38 = vadd.f32 %v9187_v4, %v2776_v17  ;;  %v9216_v40 = vadd.f32 %v9184_v53, %v2777_v18  ;;  %v2775_v8 = vmul.f32 0.35355338, %v2327_v36  ;;  %v2834_v32 = vsel %vm1607_vm4, %v9210_v2, -inf }
 0xab0   :  { %2835 = vmax.xlane.f32.xlu0 %v2834_v32 }
 0xab1   :  { %v9221_v41 = vadd.f32 %v9187_v4, %v2775_v8  ;;  %v2831_v14 = vsel %vm1607_vm4, %v9216_v40, -inf  ;;  %v2828_v15 = vsel %vm1607_vm4, %v9213_v38, -inf  ;;  %v9263_v30 = vpop.permute.xlu1 %3252 }
 0xab2   :  { %2832 = vmax.xlane.f32.xlu1 %v2831_v14  ;;  %v7822_v16 = vpop.f32.mrf.mxu1 }
 0xab3   :  { %v2782_v11 = vmul.f32 0.35355338, %v7822_v16  ;;  %v2825_v49 = vsel %vm1607_vm4, %v9221_v41, -inf }
 0xab4   :  { %v7815_v13 = vpop.f32.mrf.mxu0  ;;  %2829 = vmax.xlane.f32.xlu0 %v2828_v15  ;;  %v2588_v42 = vpop.f32.mrf.mxu1 }
 0xab5   :  { %v9228_v44 = vadd.f32 %v9184_v53, %v2782_v11  ;;  %v2780_v46 = vmul.f32 0.35355338, %v7815_v13  ;;  %v2781_v48 = vmul.f32 0.35355338, %v2588_v42  ;;  %v9267_v34 = vpop.permute.xlu1 %3250 }
 0xab6   :  { %v2501_v50 = vpop.f32.mrf.mxu0  ;;  %2826 = vmax.xlane.f32.xlu1 %v2825_v49 }
 0xab7   :  { %v9233_v51 = vadd.f32 %v9187_v4, %v2780_v46  ;;  %v9236_v3 = vadd.f32 %v9184_v53, %v2781_v48  ;;  %v2779_v52 = vmul.f32 0.35355338, %v2501_v50  ;;  %v2846_v54 = vsel %vm1607_vm4, %v9228_v44, -inf }
 0xab8   :  { %2847 = vmax.xlane.f32.xlu0 %v2846_v54 }
 0xab9   :  { %v9241_v56 = vadd.f32 %v9187_v4, %v2779_v52  ;;  %v2843_v57 = vsel %vm1607_vm4, %v9236_v3, -inf  ;;  %v2840_v55 = vsel %vm1607_vm4, %v9233_v51, -inf  ;;  %v9271_v17 = vpop.permute.xlu1 %3426 }
 0xaba   :  { %2844 = vmax.xlane.f32.xlu1 %v2843_v57  ;;  %v7836_v58 = vpop.f32.mrf.mxu1 }
 0xabb   :  { %v2786_v59 = vmul.f32 0.35355338, %v7836_v58  ;;  %v2837_v9 = vsel %vm1607_vm4, %v9241_v56, -inf }
 0xabc   :  { %v7829_v61 = vpop.f32.mrf.mxu0  ;;  %2841 = vmax.xlane.f32.xlu0 %v2840_v55  ;;  %v2762_v32 = vpop.f32.mrf.mxu1 }
 0xabd   :  { %v9248_v33 = vadd.f32 %v9184_v53, %v2786_v59  ;;  %v2784_v63 = vmul.f32 0.35355338, %v7829_v61  ;;  %v2785_v16 = vmul.f32 0.35355338, %v2762_v32 }
 0xabe   :  { %2838 = vmax.xlane.f32.xlu1 %v2837_v9  ;;  %v2675_v11 = vpop.f32.mrf.mxu0 }
 0xabf   :  { %v9253_v10 = vadd.f32 %v9187_v4, %v2784_v63  ;;  %v2858_v27 = vsel %vm1607_vm4, %v9248_v33, -inf  ;;  %v2783_v13 = vmul.f32 0.35355338, %v2675_v11 }
 0xac0   :  { %2859 = vmax.xlane.f32.xlu0 %v2858_v27 }
 0xac1   :  { %v2852_v28 = vsel %vm1607_vm4, %v9253_v10, -inf }
 0xac4   :  { %2853 = vmax.xlane.f32.xlu0 %v2852_v28 }
 0xacf   :  { %3424 = vrot.lane.b32.xlu1 %v9074_v12, %s8641_s13 }
 0xada   :  { %3337 = vrot.lane.b32.xlu0 %v9078_v19, %s8641_s13  ;;  %v9276_v19 = vadd.f32 %v9184_v53, %v2785_v16 }
 0xade   :  { %3513 = vrot.lane.b32.xlu0 %v9086_v21, %s8641_s13  ;;  %v2824_v18 = vpop.xlane.xlu0 %2823  ;;  %v9279_v21 = vadd.f32 %v9187_v4, %v2783_v13 }
 0xadf   :  { %v2864_v36 = vsub.f32 %v9190_v60, %v2824_v18  ;;  %v2855_v60 = vsel %vm1607_vm4, %v9276_v19, -inf }
 0xae0   :  { %v2818_v8 = vpop.xlane.xlu1 %2817  ;;  %v2849_v42 = vsel %vm1607_vm4, %v9279_v21, -inf }
 0xae1   :  { %v2883_v14 = vmul.f32 1.442695, %v2864_v36  ;;  %v2862_v12 = vsub.f32 %v9193_v62, %v2818_v8 }
 0xae2   :  { %v2821_v50 = vpop.xlane.xlu0 %2820 }
 0xae3   :  { %8255 = vpow2.f32 %v2883_v14  ;;  %v2879_v15 = vmul.f32 1.442695, %v2862_v12  ;;  %v2863_v52 = vsub.f32 %v9198_v7, %v2821_v50 }
 0xae5   :  { %8257 = vpow2.f32 %v2879_v15  ;;  %v2881_v57 = vmul.f32 1.442695, %v2863_v52 }
 0xae6   :  { %v2815_v54 = vpop.xlane.xlu0 %2814 }
 0xae7   :  { %v2861_v58 = vsub.f32 %v9203_v1, %v2815_v54  ;;  %8259 = vpow2.f32 %v2881_v57 }
 0xae9   :  { %v2877_v59 = vmul.f32 1.442695, %v2861_v58 }
 0xaeb   :  { %8261 = vpow2.f32 %v2877_v59 }
 0xaf0   :  { %v9285_v62 = vpop.eup %8255 }
 0xaf1   :  { %v2918_v46 = vsel %vm1607_vm4, %v9285_v62, 0.0 }
 0xaf2   :  { %v9289_v48 = vpop.eup %8257 }
 0xaf3   :  { %2856 = vmax.xlane.f32.xlu1 %v2855_v60  ;;  %v2912_v49 = vsel %vm1607_vm4, %v9289_v48, 0.0 }
 0xaf4   :  { %v9297_v55 = vpop.eup %8259 }
 0xaf5   :  { %v2915_v61 = vsel %vm1607_vm4, %v9297_v55, 0.0 }
 0xaf7   :  { %2850 = vmax.xlane.f32.xlu1 %v2849_v42 }
 0xaf8   :  { %v9301_v63 = vpop.eup %8261 }
 0xafd   :  { %2919 = vadd.xlane.f32.xlu0 %v2918_v46 }
 0xb01   :  { %2913 = vadd.xlane.f32.xlu0 %v2912_v49 }
 0xb08   :  { %3600 = vrot.lane.b32.xlu1 %v9082_v20, %s8641_s13  ;;  %v2909_v20 = vsel %vm1607_vm4, %v9301_v63, 0.0 }
 0xb2c   :  { %2916 = vadd.xlane.f32.xlu1 %v2915_v61 }
 0xb30   :  { %2910 = vadd.xlane.f32.xlu1 %v2909_v20 }
 0xb39   :  { %v2836_v7 = vpop.xlane.xlu0 %2835 }
 0xb3a   :  { %v2868_v9 = vsub.f32 %v9210_v2, %v2836_v7 }
 0xb3b   :  { %v2833_v27 = vpop.xlane.xlu1 %2832 }
 0xb3c   :  { %v2891_v1 = vmul.f32 1.442695, %v2868_v9  ;;  %v2867_v28 = vsub.f32 %v9216_v40, %v2833_v27 }
 0xb3d   :  { %v2830_v18 = vpop.xlane.xlu0 %2829 }
 0xb3e   :  { %8263 = vpow2.f32 %v2891_v1  ;;  %v2889_v36 = vmul.f32 1.442695, %v2867_v28  ;;  %v2866_v8 = vsub.f32 %v9213_v38, %v2830_v18 }
 0xb3f   :  { %v2827_v32 = vpop.xlane.xlu1 %2826 }
 0xb40   :  { %8265 = vpow2.f32 %v2889_v36  ;;  %v2887_v14 = vmul.f32 1.442695, %v2866_v8  ;;  %v2865_v12 = vsub.f32 %v9221_v41, %v2827_v32 }
 0xb41   :  { %v2848_v16 = vpop.xlane.xlu0 %2847 }
 0xb42   :  { %8267 = vpow2.f32 %v2887_v14  ;;  %v2885_v11 = vmul.f32 1.442695, %v2865_v12  ;;  %v2872_v15 = vsub.f32 %v9228_v44, %v2848_v16 }
 0xb43   :  { %v2845_v2 = vpop.xlane.xlu1 %2844 }
 0xb44   :  { %8269 = vpow2.f32 %v2885_v11  ;;  %v2899_v13 = vmul.f32 1.442695, %v2872_v15  ;;  %v2871_v40 = vsub.f32 %v9236_v3, %v2845_v2 }
 0xb45   :  { %v2842_v60 = vpop.xlane.xlu0 %2841 }
 0xb46   :  { %8271 = vpow2.f32 %v2899_v13  ;;  %v2897_v42 = vmul.f32 1.442695, %v2871_v40  ;;  %v2870_v38 = vsub.f32 %v9233_v51, %v2842_v60 }
 0xb47   :  { %v2839_v46 = vpop.xlane.xlu1 %2838 }
 0xb48   :  { %8273 = vpow2.f32 %v2897_v42  ;;  %v2895_v49 = vmul.f32 1.442695, %v2870_v38  ;;  %v2869_v41 = vsub.f32 %v9241_v56, %v2839_v46 }
 0xb49   :  { %v2860_v50 = vpop.xlane.xlu0 %2859 }
 0xb4a   :  { %8275 = vpow2.f32 %v2895_v49  ;;  %v2893_v52 = vmul.f32 1.442695, %v2869_v41  ;;  %v2876_v44 = vsub.f32 %v9248_v33, %v2860_v50 }
 0xb4b   :  { %v9314_v54 = vpop.eup %8263  ;;  %v9357_v15 = vpop.permute.xlu1 %3424 }
 0xb4c   :  { %8277 = vpow2.f32 %v2893_v52  ;;  %v2907_v57 = vmul.f32 1.442695, %v2876_v44  ;;  %v2930_v3 = vsel %vm1607_vm4, %v9314_v54, 0.0 }
 0xb4d   :  { %v9318_v58 = vpop.eup %8265  ;;  %2931 = vadd.xlane.f32.xlu0 %v2930_v3  ;;  %v2854_v51 = vpop.xlane.xlu0 %2853 }
 0xb4e   :  { %8279 = vpow2.f32 %v2907_v57  ;;  %v2874_v59 = vsub.f32 %v9253_v10, %v2854_v51  ;;  %v2927_v56 = vsel %vm1607_vm4, %v9318_v58, 0.0 }
 0xb4f   :  { %v9323_v61 = vpop.eup %8267  ;;  %2928 = vadd.xlane.f32.xlu1 %v2927_v56 }
 0xb50   :  { %v2903_v33 = vmul.f32 1.442695, %v2874_v59  ;;  %v2924_v20 = vsel %vm1607_vm4, %v9323_v61, 0.0 }
 0xb51   :  { %v9327_v7 = vpop.eup %8269  ;;  %2925 = vadd.xlane.f32.xlu0 %v2924_v20 }
 0xb52   :  { %8281 = vpow2.f32 %v2903_v33  ;;  %v2921_v9 = vsel %vm1607_vm4, %v9327_v7, 0.0 }
 0xb53   :  { %v9331_v27 = vpop.eup %8271  ;;  %2922 = vadd.xlane.f32.xlu1 %v2921_v9 }
 0xb54   :  { %v2942_v10 = vsel %vm1607_vm4, %v9331_v27, 0.0 }
 0xb55   :  { %v9335_v1 = vpop.eup %8273  ;;  %2943 = vadd.xlane.f32.xlu0 %v2942_v10 }
 0xb56   :  { %v2939_v28 = vsel %vm1607_vm4, %v9335_v1, 0.0 }
 0xb57   :  { %v9339_v18 = vpop.eup %8275  ;;  %2940 = vadd.xlane.f32.xlu1 %v2939_v28 }
 0xb58   :  { %v2936_v36 = vsel %vm1607_vm4, %v9339_v18, 0.0 }
 0xb59   :  { %v9343_v8 = vpop.eup %8277  ;;  %2937 = vadd.xlane.f32.xlu0 %v2936_v36 }
 0xb5a   :  { %v2933_v32 = vsel %vm1607_vm4, %v9343_v8, 0.0 }
 0xb5b   :  { %v9347_v14 = vpop.eup %8279  ;;  %2934 = vadd.xlane.f32.xlu1 %v2933_v32 }
 0xb5c   :  { %v2954_v12 = vsel %vm1607_vm4, %v9347_v14, 0.0 }
 0xb5d   :  { %2955 = vadd.xlane.f32.xlu0 %v2954_v12 }
 0xb5f   :  { %v9351_v16 = vpop.eup %8281 }
 0xb60   :  { %v2948_v11 = vsel %vm1607_vm4, %v9351_v16, 0.0 }
 0xb61   :  { %2949 = vadd.xlane.f32.xlu0 %v2948_v11 }
 0xb77   :  { %3511 = vrot.lane.b32.xlu0 %v9094_v24, %s8641_s13 }
 0xb7c   :  { %v2857_v2 = vpop.xlane.xlu1 %2856 }
 0xb7d   :  { %v2875_v13 = vsub.f32 %v9276_v19, %v2857_v2  ;;  %v9369_v19 = vpop.permute.xlu0 %3337 }
 0xb7f   :  { %v2905_v40 = vmul.f32 1.442695, %v2875_v13 }
 0xb80   :  { %v2851_v60 = vpop.xlane.xlu1 %2850 }
 0xb81   :  { %8283 = vpow2.f32 %v2905_v40  ;;  %v2873_v42 = vsub.f32 %v9279_v21, %v2851_v60  ;;  %v9373_v21 = vpop.permute.xlu0 %3513 }
 0xb83   :  { %v2901_v38 = vmul.f32 1.442695, %v2873_v42 }
 0xb84   :  { %v9375_v52 = vpop.permute.xlu1 %3600 }
 0xb85   :  { %8285 = vpow2.f32 %v2901_v38 }
 0xb86   :  { %v2920_v50 = vpop.xlane.xlu0 %2919 }
 0xb8a   :  { %v2914_v44 = vpop.xlane.xlu0 %2913 }
 0xb8b   :  { %8287 = vrcp.f32 %v2914_v44 }
 0xb8e   :  { %v9361_v46 = vpop.eup %8283 }
 0xb8f   :  { %v2951_v49 = vsel %vm1607_vm4, %v9361_v46, 0.0 }
 0xb90   :  { %2952 = vadd.xlane.f32.xlu1 %v2951_v49 }
 0xb92   :  { %v9365_v41 = vpop.eup %8285 }
 0xb93   :  { %v2945_v24 = vsel %vm1607_vm4, %v9365_v41, 0.0 }
 0xb94   :  { %2946 = vadd.xlane.f32.xlu1 %v2945_v24 }
 0xb98   :  { %v8288_v51 = vpop.eup %8287 }
 0xb99   :  { %v2974_v20 = vmul.f32 %v8288_v51, %v9289_v48 }
 0xba5   :  { %3598 = vrot.lane.b32.xlu1 %v9090_v23, %s8641_s13 }
 0xbb5   :  { %v2917_v57 = vpop.xlane.xlu1 %2916 }
 0xbb6   :  { %8289 = vrcp.f32 %v2917_v57 }
 0xbb9   :  { %v2911_v3 = vpop.xlane.xlu1 %2910 }
 0xbba   :  { %8291 = vrcp.f32 %v2911_v3 }
 0xbbb   :  { %8293 = vrcp.f32 %v2920_v50 }
 0xbc3   :  { %v8290_v59 = vpop.eup %8289 }
 0xbc4   :  { %v2975_v9 = vmul.f32 %v8290_v59, %v9297_v55 }
 0xbc7   :  { %v8292_v56 = vpop.eup %8291 }
 0xbc8   :  { %v2973_v33 = vmul.f32 %v8292_v56, %v9301_v63  ;;  %v8294_v23 = vpop.eup %8293 }
 0xbc9   :  { %v2976_v10 = vmul.f32 %v8294_v23, %v9285_v62 }
 0xbca   :  { %7841 = vmatprep.mubr.msk.f32.mxu0 %vm1607_vm4, %v2973_v33 }
 0xbcb   :  { %7842 = vmatmul.mubr.msk.f32.vlgmr.msra.gmra.mxu0 %vm1607_vm4, %v2974_v20 }
 0xbcc   :  { %7845 = vmatpush3.msra.mxu0 %v9173_v43  ;;  %7848 = vmatprep.mubr.msk.f32.mxu0 %vm1607_vm4, %v2975_v9 }
 0xbcd   :  { %7846 = vmatprep.subr.mxu0 %v9259_v29 }
 0xbce   :  { %7847 = vmatpush3.msra.mxu0 %v9259_v29 }
 0xbcf   :  { %7858 = vmatprep.subr.mxu0 %v9263_v30  ;;  %7849 = vmatmul.mubr.msk.f32.vlgmr.msra.gmra.mxu0 %vm1607_vm4, %v2976_v10 }
 0xbd0   :  { %7859 = vmatpush3.msra.mxu0 %v9263_v30 }
 0xbd1   :  { %7860 = vmatprep.subr.mxu0 %v9267_v34 }
 0xbd2   :  { %7861 = vmatpush3.msra.mxu0 %v9267_v34 }
 0xbd3   :  { %7872 = vmatprep.subr.mxu0 %v9271_v17 }
 0xbd6   :  { %v2932_v43 = vpop.xlane.xlu0 %2931 }
 0xbd7   :  { %8295 = vrcp.f32 %v2932_v43 }
 0xbd8   :  { %v2929_v48 = vpop.xlane.xlu1 %2928 }
 0xbd9   :  { %8297 = vrcp.f32 %v2929_v48 }
 0xbda   :  { %v2926_v55 = vpop.xlane.xlu0 %2925 }
 0xbdb   :  { %8299 = vrcp.f32 %v2926_v55 }
 0xbdc   :  { %v2923_v62 = vpop.xlane.xlu1 %2922 }
 0xbdd   :  { %8301 = vrcp.f32 %v2923_v62  ;;  %v8198_v62 = vld [vmem:[#allocation10 + $0x8] ss:$20 sps:$4 sm:$0xff]  }
 0xbde   :  { %v2944_v29 = vpop.xlane.xlu0 %2943 }
 0xbdf   :  { %8303 = vrcp.f32 %v2944_v29 }
 0xbe0   :  { %v2941_v63 = vpop.xlane.xlu1 %2940 }
 0xbe1   :  { %8305 = vrcp.f32 %v2941_v63 }
 0xbe2   :  { %v2938_v28 = vpop.xlane.xlu0 %2937 }
 0xbe3   :  { %8307 = vrcp.f32 %v2938_v28 }
 0xbe4   :  { %v2935_v30 = vpop.xlane.xlu1 %2934  ;;  %v8296_v36 = vpop.eup %8295 }
 0xbe5   :  { %8309 = vrcp.f32 %v2935_v30  ;;  %v2980_v12 = vmul.f32 %v8296_v36, %v9314_v54  ;;  %v9436_v36 = vld [vmem:[%s10172_s6 + $0x3] ss:$0 sm:$0xff] }
 0xbe6   :  { %v8298_v34 = vpop.eup %8297  ;;  %v2956_v13 = vpop.xlane.xlu0 %2955 }
 0xbe7   :  { %v2979_v32 = vmul.f32 %v8298_v34, %v9318_v58  ;;  %8311 = vrcp.f32 %v2956_v13 }
 0xbe8   :  { %v8300_v11 = vpop.eup %8299 }
 0xbe9   :  { %7862 = vmatprep.mubr.msk.f32.mxu0 %vm1607_vm4, %v2979_v32  ;;  %v2978_v60 = vmul.f32 %v8300_v11, %v9323_v61 }
 0xbea   :  { %v8302_v2 = vpop.eup %8301  ;;  %7863 = vmatmul.mubr.msk.f32.vlgmr.msra.gmra.mxu0 %vm1607_vm4, %v2980_v12  ;;  %v2950_v61 = vpop.xlane.xlu0 %2949 }
 0xbeb   :  { %7873 = vmatpush3.msra.mxu0 %v9271_v17  ;;  %v2977_v40 = vmul.f32 %v8302_v2, %v9327_v7 }
 0xbec   :  { %7874 = vmatprep.subr.mxu0 %v9357_v15  ;;  %v8304_v42 = vpop.eup %8303 }
 0xbed   :  { %7875 = vmatpush3.msra.mxu0 %v9357_v15  ;;  %7855 = vmatprep.mubr.msk.f32.mxu1 %vm1607_vm4, %v2977_v40  ;;  %v2984_v58 = vmul.f32 %v8304_v42, %v9331_v27 }
 0xbee   :  { %v8306_v54 = vpop.eup %8305  ;;  %7886 = vmatprep.subr.mxu0 %v9375_v52  ;;  %7856 = vmatmul.mubr.msk.f32.vlgmr.msra.gmra.mxu1 %vm1607_vm4, %v2978_v60  ;;  %v3512_v27 = vpop.permute.xlu0 %3511 }
 0xbef   :  { %7866 = vmatpush3.msra.mxu1 %v9176_v47  ;;  %v2983_v17 = vmul.f32 %v8306_v54, %v9335_v1 }
 0xbf0   :  { %7867 = vmatprep.subr.mxu1 %v9369_v19  ;;  %v8308_v7 = vpop.eup %8307 }
 0xbf1   :  { %7868 = vmatpush3.msra.mxu1 %v9369_v19  ;;  %7876 = vmatprep.mubr.msk.f32.mxu0 %vm1607_vm4, %v2983_v17  ;;  %v2982_v1 = vmul.f32 %v8308_v7, %v9339_v18 }
 0xbf2   :  { %v8310_v15 = vpop.eup %8309  ;;  %7879 = vmatprep.subr.mxu1 %v9373_v21  ;;  %7877 = vmatmul.mubr.msk.f32.vlgmr.msra.gmra.mxu0 %vm1607_vm4, %v2984_v58 }
 0xbf3   :  { %7887 = vmatpush3.msra.mxu0 %v9375_v52  ;;  %v2981_v47 = vmul.f32 %v8310_v15, %v9343_v8 }
 0xbf4   :  { %v8312_v8 = vpop.eup %8311 }
 0xbf5   :  { %7869 = vmatprep.mubr.msk.f32.mxu1 %vm1607_vm4, %v2981_v47  ;;  %v2988_v50 = vmul.f32 %v8312_v8, %v9347_v14 }
 0xbf6   :  { %7870 = vmatmul.mubr.msk.f32.vlgmr.msra.gmra.mxu1 %vm1607_vm4, %v2982_v1 }
 0xbf7   :  { %7880 = vmatpush3.msra.mxu1 %v9373_v21  ;;  %v8197_v21 = vld [vmem:[#allocation10 + $0x30] ss:$20 sps:$4 sm:$0xff]  }
 0xbf8   :  { %7881 = vmatprep.subr.mxu1 %v3512_v27  ;;  %3764 = vrot.lane.b32.xlu0 %v8197_v21, %s8648_s20 }
 0xbf9   :  { %7882 = vmatpush3.msra.mxu1 %v3512_v27 }
 0xc19   :  { %v2953_v38 = vpop.xlane.xlu1 %2952 }
 0xc1a   :  { %8313 = vrcp.f32 %v2953_v38 }
 0xc1b   :  { %8315 = vrcp.f32 %v2950_v61 }
 0xc1d   :  { %v2947_v49 = vpop.xlane.xlu1 %2946 }
 0xc1e   :  { %8317 = vrcp.f32 %v2947_v49 }
 0xc21   :  { %v3599_v24 = vpop.permute.xlu1 %3598 }
 0xc22   :  { %7888 = vmatprep.subr.mxu0 %v3599_v24 }
 0xc23   :  { %7889 = vmatpush3.msra.mxu0 %v3599_v24 }
 0xc27   :  { %v8314_v18 = vpop.eup %8313 }
 0xc28   :  { %v2987_v19 = vmul.f32 %v8314_v18, %v9361_v46  ;;  %v8316_v52 = vpop.eup %8315 }
 0xc29   :  { %v2986_v3 = vmul.f32 %v8316_v52, %v9351_v16 }
 0xc2a   :  { %7890 = vmatprep.mubr.msk.f32.mxu0 %vm1607_vm4, %v2987_v19 }
 0xc2b   :  { %v8318_v44 = vpop.eup %8317  ;;  %7891 = vmatmul.mubr.msk.f32.vlgmr.msra.gmra.mxu0 %vm1607_vm4, %v2988_v50 }
 0xc2c   :  { %v2985_v57 = vmul.f32 %v8318_v44, %v9365_v41 }
 0xc2e   :  { %7883 = vmatprep.mubr.msk.f32.mxu1 %vm1607_vm4, %v2985_v57 }
 0xc2f   :  { %7884 = vmatmul.mubr.msk.f32.vlgmr.msra.gmra.mxu1 %vm1607_vm4, %v2986_v3 }
 0xc6a   :  { %v3765_v51 = vpop.permute.xlu0 %3764 }
 0xc6b   :  { %7893 = vmatprep.subr.bf16.mxu1 %v3765_v51 }
 0xc6c   :  { %7894 = vmatpush3.bf16.msra.mxu1 %v3765_v51 }
 0xc8b   :  { %v7843_v46 = vpop.f32.mrf.mxu0 }
 0xc8d   :  { %v3067_v14 = vpop.f32.mrf.mxu0 }
 0xc8f   :  { %v7850_v59 = vpop.f32.mrf.mxu0 }
 0xc91   :  { %v3154_v56 = vpop.f32.mrf.mxu0 }
 0xcaa   :  { %v7864_v33 = vpop.f32.mrf.mxu0 }
 0xcac   :  { %v3328_v20 = vpop.f32.mrf.mxu0 }
 0xcad   :  { %v8123_v23 = vpack.i.bf16 %v7864_v33, %v3328_v20 }
 0xcae   :  { %v7857_v9 = vpop.f32.mrf.mxu1 }
 0xcaf   :  { %8124 = vrot.lane.b32.xlu0 %v8123_v23, %s8634_s11 }
 0xcb0   :  { %v3241_v41 = vpop.f32.mrf.mxu1 }
 0xcb1   :  { %v8128_v10 = vpack.i.bf16 %v7857_v9, %v3241_v41 }
 0xcb2   :  { %v7878_v16 = vpop.f32.mrf.mxu0 }
 0xcb3   :  { %8129 = vrot.lane.b32.xlu1 %v8128_v10, %s8634_s11 }
 0xcb4   :  { %v3502_v43 = vpop.f32.mrf.mxu0 }
 0xcb5   :  { %v8133_v48 = vpack.i.bf16 %v7878_v16, %v3502_v43  ;;  %v8447_v43 = vld [vmem:[#allocation5] sm:$0xff] }
 0xcb6   :  { %v7871_v55 = vpop.f32.mrf.mxu1 }
 0xcb7   :  { %8134 = vrot.lane.b32.xlu0 %v8133_v48, %s8651_s1 }
 0xcb8   :  { %v3415_v29 = vpop.f32.mrf.mxu1 }
 0xcb9   :  { %v8138_v63 = vpack.i.bf16 %v7871_v55, %v3415_v29 }
 0xcbb   :  { %8139 = vrot.lane.b32.xlu1 %v8138_v63, %s8651_s1  ;;  %3762 = vrot.lane.b32.xlu0 %v8198_v62, %s8648_s20  ;;  %v8448_v63 = vld [vmem:[#allocation5 + $0x18] sm:$0xff] }
 0xcbf   :  { %3768 = vrot.lane.b32.xlu0 %v9436_v36, %s8641_s13 }
 0xceb   :  { %v7892_v28 = vpop.f32.mrf.mxu0 }
 0xced   :  { %v3676_v12 = vpop.f32.mrf.mxu0 }
 0xcee   :  { %v8148_v11 = vpack.i.bf16 %v7892_v28, %v3676_v12 }
 0xcef   :  { %v7885_v30 = vpop.f32.mrf.mxu1 }
 0xcf1   :  { %v3589_v34 = vpop.f32.mrf.mxu1 }
 0xcf2   :  { %v8143_v32 = vpack.i.bf16 %v7885_v30, %v3589_v34 }
 0xcf4   :  { %8144 = vrot.lane.b32.xlu1 %v8143_v32, %s8652_s22  ;;  %v8449_v32 = vld [vmem:[#allocation5 + $0x8] sm:$0xff] }
 0xcf8   :  { %8149 = vrot.lane.b32.xlu1 %v8148_v11, %s8652_s22  ;;  %v8450_v11 = vld [vmem:[#allocation5 + $0x10] sm:$0xff] }
 0xd21   :  { %v8125_v2 = vpop.permute.xlu0 %8124 }
 0xd22   :  { %v8127_v61 = vunpack.i.h.bf16 %v8125_v2  ;;  %v8126_v15 = vunpack.i.l.bf16 %v8125_v2 }
 0xd24   :  { %v3736_v57 = vsel %vm252_vm2, %v7850_v59, %v8127_v61  ;;  %v3735_v3 = vsel %vm252_vm2, %v3154_v56, %v8126_v15 }
 0xd25   :  { %v8130_v60 = vpop.permute.xlu1 %8129 }
 0xd26   :  { %v8132_v54 = vunpack.i.h.bf16 %v8130_v60  ;;  %v8131_v17 = vunpack.i.l.bf16 %v8130_v60 }
 0xd28   :  { %v3734_v1 = vsel %vm252_vm2, %v7843_v46, %v8132_v54  ;;  %v3733_v27 = vsel %vm252_vm2, %v3067_v14, %v8131_v17 }
 0xd29   :  { %v8135_v13 = vpop.permute.xlu0 %8134 }
 0xd2a   :  { %v8137_v24 = vunpack.i.h.bf16 %v8135_v13  ;;  %v8136_v8 = vunpack.i.l.bf16 %v8135_v13 }
 0xd2c   :  { %v3740_v14 = vsel %vm1607_vm4, %v3736_v57, %v8137_v24  ;;  %v3739_v33 = vsel %vm1607_vm4, %v3735_v3, %v8136_v8 }
 0xd2d   :  { %v3763_v40 = vpop.permute.xlu0 %3762  ;;  %v8140_v42 = vpop.permute.xlu1 %8139 }
 0xd2e   :  { %7895 = vmatprep.subr.bf16.mxu1 %v3763_v40  ;;  %v8142_v58 = vunpack.i.h.bf16 %v8140_v42  ;;  %v8141_v7 = vunpack.i.l.bf16 %v8140_v42 }
 0xd2f   :  { %7896 = vmatpush3.bf16.msra.mxu1 %v3763_v40 }
 0xd30   :  { %7909 = vmatprep.subr.bf16.mxu1 %v8643_v0  ;;  %v3737_v18 = vsel %vm1607_vm4, %v3733_v27, %v8141_v7  ;;  %v3738_v19 = vsel %vm1607_vm4, %v3734_v1, %v8142_v58 }
 0xd31   :  { %v3769_v56 = vpop.permute.xlu0 %3768 }
 0xd66   :  { %v8145_v47 = vpop.permute.xlu1 %8144 }
 0xd67   :  { %v8147_v38 = vunpack.i.h.bf16 %v8145_v47  ;;  %v8146_v49 = vunpack.i.l.bf16 %v8145_v47 }
 0xd69   :  { %v3741_v50 = vsel %vm1610_vm5, %v3737_v18, %v8146_v49  ;;  %v3742_v52 = vsel %vm1610_vm5, %v3738_v19, %v8147_v38 }
 0xd6a   :  { %v8150_v21 = vpop.permute.xlu1 %8149  ;;  %v3745_v44 = vpack.c.bf16 %v3742_v52, %v3741_v50 }
 0xd6b   :  { %v8152_v46 = vunpack.i.h.bf16 %v8150_v21  ;;  %v8151_v51 = vunpack.i.l.bf16 %v8150_v21 }
 0xd6c   :  { %7897 = vmatprep.mubr.msk.bf16.mxu1 %vm191_vm1, %v3745_v44 }
 0xd6d   :  { %v3744_v20 = vsel %vm1610_vm5, %v3740_v14, %v8152_v46  ;;  %v3743_v23 = vsel %vm1610_vm5, %v3739_v33, %v8151_v51 }
 0xd6e   :  { %v3746_v9 = vpack.c.bf16 %v3744_v20, %v3743_v23 }
 0xd70   :  { %7898 = vmatmul.mubr.msk.bf16.vlgmr.msra.gmra.mxu1 %vm191_vm1, %v3746_v9 }
 0xd71   :  { %7913 = vmatprep.mubr.msk.bf16.mxu1 %vm8644_vm0, %v8643_v0 }
 0xe30   :  { %v7899_v59 = vpop.f32.mrf.mxu1 }
 0xe31   :  { %v3820_v29 = vadd.f32 %v7899_v59, %v3769_v56 }
 0xe32   :  { %v3811_v41 = vpop.f32.mrf.mxu1 }
 0xe33   :  { %v3812_v10 = vadd.f32 %v3811_v41, %v3769_v56  ;;  %v3828_v2 = vadd.f32 %v8450_v11, %v3820_v29  ;;  %v8203_v11 = vld [vmem:[#allocation10 + $0x8] ss:$20 sps:$4 sm:$0xff]  }
 0xe34   :  { %v7900_v16 = vpop.f32.mrf.mxu1 }
 0xe35   :  { %v3826_v48 = vadd.f32 %v8447_v43, %v3812_v10  ;;  %v3823_v55 = vadd.f32 %v7900_v16, %v3769_v56  ;;  %v3837_v60 = vsel %vm191_vm1, %v3828_v2, 0.0 }
 0xe36   :  { %v3814_v62 = vpop.f32.mrf.mxu1 }
 0xe37   :  { %v3829_v28 = vadd.f32 %v8448_v63, %v3823_v55  ;;  %v3815_v30 = vadd.f32 %v3814_v62, %v3769_v56  ;;  %v3831_v34 = vsel %vm191_vm1, %v3826_v48, 0.0  ;;  %v8199_v63 = vld [vmem:[#allocation10 + $0x30] ss:$20 sps:$4 sm:$0xff]  }
 0xe38   :  { %3832 = vadd.xlane.f32.xlu1 %v3831_v34  ;;  %v8202_v34 = vld [vmem:[#allocation10 + $0x30] ss:$20 sps:$4 sm:$0xff]  }
 0xe39   :  { %v3827_v12 = vadd.f32 %v8449_v32, %v3815_v30  ;;  %v3840_v40 = vsel %vm191_vm1, %v3829_v28, 0.0  ;;  %v7356_v30 = vld [vmem:[%s10172_s6 + $0x5] ss:$0 sm:$0xff]  ;;  %v8201_v32 = vld [vmem:[#allocation10 + $0x34] ss:$20 sps:$4 sm:$0xff]  }
 0xe3b   :  { %v3834_v13 = vsel %vm191_vm1, %v3827_v12, 0.0 }
 0xe3c   :  { %3835 = vadd.xlane.f32.xlu0 %v3834_v13  ;;  %3841 = vadd.xlane.f32.xlu1 %v3840_v40 }
 0xe40   :  { %3838 = vadd.xlane.f32.xlu0 %v3837_v60 }
 0xec1   :  { %v3833_v42 = vpop.xlane.xlu1 %3832 }
 0xec2   :  { %v3843_v54 = vmul.f32 0.03125, %v3833_v42 }
 0xec4   :  { %v3847_v17 = vsub.f32 %v3826_v48, %v3843_v54 }
 0xec5   :  { %v3836_v58 = vpop.xlane.xlu0 %3835  ;;  %v3842_v7 = vpop.xlane.xlu1 %3841 }
 0xec6   :  { %v3844_v61 = vmul.f32 0.03125, %v3836_v58  ;;  %v3846_v15 = vmul.f32 0.03125, %v3842_v7  ;;  %v3851_v47 = vmul.f32 %v3847_v17, %v3847_v17 }
 0xec8   :  { %v3848_v1 = vsub.f32 %v3827_v12, %v3844_v61  ;;  %v3850_v27 = vsub.f32 %v3829_v28, %v3846_v15  ;;  %v3855_v38 = vsel %vm191_vm1, %v3851_v47, 0.0  ;;  %v8205_v12 = vld [vmem:[#allocation10 + $0xc] ss:$20 sps:$4 sm:$0xff]  }
 0xec9   :  { %v3839_v49 = vpop.xlane.xlu0 %3838  ;;  %3856 = vadd.xlane.f32.xlu0 %v3855_v38 }
 0xeca   :  { %v3845_v24 = vmul.f32 0.03125, %v3839_v49  ;;  %v3852_v8 = vmul.f32 %v3848_v1, %v3848_v1  ;;  %v3854_v50 = vmul.f32 %v3850_v27, %v3850_v27 }
 0xecc   :  { %v3849_v18 = vsub.f32 %v3828_v2, %v3845_v24  ;;  %v3858_v19 = vsel %vm191_vm1, %v3852_v8, 0.0  ;;  %v3864_v44 = vsel %vm191_vm1, %v3854_v50, 0.0  ;;  %v8206_v2 = vld [vmem:[#allocation10 + $0x8] ss:$20 sps:$4 sm:$0xff]  }
 0xecd   :  { %3859 = vadd.xlane.f32.xlu1 %v3858_v19 }
 0xece   :  { %v3853_v52 = vmul.f32 %v3849_v18, %v3849_v18 }
 0xed0   :  { %v3861_v21 = vsel %vm191_vm1, %v3853_v52, 0.0 }
 0xed1   :  { %3862 = vadd.xlane.f32.xlu0 %v3861_v21  ;;  %3865 = vadd.xlane.f32.xlu1 %v3864_v44 }
 0xf52   :  { %v3857_v57 = vpop.xlane.xlu0 %3856 }
 0xf53   :  { %v3867_v3 = vmul.f32 0.03125, %v3857_v57 }
 0xf55   :  { %v3871_v46 = vadd.f32 1e-06, %v3867_v3 }
 0xf56   :  { %v3860_v51 = vpop.xlane.xlu1 %3859 }
 0xf57   :  { %8319 = vrsqrt.f32 %v3871_v46  ;;  %v3868_v14 = vmul.f32 0.03125, %v3860_v51  ;;  %v9507_v46 = vld [vmem:[%s10172_s6 + $0x4] ss:$0 sm:$0xff] }
 0xf59   :  { %v3872_v59 = vadd.f32 1e-06, %v3868_v14 }
 0xf5a   :  { %v3863_v33 = vpop.xlane.xlu0 %3862  ;;  %v3866_v20 = vpop.xlane.xlu1 %3865 }
 0xf5b   :  { %v3869_v23 = vmul.f32 0.03125, %v3863_v33  ;;  %v3870_v9 = vmul.f32 0.03125, %v3866_v20 }
 0xf5d   :  { %v3873_v56 = vadd.f32 1e-06, %v3869_v23  ;;  %v3874_v41 = vadd.f32 1e-06, %v3870_v9 }
 0xf5f   :  { %8321 = vrsqrt.f32 %v3873_v56 }
 0xf60   :  { %8323 = vrsqrt.f32 %v3874_v41 }
 0xf61   :  { %8325 = vrsqrt.f32 %v3872_v59 }
 0xf64   :  { %v8320_v10 = vpop.eup %8319 }
 0xf65   :  { %v3879_v16 = vmul.f32 %v8320_v10, %v3847_v17 }
 0xf67   :  { %3893 = vrot.lane.b32.xlu0 %v3879_v16, %s8641_s13 }
 0xf6c   :  { %v8322_v43 = vpop.eup %8321 }
 0xf6d   :  { %v8324_v48 = vpop.eup %8323  ;;  %v3881_v55 = vmul.f32 %v8322_v43, %v3849_v18 }
 0xf6e   :  { %v8326_v62 = vpop.eup %8325  ;;  %v3882_v29 = vmul.f32 %v8324_v48, %v3850_v27 }
 0xf6f   :  { %3897 = vrot.lane.b32.xlu1 %v3881_v55, %s8641_s13  ;;  %v3880_v28 = vmul.f32 %v8326_v62, %v3848_v1 }
 0xf70   :  { %3899 = vrot.lane.b32.xlu0 %v3882_v29, %s8641_s13 }
 0xf73   :  { %3895 = vrot.lane.b32.xlu1 %v3880_v28, %s8641_s13 }
 0xf74   :  { %4043 = vrot.lane.b32.xlu0 %v8199_v63, %s8650_s21 }
 0xf77   :  { %3909 = vrot.lane.b32.xlu1 %v7356_v30, %s8648_s20 }
 0xf78   :  { %3955 = vrot.lane.b32.xlu0 %v8202_v34, %s8641_s13 }
 0xf7b   :  { %4045 = vrot.lane.b32.xlu1 %v8201_v32, %s8650_s21 }
 0xf7c   :  { %4041 = vrot.lane.b32.xlu0 %v8205_v12, %s8650_s21 }
 0xf7f   :  { %4039 = vrot.lane.b32.xlu1 %v8203_v11, %s8650_s21 }
 0xf83   :  { %3953 = vrot.lane.b32.xlu1 %v8206_v2, %s8641_s13 }
 0xfd9   :  { %v3894_v13 = vpop.permute.xlu0 %3893 }
 0xfda   :  { %v3905_v17 = vmul.f32 %v7356_v30, %v3894_v13 }
 0xfe1   :  { %v3898_v40 = vpop.permute.xlu1 %3897 }
 0xfe2   :  { %v3900_v60 = vpop.permute.xlu0 %3899  ;;  %v3907_v7 = vmul.f32 %v7356_v30, %v3898_v40 }
 0xfe3   :  { %v3908_v58 = vmul.f32 %v7356_v30, %v3900_v60 }
 0xfe5   :  { %v3896_v42 = vpop.permute.xlu1 %3895 }
 0xfe6   :  { %v4044_v54 = vpop.permute.xlu0 %4043  ;;  %v3906_v61 = vmul.f32 %v7356_v30, %v3896_v42 }
 0xfe9   :  { %v3910_v15 = vpop.permute.xlu1 %3909 }
 0xfea   :  { %v9481_v47 = vadd.f32 %v3910_v15, %v3907_v7  ;;  %v9483_v1 = vadd.f32 %v3910_v15, %v3908_v58  ;;  %v9485_v27 = vadd.f32 %v3910_v15, %v3905_v17  ;;  %v9487_v38 = vadd.f32 %v3910_v15, %v3906_v61  ;;  %v3956_v49 = vpop.permute.xlu0 %3955 }
 0xfeb   :  { %7901 = vmatprep.subr.bf16.mxu0 %v3956_v49 }
 0xfec   :  { %v3931_v24 = vpack.c.bf16 %v9483_v1, %v9481_v47  ;;  %v3930_v8 = vpack.c.bf16 %v9487_v38, %v9485_v27  ;;  %7902 = vmatpush3.bf16.msra.mxu0 %v3956_v49 }
 0xfed   :  { %v4046_v18 = vpop.permute.xlu1 %4045 }
 0xfee   :  { %3941 = vrot.lane.b32.xlu1 %v3931_v24, %s8641_s13  ;;  %3939 = vrot.lane.b32.xlu0 %v3930_v8, %s8641_s13  ;;  %v4049_v19 = vsel %vm191_vm1, %v4044_v54, %v4046_v18  ;;  %v4042_v50 = vpop.permute.xlu0 %4041 }
 0xfef   :  { %7910 = vmatpush3.bf16.msra.mxu1 %v4049_v19 }
 0xff0   :  { %7911 = vmatprep.subr.bf16.mxu1 %v8643_v0 }
 0xff1   :  { %v4040_v52 = vpop.permute.xlu1 %4039 }
 0xff2   :  { %v4048_v21 = vsel %vm191_vm1, %v4040_v52, %v4042_v50  ;;  %3959 = vrot.lane.b32.xlu0 %v9436_v36, %s8650_s21 }
 0xff3   :  { %7912 = vmatpush3.bf16.msra.mxu1 %v4048_v21 }
 0xff5   :  { %v3954_v44 = vpop.permute.xlu1 %3953 }
 0xff6   :  { %7914 = vmatmul.mubr.msk.bf16.vlgmr.msra.gmra.mxu1 %vm191_vm1, %v8747_v5  ;;  %7903 = vmatprep.subr.bf16.mxu0 %v3954_v44 }
 0xff7   :  { %7904 = vmatpush3.bf16.msra.mxu0 %v3954_v44 }
0x1060   :  { %v3940_v57 = vpop.permute.xlu0 %3939  ;;  %v3942_v3 = vpop.permute.xlu1 %3941 }
0x1061   :  { %7905 = vmatprep.mubr.msk.bf16.mxu0 %vm191_vm1, %v3940_v57 }
0x1062   :  { %7906 = vmatmul.mubr.msk.bf16.vlgmr.msra.gmra.mxu0 %vm191_vm1, %v3942_v3 }
0x1064   :  { %v3960_v23 = vpop.permute.xlu0 %3959 }
0x10b6   :  { %v4086_v51 = vpop.f32.mrf.mxu1 }
0x10b7   :  { %v9510_v36 = vadd.f32 %v9507_v46, %v4086_v51 }
0x10b8   :  { %v7915_v14 = vpop.f32.mrf.mxu1 }
0x10b9   :  { %4123 = vrot.lane.b32.xlu1 %v9510_v36, %s8646_s18  ;;  %7917 = vmatprep.subr.msk.mxu0 %vm252_vm2, %v9510_v36 }
0x10ba   :  { %v4089_v5 = vpop.f32.mrf.mxu1  ;;  %7918 = vmatpush3.xpose.msk.msra.mxu0 %vm252_vm2, %v9510_v36 }
0x10bb   :  { %v9519_v33 = vadd.f32 %v9507_v46, %v4089_v5 }
0x10bc   :  { %v7916_v20 = vpop.f32.mrf.mxu1 }
0x10bd   :  { %4125 = vrot.lane.b32.xlu0 %v9519_v33, %s8646_s18  ;;  %7922 = vmatprep.subr.msk.mxu0 %vm252_vm2, %v9519_v33 }
0x10c1   :  { %4127 = vrot.lane.b32.xlu0 %v9510_v36, %s8645_s17 }
0x10c5   :  { %4129 = vrot.lane.b32.xlu0 %v9519_v33, %s8645_s17 }
0x10c9   :  { %4131 = vrot.lane.b32.xlu0 %v9510_v36, %s8647_s19 }
0x10cd   :  { %4133 = vrot.lane.b32.xlu0 %v9519_v33, %s8647_s19 }
0x1122   :  { %v7907_v9 = vpop.f32.mrf.mxu0 }
0x1123   :  { %v4011_v59 = vadd.f32 %v7907_v9, %v3960_v23 }
0x1124   :  { %v4002_v56 = vpop.f32.mrf.mxu0 }
0x1125   :  { %v4003_v41 = vadd.f32 %v4002_v56, %v3960_v23  ;;  %4101 = vrot.lane.b32.xlu1 %v4011_v59, %s8646_s18 }
0x1126   :  { %v7908_v10 = vpop.f32.mrf.mxu0 }
0x1127   :  { %7919 = vmatprep.mubr.msk.f32.mxu0 %vm252_vm2, %v4003_v41  ;;  %v4014_v55 = vadd.f32 %v7908_v10, %v3960_v23 }
0x1128   :  { %v4005_v16 = vpop.f32.mrf.mxu0 }
0x1129   :  { %v4006_v43 = vadd.f32 %v4005_v16, %v3960_v23  ;;  %4109 = vrot.lane.b32.xlu1 %v4011_v59, %s8645_s17 }
0x112b   :  { %4099 = vrot.lane.b32.xlu0 %v4006_v43, %s8646_s18  ;;  %7920 = vmatmul.mubr.msk.f32.vlgmr.msra.gmra.mxu0 %vm252_vm2, %v4006_v43  ;;  %v9538_v48 = vpop.permute.xlu1 %4123 }
0x112c   :  { %7923 = vmatpush3.xpose.msk.msra.mxu0 %vm252_vm2, %v9519_v33  ;;  %7924 = vmatprep.mubr.msk.f32.mxu0 %vm252_vm2, %v4011_v59 }
0x112d   :  { %4097 = vrot.lane.b32.xlu1 %v4003_v41, %s8646_s18  ;;  %7927 = vmatprep.subr.msk.mxu1 %vm252_vm2, %v9538_v48 }
0x112e   :  { %7928 = vmatpush3.xpose.msk.msra.mxu1 %vm252_vm2, %v9538_v48 }
0x112f   :  { %4107 = vrot.lane.b32.xlu0 %v4006_v43, %s8645_s17  ;;  %7925 = vmatmul.mubr.msk.f32.vlgmr.msra.gmra.mxu0 %vm252_vm2, %v4014_v55  ;;  %v9550_v62 = vpop.permute.xlu0 %4125 }
0x1130   :  { %7932 = vmatprep.subr.msk.mxu0 %vm252_vm2, %v9550_v62 }
0x1131   :  { %4105 = vrot.lane.b32.xlu1 %v4003_v41, %s8645_s17  ;;  %7933 = vmatpush3.xpose.msk.msra.mxu0 %vm252_vm2, %v9550_v62 }
0x1133   :  { %4115 = vrot.lane.b32.xlu0 %v4006_v43, %s8647_s19  ;;  %v9558_v29 = vpop.permute.xlu0 %4127 }
0x1134   :  { %7937 = vmatprep.subr.msk.mxu1 %vm252_vm2, %v9558_v29 }
0x1135   :  { %4113 = vrot.lane.b32.xlu1 %v4003_v41, %s8647_s19 }
0x1137   :  { %4119 = vrot.lane.b32.xlu0 %v4014_v55, %s8647_s19  ;;  %v9564_v63 = vpop.permute.xlu0 %4129 }
0x1138   :  { %7942 = vmatprep.subr.msk.mxu0 %vm252_vm2, %v9564_v63 }
0x1139   :  { %4103 = vrot.lane.b32.xlu1 %v4014_v55, %s8646_s18 }
0x113b   :  { %v9571_v28 = vpop.permute.xlu0 %4131 }
0x113d   :  { %4111 = vrot.lane.b32.xlu1 %v4014_v55, %s8645_s17 }
0x113f   :  { %v9574_v34 = vpop.permute.xlu0 %4133 }
0x1141   :  { %4117 = vrot.lane.b32.xlu1 %v4011_v59, %s8647_s19 }
0x1197   :  { %v4102_v30 = vpop.permute.xlu1 %4101 }
0x1198   :  { %7934 = vmatprep.mubr.msk.f32.mxu0 %vm252_vm2, %v4102_v30 }
0x119b   :  { %v4110_v32 = vpop.permute.xlu1 %4109 }
0x119d   :  { %v4100_v12 = vpop.permute.xlu0 %4099 }
0x119f   :  { %v4098_v11 = vpop.permute.xlu1 %4097 }
0x11a0   :  { %7929 = vmatprep.mubr.msk.f32.mxu1 %vm252_vm2, %v4098_v11 }
0x11a1   :  { %7930 = vmatmul.mubr.msk.f32.vlgmr.msra.gmra.mxu1 %vm252_vm2, %v4100_v12  ;;  %v4108_v2 = vpop.permute.xlu0 %4107 }
0x11a2   :  { %7938 = vmatpush3.xpose.msk.msra.mxu1 %vm252_vm2, %v9558_v29 }
0x11a3   :  { %7947 = vmatprep.subr.msk.mxu1 %vm252_vm2, %v9571_v28  ;;  %v4106_v13 = vpop.permute.xlu1 %4105 }
0x11a4   :  { %7939 = vmatprep.mubr.msk.f32.mxu1 %vm252_vm2, %v4106_v13 }
0x11a5   :  { %7940 = vmatmul.mubr.msk.f32.vlgmr.msra.gmra.mxu1 %vm252_vm2, %v4108_v2  ;;  %v4116_v60 = vpop.permute.xlu0 %4115 }
0x11a6   :  { %7948 = vmatpush3.xpose.msk.msra.mxu1 %vm252_vm2, %v9571_v28 }
0x11a7   :  { %v4114_v40 = vpop.permute.xlu1 %4113 }
0x11a8   :  { %7949 = vmatprep.mubr.msk.f32.mxu1 %vm252_vm2, %v4114_v40 }
0x11a9   :  { %7950 = vmatmul.mubr.msk.f32.vlgmr.msra.gmra.mxu1 %vm252_vm2, %v4116_v60  ;;  %v4120_v58 = vpop.permute.xlu0 %4119 }
0x11ab   :  { %v4104_v42 = vpop.permute.xlu1 %4103 }
0x11ac   :  { %7935 = vmatmul.mubr.msk.f32.vlgmr.msra.gmra.mxu0 %vm252_vm2, %v4104_v42 }
0x11ad   :  { %7943 = vmatpush3.xpose.msk.msra.mxu0 %vm252_vm2, %v9564_v63  ;;  %7944 = vmatprep.mubr.msk.f32.mxu0 %vm252_vm2, %v4110_v32 }
0x11ae   :  { %7952 = vmatprep.subr.msk.mxu0 %vm252_vm2, %v9574_v34 }
0x11af   :  { %v4112_v54 = vpop.permute.xlu1 %4111 }
0x11b0   :  { %7945 = vmatmul.mubr.msk.f32.vlgmr.msra.gmra.mxu0 %vm252_vm2, %v4112_v54 }
0x11b1   :  { %7953 = vmatpush3.xpose.msk.msra.mxu0 %vm252_vm2, %v9574_v34 }
0x11b3   :  { %v4118_v17 = vpop.permute.xlu1 %4117 }
0x11b4   :  { %7954 = vmatprep.mubr.msk.f32.mxu0 %vm252_vm2, %v4118_v17 }
0x11b5   :  { %7955 = vmatmul.mubr.msk.f32.vlgmr.msra.gmra.mxu0 %vm252_vm2, %v4120_v58 }
0x11eb   :  { %v7921_v7 = vpop.f32.mrf.mxu0 }
0x11ec   :  { %v4784_v61 = vmul.f32 0.35355338, %v7921_v7 }
0x11ed   :  { %v4207_v15 = vpop.f32.mrf.mxu0 }
0x11ee   :  { %v9600_v49 = vadd.f32 %v4784_v61, %v8866_v39  ;;  %v4783_v24 = vmul.f32 0.35355338, %v4207_v15 }
0x11ef   :  { %v7926_v8 = vpop.f32.mrf.mxu0 }
0x11f0   :  { %v9603_v18 = vadd.f32 %v4783_v24, %v8866_v39  ;;  %v4786_v19 = vmul.f32 0.35355338, %v7926_v8  ;;  %v4818_v50 = vsel %vm252_vm2, %v9600_v49, -inf }
0x11f1   :  { %4819 = vmax.xlane.f32.xlu0 %v4818_v50  ;;  %v4288_v52 = vpop.f32.mrf.mxu0 }
0x11f2   :  { %v9608_v21 = vadd.f32 %v4786_v19, %v8871_v45  ;;  %v4785_v44 = vmul.f32 0.35355338, %v4288_v52  ;;  %v4815_v57 = vsel %vm252_vm2, %v9603_v18, -inf }
0x11f3   :  { %4816 = vmax.xlane.f32.xlu1 %v4815_v57 }
0x11f4   :  { %v9613_v3 = vadd.f32 %v4785_v44, %v8871_v45  ;;  %v4824_v51 = vsel %vm252_vm2, %v9608_v21, -inf }
0x11f6   :  { %v4821_v14 = vsel %vm252_vm2, %v9613_v3, -inf }
0x11f7   :  { %4825 = vmax.xlane.f32.xlu1 %v4824_v51  ;;  %4822 = vmax.xlane.f32.xlu0 %v4821_v14 }
0x1261   :  { %v7931_v5 = vpop.f32.mrf.mxu1 }
0x1262   :  { %v4788_v9 = vmul.f32 0.35355338, %v7931_v5 }
0x1263   :  { %v4369_v20 = vpop.f32.mrf.mxu1 }
0x1264   :  { %v4787_v41 = vmul.f32 0.35355338, %v4369_v20  ;;  %v9623_v30 = vadd.f32 %v4788_v9, %v8866_v39 }
0x1265   :  { %v7941_v43 = vpop.f32.mrf.mxu1 }
0x1266   :  { %v9631_v13 = vadd.f32 %v4787_v41, %v8866_v39  ;;  %v4792_v54 = vmul.f32 0.35355338, %v7941_v43  ;;  %v4830_v7 = vsel %vm252_vm2, %v9623_v30, -inf }
0x1267   :  { %v4531_v42 = vpop.f32.mrf.mxu1 }
0x1268   :  { %v4791_v61 = vmul.f32 0.35355338, %v4531_v42  ;;  %v4827_v24 = vsel %vm252_vm2, %v9631_v13, -inf  ;;  %v9646_v50 = vadd.f32 %v4792_v54, %v8866_v39 }
0x1269   :  { %v7951_v8 = vpop.f32.mrf.mxu1 }
0x126a   :  { %v9651_v57 = vadd.f32 %v4791_v61, %v8866_v39  ;;  %v4796_v20 = vmul.f32 0.35355338, %v7951_v8  ;;  %v4842_v9 = vsel %vm252_vm2, %v9646_v50, -inf }
0x126b   :  { %v4693_v5 = vpop.f32.mrf.mxu1 }
0x126c   :  { %v7936_v23 = vpop.f32.mrf.mxu0  ;;  %v4839_v41 = vsel %vm252_vm2, %v9651_v57, -inf }
0x126d   :  { %v4790_v59 = vmul.f32 0.35355338, %v7936_v23 }
0x126e   :  { %v4450_v56 = vpop.f32.mrf.mxu0 }
0x126f   :  { %v9620_v10 = vadd.f32 %v4790_v59, %v8871_v45  ;;  %v4789_v16 = vmul.f32 0.35355338, %v4450_v56  ;;  %v4795_v59 = vmul.f32 0.35355338, %v4693_v5 }
0x1270   :  { %v7946_v55 = vpop.f32.mrf.mxu0 }
0x1271   :  { %v9626_v32 = vadd.f32 %v4789_v16, %v8871_v45  ;;  %v4794_v12 = vmul.f32 0.35355338, %v7946_v55  ;;  %v4836_v11 = vsel %vm252_vm2, %v9620_v10, -inf  ;;  %v9666_v16 = vadd.f32 %v4796_v20, %v8866_v39 }
0x1272   :  { %4837 = vmax.xlane.f32.xlu1 %v4836_v11  ;;  %v4612_v2 = vpop.f32.mrf.mxu0  ;;  %v9671_v55 = vadd.f32 %v4795_v59, %v8866_v39 }
0x1273   :  { %v4793_v40 = vmul.f32 0.35355338, %v4612_v2  ;;  %v4833_v60 = vsel %vm252_vm2, %v9626_v32, -inf  ;;  %v9636_v17 = vadd.f32 %v4794_v12, %v8871_v45  ;;  %v4854_v11 = vsel %vm252_vm2, %v9666_v16, -inf }
0x1274   :  { %4834 = vmax.xlane.f32.xlu0 %v4833_v60  ;;  %v4851_v2 = vsel %vm252_vm2, %v9671_v55, -inf }
0x1275   :  { %v7956_v58 = vpop.f32.mrf.mxu0  ;;  %v9641_v15 = vadd.f32 %v4793_v40, %v8871_v45  ;;  %v4848_v44 = vsel %vm252_vm2, %v9636_v17, -inf }
0x1276   :  { %4831 = vmax.xlane.f32.xlu1 %v4830_v7  ;;  %v4798_v52 = vmul.f32 0.35355338, %v7956_v58 }
0x1277   :  { %v4774_v19 = vpop.f32.mrf.mxu0  ;;  %v4845_v14 = vsel %vm252_vm2, %v9641_v15, -inf }
0x1278   :  { %4828 = vmax.xlane.f32.xlu0 %v4827_v24  ;;  %v4797_v51 = vmul.f32 0.35355338, %v4774_v19  ;;  %v9656_v23 = vadd.f32 %v4798_v52, %v8871_v45 }
0x127a   :  { %4849 = vmax.xlane.f32.xlu1 %v4848_v44  ;;  %v9661_v56 = vadd.f32 %v4797_v51, %v8871_v45  ;;  %v4860_v43 = vsel %vm252_vm2, %v9656_v23, -inf  ;;  %v4820_v60 = vpop.xlane.xlu0 %4819 }
0x127b   :  { %v4864_v42 = vsub.f32 %v9600_v49, %v4820_v60 }
0x127c   :  { %4846 = vmax.xlane.f32.xlu0 %v4845_v14  ;;  %v4857_v12 = vsel %vm252_vm2, %v9661_v56, -inf  ;;  %v4817_v40 = vpop.xlane.xlu1 %4816 }
0x127d   :  { %v4863_v54 = vsub.f32 %v9603_v18, %v4817_v40  ;;  %v4881_v58 = vmul.f32 1.442695, %v4864_v42 }
0x127e   :  { %4843 = vmax.xlane.f32.xlu1 %v4842_v9 }
0x127f   :  { %v4879_v7 = vmul.f32 1.442695, %v4863_v54  ;;  %8327 = vpow2.f32 %v4881_v58 }
0x1280   :  { %4840 = vmax.xlane.f32.xlu0 %v4839_v41 }
0x1281   :  { %8329 = vpow2.f32 %v4879_v7 }
0x1282   :  { %4861 = vmax.xlane.f32.xlu1 %v4860_v43 }
0x1284   :  { %4858 = vmax.xlane.f32.xlu0 %v4857_v12 }
0x1286   :  { %4855 = vmax.xlane.f32.xlu1 %v4854_v11 }
0x1288   :  { %4852 = vmax.xlane.f32.xlu0 %v4851_v2 }
0x1297   :  { %5075 = vrot.lane.b32.xlu1 %v9519_v33, %s8648_s20  ;;  %v4826_v33 = vpop.xlane.xlu1 %4825 }
0x129b   :  { %5159 = vrot.lane.b32.xlu1 %v9538_v48, %s8648_s20  ;;  %v4823_v48 = vpop.xlane.xlu0 %4822 }
0x129e   :  { %4991 = vrot.lane.b32.xlu0 %v9510_v36, %s8648_s20  ;;  %v4866_v36 = vsub.f32 %v9608_v21, %v4826_v33 }
0x129f   :  { %5327 = vrot.lane.b32.xlu1 %v9558_v29, %s8648_s20  ;;  %v4865_v29 = vsub.f32 %v9613_v3, %v4823_v48 }
0x12a0   :  { %v4885_v61 = vmul.f32 1.442695, %v4866_v36 }
0x12a2   :  { %5243 = vrot.lane.b32.xlu0 %v9550_v62, %s8648_s20  ;;  %v4883_v62 = vmul.f32 1.442695, %v4865_v29  ;;  %8331 = vpow2.f32 %v4885_v61 }
0x12a4   :  { %8333 = vpow2.f32 %v4883_v62 }
0x12a6   :  { %5411 = vrot.lane.b32.xlu0 %v9564_v63, %s8648_s20  ;;  %v9695_v63 = vpop.eup %8327 }
0x12a7   :  { %v9697_v24 = vpop.eup %8329  ;;  %v4914_v49 = vsel %vm252_vm2, %v9695_v63, 0.0 }
0x12a8   :  { %v4911_v21 = vsel %vm252_vm2, %v9697_v24, 0.0 }
0x12af   :  { %v9701_v18 = vpop.eup %8331 }
0x12b0   :  { %v4920_v8 = vsel %vm252_vm2, %v9701_v18, 0.0 }
0x12b1   :  { %v9705_v3 = vpop.eup %8333 }
0x12b2   :  { %v4917_v19 = vsel %vm252_vm2, %v9705_v3, 0.0 }
0x12c3   :  { %4915 = vadd.xlane.f32.xlu1 %v4914_v49 }
0x12c5   :  { %4912 = vadd.xlane.f32.xlu0 %v4911_v21 }
0x12c7   :  { %4921 = vadd.xlane.f32.xlu1 %v4920_v8 }
0x12c9   :  { %4918 = vadd.xlane.f32.xlu0 %v4917_v19 }
0x12fb   :  { %v4838_v52 = vpop.xlane.xlu1 %4837 }
0x12fc   :  { %v4870_v44 = vsub.f32 %v9620_v10, %v4838_v52 }
0x12fd   :  { %v4835_v51 = vpop.xlane.xlu0 %4834 }
0x12fe   :  { %v4893_v14 = vmul.f32 1.442695, %v4870_v44  ;;  %v4869_v5 = vsub.f32 %v9626_v32, %v4835_v51 }
0x12ff   :  { %v4832_v20 = vpop.xlane.xlu1 %4831 }
0x1300   :  { %8335 = vpow2.f32 %v4893_v14  ;;  %v4891_v9 = vmul.f32 1.442695, %v4869_v5  ;;  %v4868_v59 = vsub.f32 %v9623_v30, %v4832_v20 }
0x1301   :  { %v4829_v41 = vpop.xlane.xlu0 %4828 }
0x1302   :  { %8337 = vpow2.f32 %v4891_v9  ;;  %v4889_v43 = vmul.f32 1.442695, %v4868_v59  ;;  %v4867_v12 = vsub.f32 %v9631_v13, %v4829_v41 }
0x1303   :  { %v4850_v11 = vpop.xlane.xlu1 %4849 }
0x1304   :  { %8339 = vpow2.f32 %v4889_v43  ;;  %v4887_v2 = vmul.f32 1.442695, %v4867_v12  ;;  %v4874_v40 = vsub.f32 %v9636_v17, %v4850_v11 }
0x1305   :  { %v4847_v10 = vpop.xlane.xlu0 %4846 }
0x1306   :  { %8341 = vpow2.f32 %v4887_v2  ;;  %v4901_v60 = vmul.f32 1.442695, %v4874_v40  ;;  %v4873_v32 = vsub.f32 %v9641_v15, %v4847_v10 }
0x1307   :  { %v4844_v42 = vpop.xlane.xlu1 %4843 }
0x1308   :  { %8343 = vpow2.f32 %v4901_v60  ;;  %v4899_v33 = vmul.f32 1.442695, %v4873_v32  ;;  %v4872_v30 = vsub.f32 %v9646_v50, %v4844_v42 }
0x1309   :  { %v4841_v54 = vpop.xlane.xlu0 %4840 }
0x130a   :  { %8345 = vpow2.f32 %v4899_v33  ;;  %v4897_v48 = vmul.f32 1.442695, %v4872_v30  ;;  %v4871_v13 = vsub.f32 %v9651_v57, %v4841_v54 }
0x130b   :  { %v4862_v58 = vpop.xlane.xlu1 %4861 }
0x130c   :  { %8347 = vpow2.f32 %v4897_v48  ;;  %v4895_v36 = vmul.f32 1.442695, %v4871_v13  ;;  %v4878_v17 = vsub.f32 %v9656_v23, %v4862_v58 }
0x130d   :  { %v9720_v7 = vpop.eup %8335  ;;  %v4859_v29 = vpop.xlane.xlu0 %4858 }
0x130e   :  { %8349 = vpow2.f32 %v4895_v36  ;;  %v4909_v15 = vmul.f32 1.442695, %v4878_v17  ;;  %v4877_v61 = vsub.f32 %v9661_v56, %v4859_v29  ;;  %v4932_v50 = vsel %vm252_vm2, %v9720_v7, 0.0 }
0x130f   :  { %v9725_v62 = vpop.eup %8337  ;;  %4933 = vadd.xlane.f32.xlu1 %v4932_v50  ;;  %v4856_v49 = vpop.xlane.xlu1 %4855 }
0x1310   :  { %8351 = vpow2.f32 %v4909_v15  ;;  %v4907_v57 = vmul.f32 1.442695, %v4877_v61  ;;  %v4876_v21 = vsub.f32 %v9666_v16, %v4856_v49  ;;  %v4929_v23 = vsel %vm252_vm2, %v9725_v62, 0.0 }
0x1311   :  { %v9730_v8 = vpop.eup %8339  ;;  %v4853_v19 = vpop.xlane.xlu0 %4852  ;;  %4930 = vadd.xlane.f32.xlu0 %v4929_v23 }
0x1312   :  { %8353 = vpow2.f32 %v4907_v57  ;;  %v4905_v56 = vmul.f32 1.442695, %v4876_v21  ;;  %v4875_v52 = vsub.f32 %v9671_v55, %v4853_v19  ;;  %v4926_v44 = vsel %vm252_vm2, %v9730_v8, 0.0 }
0x1313   :  { %v9735_v51 = vpop.eup %8341  ;;  %4927 = vadd.xlane.f32.xlu1 %v4926_v44  ;;  %v5076_v14 = vpop.permute.xlu1 %5075 }
0x1314   :  { %8355 = vpow2.f32 %v4905_v56  ;;  %v4903_v16 = vmul.f32 1.442695, %v4875_v52  ;;  %7962 = vmatprep.subr.mxu0 %v5076_v14  ;;  %v4923_v5 = vsel %vm252_vm2, %v9735_v51, 0.0 }
0x1315   :  { %v9739_v20 = vpop.eup %8343  ;;  %v4992_v9 = vpop.permute.xlu0 %4991  ;;  %4924 = vadd.xlane.f32.xlu0 %v4923_v5  ;;  %7963 = vmatpush3.msra.mxu0 %v5076_v14 }
0x1316   :  { %8357 = vpow2.f32 %v4903_v16  ;;  %7957 = vmatprep.subr.mxu1 %v4992_v9  ;;  %v4944_v55 = vsel %vm252_vm2, %v9739_v20, 0.0 }
0x1317   :  { %v9743_v59 = vpop.eup %8345  ;;  %7958 = vmatpush3.msra.mxu1 %v4992_v9  ;;  %4945 = vadd.xlane.f32.xlu1 %v4944_v55  ;;  %v5160_v41 = vpop.permute.xlu1 %5159 }
0x1318   :  { %7967 = vmatprep.subr.mxu1 %v5160_v41  ;;  %v4941_v43 = vsel %vm252_vm2, %v9743_v59, 0.0 }
0x1319   :  { %v9747_v12 = vpop.eup %8347  ;;  %v5244_v11 = vpop.permute.xlu0 %5243  ;;  %4942 = vadd.xlane.f32.xlu0 %v4941_v43 }
0x131a   :  { %7972 = vmatprep.subr.mxu0 %v5244_v11  ;;  %v4938_v2 = vsel %vm252_vm2, %v9747_v12, 0.0 }
0x131b   :  { %v9751_v40 = vpop.eup %8349  ;;  %4939 = vadd.xlane.f32.xlu1 %v4938_v2  ;;  %v9775_v58 = vpop.permute.xlu1 %5327 }
0x131c   :  { %v4935_v10 = vsel %vm252_vm2, %v9751_v40, 0.0 }
0x131d   :  { %v9755_v60 = vpop.eup %8351  ;;  %4936 = vadd.xlane.f32.xlu0 %v4935_v10  ;;  %v5412_v36 = vpop.permute.xlu0 %5411 }
0x131e   :  { %v4956_v32 = vsel %vm252_vm2, %v9755_v60, 0.0 }
0x131f   :  { %v9759_v42 = vpop.eup %8353  ;;  %4957 = vadd.xlane.f32.xlu1 %v4956_v32 }
0x1320   :  { %v4953_v33 = vsel %vm252_vm2, %v9759_v42, 0.0 }
0x1321   :  { %v9763_v30 = vpop.eup %8355  ;;  %4954 = vadd.xlane.f32.xlu0 %v4953_v33 }
0x1322   :  { %v4950_v54 = vsel %vm252_vm2, %v9763_v30, 0.0 }
0x1323   :  { %v9767_v48 = vpop.eup %8357  ;;  %4951 = vadd.xlane.f32.xlu1 %v4950_v54 }
0x1324   :  { %v4947_v13 = vsel %vm252_vm2, %v9767_v48, 0.0 }
0x1325   :  { %4948 = vadd.xlane.f32.xlu0 %v4947_v13 }
0x1334   :  { %5495 = vrot.lane.b32.xlu1 %v9571_v28, %s8648_s20 }
0x133b   :  { %5579 = vrot.lane.b32.xlu0 %v9574_v34, %s8648_s20 }
0x134c   :  { %v4916_v17 = vpop.xlane.xlu1 %4915 }
0x134d   :  { %8359 = vrcp.f32 %v4916_v17 }
0x134e   :  { %v4913_v29 = vpop.xlane.xlu0 %4912 }
0x134f   :  { %8361 = vrcp.f32 %v4913_v29 }
0x1350   :  { %v4922_v15 = vpop.xlane.xlu1 %4921 }
0x1351   :  { %8363 = vrcp.f32 %v4922_v15 }
0x1352   :  { %v4919_v61 = vpop.xlane.xlu0 %4918 }
0x1353   :  { %8365 = vrcp.f32 %v4919_v61 }
0x135a   :  { %v8360_v50 = vpop.eup %8359 }
0x135b   :  { %v4976_v28 = vmul.f32 %v8360_v50, %v9695_v63 }
0x135c   :  { %v8362_v49 = vpop.eup %8361 }
0x135d   :  { %v4975_v57 = vmul.f32 %v8362_v49, %v9697_v24 }
0x135e   :  { %v8364_v21 = vpop.eup %8363 }
0x135f   :  { %7959 = vmatprep.mubr.msk.f32.mxu1 %vm252_vm2, %v4975_v57  ;;  %v4978_v19 = vmul.f32 %v8364_v21, %v9701_v18 }
0x1360   :  { %v8366_v34 = vpop.eup %8365  ;;  %7960 = vmatmul.mubr.msk.f32.vlgmr.msra.gmra.mxu1 %vm252_vm2, %v4976_v28  ;;  %v8207_v28 = vld [vmem:[#allocation10 + $0x34] ss:$20 sps:$4 sm:$0xff]  }
0x1361   :  { %7968 = vmatpush3.msra.mxu1 %v5160_v41  ;;  %v4977_v23 = vmul.f32 %v8366_v34, %v9705_v3  ;;  %5737 = vrot.lane.b32.xlu1 %v8207_v28, %s8648_s20 }
0x1362   :  { %7977 = vmatprep.subr.mxu1 %v9775_v58 }
0x1363   :  { %7964 = vmatprep.mubr.msk.f32.mxu0 %vm252_vm2, %v4977_v23 }
0x1364   :  { %7965 = vmatmul.mubr.msk.f32.vlgmr.msra.gmra.mxu0 %vm252_vm2, %v4978_v19 }
0x1365   :  { %7973 = vmatpush3.msra.mxu0 %v5244_v11 }
0x1366   :  { %7982 = vmatprep.subr.mxu0 %v5412_v36 }
0x1398   :  { %v4934_v63 = vpop.xlane.xlu1 %4933 }
0x1399   :  { %8367 = vrcp.f32 %v4934_v63 }
0x139a   :  { %v4931_v24 = vpop.xlane.xlu0 %4930 }
0x139b   :  { %8369 = vrcp.f32 %v4931_v24 }
0x139c   :  { %v4928_v56 = vpop.xlane.xlu1 %4927 }
0x139d   :  { %8371 = vrcp.f32 %v4928_v56 }
0x139e   :  { %v4925_v52 = vpop.xlane.xlu0 %4924 }
0x139f   :  { %8373 = vrcp.f32 %v4925_v52 }
0x13a0   :  { %v4946_v44 = vpop.xlane.xlu1 %4945 }
0x13a1   :  { %8375 = vrcp.f32 %v4946_v44 }
0x13a2   :  { %v4943_v3 = vpop.xlane.xlu0 %4942 }
0x13a3   :  { %8377 = vrcp.f32 %v4943_v3 }
0x13a4   :  { %v4940_v14 = vpop.xlane.xlu1 %4939 }
0x13a5   :  { %8379 = vrcp.f32 %v4940_v14 }
0x13a6   :  { %v4937_v18 = vpop.xlane.xlu0 %4936  ;;  %v8368_v16 = vpop.eup %8367 }
0x13a7   :  { %8381 = vrcp.f32 %v4937_v18  ;;  %v4982_v43 = vmul.f32 %v8368_v16, %v9720_v7  ;;  %v8208_v18 = vld [vmem:[#allocation10 + $0xc] ss:$20 sps:$4 sm:$0xff]  }
0x13a8   :  { %v8370_v5 = vpop.eup %8369  ;;  %v4958_v9 = vpop.xlane.xlu1 %4957 }
0x13a9   :  { %v4981_v55 = vmul.f32 %v8370_v5, %v9725_v62  ;;  %8383 = vrcp.f32 %v4958_v9 }
0x13aa   :  { %v4955_v41 = vpop.xlane.xlu0 %4954  ;;  %v8372_v11 = vpop.eup %8371 }
0x13ab   :  { %8385 = vrcp.f32 %v4955_v41  ;;  %7974 = vmatprep.mubr.msk.f32.mxu0 %vm252_vm2, %v4981_v55  ;;  %v4980_v54 = vmul.f32 %v8372_v11, %v9730_v8 }
0x13ac   :  { %v8374_v2 = vpop.eup %8373  ;;  %7975 = vmatmul.mubr.msk.f32.vlgmr.msra.gmra.mxu0 %vm252_vm2, %v4982_v43  ;;  %v4952_v10 = vpop.xlane.xlu1 %4951 }
0x13ad   :  { %7983 = vmatpush3.msra.mxu0 %v5412_v36  ;;  %v4979_v32 = vmul.f32 %v8374_v2, %v9735_v51  ;;  %8387 = vrcp.f32 %v4952_v10  ;;  %v8451_v10 = vld [vmem:[%s10172_s6 + $0x1] ss:$0 sm:$0xff] }
0x13ae   :  { %v4949_v33 = vpop.xlane.xlu0 %4948  ;;  %v8376_v62 = vpop.eup %8375 }
0x13af   :  { %8389 = vrcp.f32 %v4949_v33  ;;  %7969 = vmatprep.mubr.msk.f32.mxu1 %vm252_vm2, %v4979_v32  ;;  %v4986_v51 = vmul.f32 %v8376_v62, %v9739_v20 }
0x13b0   :  { %v8378_v7 = vpop.eup %8377  ;;  %7970 = vmatmul.mubr.msk.f32.vlgmr.msra.gmra.mxu1 %vm252_vm2, %v4980_v54  ;;  %v5496_v13 = vpop.permute.xlu1 %5495 }
0x13b1   :  { %7978 = vmatpush3.msra.mxu1 %v9775_v58  ;;  %v4985_v17 = vmul.f32 %v8378_v7, %v9743_v59 }
0x13b2   :  { %7987 = vmatprep.subr.mxu1 %v5496_v13  ;;  %v5580_v36 = vpop.permute.xlu0 %5579  ;;  %v8380_v29 = vpop.eup %8379 }
0x13b3   :  { %7984 = vmatprep.mubr.msk.f32.mxu0 %vm252_vm2, %v4985_v17  ;;  %7992 = vmatprep.subr.mxu0 %v5580_v36  ;;  %v4984_v61 = vmul.f32 %v8380_v29, %v9747_v12 }
0x13b4   :  { %v8382_v8 = vpop.eup %8381  ;;  %7985 = vmatmul.mubr.msk.f32.vlgmr.msra.gmra.mxu0 %vm252_vm2, %v4986_v51 }
0x13b5   :  { %7993 = vmatpush3.msra.mxu0 %v5580_v36  ;;  %v4983_v15 = vmul.f32 %v8382_v8, %v9751_v40 }
0x13b6   :  { %v8384_v50 = vpop.eup %8383 }
0x13b7   :  { %7979 = vmatprep.mubr.msk.f32.mxu1 %vm252_vm2, %v4983_v15  ;;  %v4990_v58 = vmul.f32 %v8384_v50, %v9755_v60 }
0x13b8   :  { %v8386_v59 = vpop.eup %8385  ;;  %7980 = vmatmul.mubr.msk.f32.vlgmr.msra.gmra.mxu1 %vm252_vm2, %v4984_v61 }
0x13b9   :  { %7988 = vmatpush3.msra.mxu1 %v5496_v13  ;;  %v4989_v20 = vmul.f32 %v8386_v59, %v9759_v42 }
0x13ba   :  { %v8388_v49 = vpop.eup %8387 }
0x13bb   :  { %7994 = vmatprep.mubr.msk.f32.mxu0 %vm252_vm2, %v4989_v20  ;;  %v4988_v12 = vmul.f32 %v8388_v49, %v9763_v30 }
0x13bc   :  { %v8390_v57 = vpop.eup %8389  ;;  %7995 = vmatmul.mubr.msk.f32.vlgmr.msra.gmra.mxu0 %vm252_vm2, %v4990_v58 }
0x13bd   :  { %v4987_v40 = vmul.f32 %v8390_v57, %v9767_v48 }
0x13bf   :  { %7989 = vmatprep.mubr.msk.f32.mxu1 %vm252_vm2, %v4987_v40 }
0x13c0   :  { %7990 = vmatmul.mubr.msk.f32.vlgmr.msra.gmra.mxu1 %vm252_vm2, %v4988_v12 }
0x13d3   :  { %v5738_v42 = vpop.permute.xlu1 %5737 }
0x13d4   :  { %7997 = vmatprep.subr.bf16.mxu1 %v5738_v42 }
0x13d5   :  { %7998 = vmatpush3.bf16.msra.mxu1 %v5738_v42 }
0x1420   :  { %v7961_v21 = vpop.f32.mrf.mxu1 }
0x1422   :  { %v5066_v19 = vpop.f32.mrf.mxu1 }
0x1424   :  { %v7966_v60 = vpop.f32.mrf.mxu0 }
0x1426   :  { %v5150_v34 = vpop.f32.mrf.mxu0 }
0x146c   :  { %v7976_v23 = vpop.f32.mrf.mxu0 }
0x146e   :  { %v5318_v63 = vpop.f32.mrf.mxu0 }
0x146f   :  { %v8153_v24 = vpack.i.bf16 %v7976_v23, %v5318_v63 }
0x1470   :  { %v7971_v48 = vpop.f32.mrf.mxu1 }
0x1471   :  { %8154 = vrot.lane.b32.xlu1 %v8153_v24, %s8634_s11 }
0x1472   :  { %v5234_v30 = vpop.f32.mrf.mxu1 }
0x1473   :  { %v8158_v56 = vpack.i.bf16 %v7971_v48, %v5234_v30 }
0x1474   :  { %v7986_v52 = vpop.f32.mrf.mxu0 }
0x1475   :  { %8159 = vrot.lane.b32.xlu0 %v8158_v56, %s8634_s11 }
0x1476   :  { %v5486_v44 = vpop.f32.mrf.mxu0 }
0x1477   :  { %v8163_v3 = vpack.i.bf16 %v7986_v52, %v5486_v44 }
0x1478   :  { %v7981_v14 = vpop.f32.mrf.mxu1 }
0x1479   :  { %8164 = vrot.lane.b32.xlu1 %v8163_v3, %s8651_s1 }
0x147a   :  { %v5402_v16 = vpop.f32.mrf.mxu1 }
0x147b   :  { %v8168_v5 = vpack.i.bf16 %v7981_v14, %v5402_v16 }
0x147c   :  { %v7996_v9 = vpop.f32.mrf.mxu0 }
0x147d   :  { %8169 = vrot.lane.b32.xlu0 %v8168_v5, %s8651_s1  ;;  %5735 = vrot.lane.b32.xlu1 %v8208_v18, %s8648_s20 }
0x147e   :  { %v5654_v11 = vpop.f32.mrf.mxu0 }
0x147f   :  { %v8178_v2 = vpack.i.bf16 %v7996_v9, %v5654_v11 }
0x1480   :  { %v7991_v55 = vpop.f32.mrf.mxu1 }
0x1481   :  { %5741 = vrot.lane.b32.xlu1 %v9507_v46, %s8641_s13 }
0x1482   :  { %v5570_v41 = vpop.f32.mrf.mxu1 }
0x1483   :  { %v8173_v43 = vpack.i.bf16 %v7991_v55, %v5570_v41 }
0x1485   :  { %8174 = vrot.lane.b32.xlu0 %v8173_v43, %s8652_s22 }
0x1489   :  { %8179 = vrot.lane.b32.xlu0 %v8178_v2, %s8652_s22 }
0x148d   :  { %1823 = vrot.lane.b32.xlu0 %v8451_v10, %s8641_s13 }
0x14e3   :  { %v8155_v32 = vpop.permute.xlu1 %8154 }
0x14e4   :  { %v8157_v51 = vunpack.i.h.bf16 %v8155_v32  ;;  %v8156_v29 = vunpack.i.l.bf16 %v8155_v32 }
0x14e6   :  { %v5714_v23 = vsel %vm252_vm2, %v7966_v60, %v8157_v51 }
0x14e7   :  { %v8160_v54 = vpop.permute.xlu0 %8159 }
0x14e8   :  { %v8162_v7 = vunpack.i.h.bf16 %v8160_v54  ;;  %v8161_v13 = vunpack.i.l.bf16 %v8160_v54 }
0x14ea   :  { %v5712_v15 = vsel %vm252_vm2, %v7961_v21, %v8162_v7  ;;  %v5711_v61 = vsel %vm252_vm2, %v5066_v19, %v8161_v13  ;;  %v5713_v21 = vsel %vm252_vm2, %v5150_v34, %v8156_v29 }
0x14eb   :  { %v8165_v33 = vpop.permute.xlu1 %8164 }
0x14ec   :  { %v8167_v20 = vunpack.i.h.bf16 %v8165_v33  ;;  %v8166_v58 = vunpack.i.l.bf16 %v8165_v33 }
0x14ee   :  { %v5717_v24 = vsel %vm1607_vm4, %v5713_v21, %v8166_v58  ;;  %v5718_v48 = vsel %vm1607_vm4, %v5714_v23, %v8167_v20 }
0x14ef   :  { %v5736_v62 = vpop.permute.xlu1 %5735  ;;  %v8170_v46 = vpop.permute.xlu0 %8169 }
0x14f0   :  { %7999 = vmatprep.subr.bf16.mxu1 %v5736_v62  ;;  %v8172_v17 = vunpack.i.h.bf16 %v8170_v46  ;;  %v8171_v36 = vunpack.i.l.bf16 %v8170_v46 }
0x14f1   :  { %8000 = vmatpush3.bf16.msra.mxu1 %v5736_v62 }
0x14f2   :  { %v5716_v49 = vsel %vm1607_vm4, %v5712_v15, %v8172_v17  ;;  %v5715_v57 = vsel %vm1607_vm4, %v5711_v61, %v8171_v36 }
0x14f3   :  { %v5742_v3 = vpop.permute.xlu1 %5741 }
0x14f7   :  { %v8175_v8 = vpop.permute.xlu0 %8174 }
0x14f8   :  { %v8177_v50 = vunpack.i.h.bf16 %v8175_v8  ;;  %v8176_v59 = vunpack.i.l.bf16 %v8175_v8 }
0x14fa   :  { %v5720_v40 = vsel %vm1610_vm5, %v5716_v49, %v8177_v50  ;;  %v5719_v12 = vsel %vm1610_vm5, %v5715_v57, %v8176_v59 }
0x14fb   :  { %v8180_v28 = vpop.permute.xlu0 %8179  ;;  %v5723_v42 = vpack.c.bf16 %v5720_v40, %v5719_v12 }
0x14fc   :  { %v8182_v63 = vunpack.i.h.bf16 %v8180_v28  ;;  %v8181_v19 = vunpack.i.l.bf16 %v8180_v28 }
0x14fd   :  { %8001 = vmatprep.mubr.msk.bf16.mxu1 %vm191_vm1, %v5723_v42 }
0x14fe   :  { %v5721_v30 = vsel %vm1610_vm5, %v5717_v24, %v8181_v19  ;;  %v5722_v56 = vsel %vm1610_vm5, %v5718_v48, %v8182_v63 }
0x14ff   :  { %v5724_v52 = vpack.c.bf16 %v5722_v56, %v5721_v30  ;;  %v1824_v9 = vpop.permute.xlu0 %1823 }
0x1500   :  { %v1865_v55 = vadd.f32 %v9125_v31, %v1824_v9  ;;  %v1868_v43 = vadd.f32 %v9127_v35, %v1824_v9 }
0x1501   :  { %8002 = vmatmul.mubr.msk.bf16.vlgmr.msra.gmra.mxu1 %vm191_vm1, %v5724_v52 }
0x15c1   :  { %v8003_v44 = vpop.f32.mrf.mxu1 }
0x15c2   :  { %v5793_v16 = vadd.f32 %v8003_v44, %v5742_v3 }
0x15c3   :  { %v5784_v60 = vpop.f32.mrf.mxu1 }
0x15c4   :  { %v5785_v14 = vadd.f32 %v5784_v60, %v5742_v3 }
0x15c5   :  { %v8004_v34 = vpop.f32.mrf.mxu1 }
0x15c6   :  { %5803 = vrot.lane.b32.xlu1 %v5785_v14, %s8641_s13  ;;  %v5796_v41 = vadd.f32 %v8004_v34, %v5742_v3 }
0x15c7   :  { %v5787_v18 = vpop.f32.mrf.mxu1 }
0x15c8   :  { %v5788_v5 = vadd.f32 %v5787_v18, %v5742_v3 }
0x15ca   :  { %5805 = vrot.lane.b32.xlu0 %v5788_v5, %s8641_s13  ;;  %5807 = vrot.lane.b32.xlu1 %v5793_v16, %s8641_s13 }
0x15ce   :  { %5809 = vrot.lane.b32.xlu0 %v5796_v41, %s8641_s13  ;;  %1873 = vrot.lane.b32.xlu1 %v1865_v55, %s8648_s20 }
0x15d2   :  { %1875 = vrot.lane.b32.xlu0 %v1868_v43, %s8648_s20 }
0x1638   :  { %v5804_v11 = vpop.permute.xlu1 %5803 }
0x1639   :  { %v5815_v2 = vadd.f32 %v5804_v11, %v9485_v27 }
0x163b   :  { %5824 = vrot.lane.b32.xlu1 %v5815_v2, %s8641_s13 }
0x163c   :  { %v5806_v10 = vpop.permute.xlu0 %5805  ;;  %v5808_v32 = vpop.permute.xlu1 %5807 }
0x163d   :  { %v5816_v33 = vadd.f32 %v5806_v10, %v9487_v38  ;;  %v5817_v31 = vadd.f32 %v5808_v32, %v9481_v47 }
0x163f   :  { %5826 = vrot.lane.b32.xlu0 %v5816_v33, %s8641_s13  ;;  %5828 = vrot.lane.b32.xlu1 %v5817_v31, %s8641_s13 }
0x1640   :  { %v5810_v54 = vpop.permute.xlu0 %5809  ;;  %v1874_v62 = vpop.permute.xlu1 %1873 }
0x1641   :  { %v5818_v35 = vadd.f32 %v5810_v54, %v9483_v1  ;;  %v1879_v46 = vadd.f32 %v1874_v62, %v9002_v25 }
0x1643   :  { %5830 = vrot.lane.b32.xlu0 %v5818_v35, %s8641_s13  ;;  %1883 = vrot.lane.b32.xlu1 %v1879_v46, %s8650_s21 }
0x1644   :  { %v1876_v27 = vpop.permute.xlu0 %1875 }
0x1645   :  { %v1880_v7 = vadd.f32 %v1876_v27, %v9005_v26 }
0x1647   :  { %1885 = vrot.lane.b32.xlu0 %v1880_v7, %s8650_s21 }
0x16ad   :  { %v5825_v47 = vpop.permute.xlu1 %5824 }
0x16ae   :  { %v5836_v38 = vsel %vm191_vm1, %v5825_v47, 0.0 }
0x16af   :  { %5837 = vadd.xlane.f32.xlu1 %v5836_v38 }
0x16b1   :  { %v5827_v13 = vpop.permute.xlu0 %5826  ;;  %v5829_v17 = vpop.permute.xlu1 %5828 }
0x16b2   :  { %v5839_v36 = vsel %vm191_vm1, %v5827_v13, 0.0  ;;  %v5842_v51 = vsel %vm191_vm1, %v5829_v17, 0.0 }
0x16b3   :  { %5840 = vadd.xlane.f32.xlu0 %v5839_v36 }
0x16b5   :  { %v5831_v1 = vpop.permute.xlu0 %5830  ;;  %v1884_v29 = vpop.permute.xlu1 %1883 }
0x16b6   :  { %v5845_v25 = vsel %vm191_vm1, %v5831_v1, 0.0  ;;  %v1889_v15 = vsel %vm191_vm1, %v1884_v29, 0.0 }
0x16b7   :  { %5846 = vadd.xlane.f32.xlu1 %v5845_v25  ;;  %5843 = vadd.xlane.f32.xlu0 %v5842_v51 }
0x16b9   :  { %v1886_v26 = vpop.permute.xlu0 %1885 }
0x16ba   :  { %v1892_v8 = vsel %vm191_vm1, %v1886_v26, 0.0 }
0x16bb   :  { %1893 = vadd.xlane.f32.xlu1 %v1892_v8  ;;  %1890 = vadd.xlane.f32.xlu0 %v1889_v15 }
0x1738   :  { %v5838_v61 = vpop.xlane.xlu1 %5837 }
0x1739   :  { %v5848_v50 = vmul.f32 0.03125, %v5838_v61 }
0x173b   :  { %v9865_v59 = vsub.f32 %v5815_v2, %v5848_v50 }
0x173c   :  { %v5841_v20 = vpop.xlane.xlu0 %5840 }
0x173d   :  { %v5849_v58 = vmul.f32 0.03125, %v5841_v20  ;;  %v5856_v49 = vmul.f32 %v9865_v59, %v9865_v59 }
0x173f   :  { %v9869_v57 = vsub.f32 %v5816_v33, %v5849_v58  ;;  %5864 = vrot.lane.b32.xlu0 %v5856_v49, %s8641_s13  ;;  %v8209_v33 = vld [vmem:[#allocation10 + $0x34] ss:$20 sps:$4 sm:$0xff]  }
0x1740   :  { %v5844_v40 = vpop.xlane.xlu0 %5843  ;;  %v5847_v12 = vpop.xlane.xlu1 %5846 }
0x1741   :  { %v5850_v28 = vmul.f32 0.03125, %v5844_v40  ;;  %v5851_v42 = vmul.f32 0.03125, %v5847_v12  ;;  %v5857_v23 = vmul.f32 %v9869_v57, %v9869_v57 }
0x1743   :  { %v9874_v21 = vsub.f32 %v5817_v31, %v5850_v28  ;;  %v9876_v63 = vsub.f32 %v5818_v35, %v5851_v42  ;;  %5866 = vrot.lane.b32.xlu1 %v5857_v23, %s8641_s13  ;;  %v9911_v28 = vld [vmem:[%s10172_s6 + $0x6] ss:$0 sm:$0xff]  ;;  %v8210_v23 = vld [vmem:[#allocation10 + $0xc] ss:$20 sps:$4 sm:$0xff]  }
0x1744   :  { %v1891_v19 = vpop.xlane.xlu0 %1890  ;;  %v1894_v24 = vpop.xlane.xlu1 %1893 }
0x1745   :  { %v1895_v48 = vmul.f32 0.03125, %v1891_v19  ;;  %v1896_v30 = vmul.f32 0.03125, %v1894_v24  ;;  %v5858_v56 = vmul.f32 %v9874_v21, %v9874_v21  ;;  %v5859_v52 = vmul.f32 %v9876_v63, %v9876_v63 }
0x1747   :  { %v9883_v44 = vsub.f32 %v1879_v46, %v1895_v48  ;;  %v9885_v3 = vsub.f32 %v1880_v7, %v1896_v30  ;;  %5868 = vrot.lane.b32.xlu1 %v5858_v56, %s8641_s13  ;;  %5870 = vrot.lane.b32.xlu0 %v5859_v52, %s8641_s13 }
0x1749   :  { %v1899_v60 = vmul.f32 %v9883_v44, %v9883_v44  ;;  %v1900_v14 = vmul.f32 %v9885_v3, %v9885_v3 }
0x174b   :  { %1903 = vrot.lane.b32.xlu1 %v1899_v60, %s8650_s21  ;;  %1905 = vrot.lane.b32.xlu0 %v1900_v14, %s8650_s21 }
0x17b1   :  { %v5865_v34 = vpop.permute.xlu0 %5864 }
0x17b2   :  { %v5876_v18 = vsel %vm191_vm1, %v5865_v34, 0.0 }
0x17b3   :  { %5877 = vadd.xlane.f32.xlu1 %v5876_v18 }
0x17b5   :  { %v5867_v16 = vpop.permute.xlu1 %5866 }
0x17b6   :  { %v5879_v5 = vsel %vm191_vm1, %v5867_v16, 0.0 }
0x17b7   :  { %5880 = vadd.xlane.f32.xlu0 %v5879_v5 }
0x17b9   :  { %v5871_v9 = vpop.permute.xlu0 %5870  ;;  %v5869_v55 = vpop.permute.xlu1 %5868 }
0x17ba   :  { %v5882_v41 = vsel %vm191_vm1, %v5869_v55, 0.0  ;;  %v5885_v43 = vsel %vm191_vm1, %v5871_v9, 0.0  ;;  %v8452_v9 = vld [vmem:[%s10172_s6 + $0x2] ss:$0 sm:$0xff] }
0x17bb   :  { %5886 = vadd.xlane.f32.xlu1 %v5885_v43  ;;  %5883 = vadd.xlane.f32.xlu0 %v5882_v41 }
0x17bd   :  { %v1906_v11 = vpop.permute.xlu0 %1905  ;;  %v1904_v2 = vpop.permute.xlu1 %1903 }
0x17be   :  { %v1909_v10 = vsel %vm191_vm1, %v1904_v2, 0.0  ;;  %v1912_v32 = vsel %vm191_vm1, %v1906_v11, 0.0  ;;  %v8215_v2 = vld [vmem:[#allocation10 + $0x38] ss:$20 sps:$4 sm:$0xff]  }
0x17bf   :  { %1913 = vadd.xlane.f32.xlu1 %v1912_v32  ;;  %1910 = vadd.xlane.f32.xlu0 %v1909_v10 }
0x17d5   :  { %5974 = vrot.lane.b32.xlu0 %v8209_v33, %s8641_s13  ;;  %v8211_v33 = vld [vmem:[#allocation11 + $0x18] sm:$0xff]  }
0x183c   :  { %v5878_v31 = vpop.xlane.xlu1 %5877 }
0x183d   :  { %v5888_v54 = vmul.f32 0.03125, %v5878_v31 }
0x183f   :  { %v5892_v62 = vadd.f32 1e-06, %v5888_v54  ;;  %v5941_v54 = vld [vmem:[%s10172_s6 + $0x4] sm:$0x3] }
0x1840   :  { %v5881_v35 = vpop.xlane.xlu0 %5880 }
0x1841   :  { %8391 = vrsqrt.f32 %v5892_v62  ;;  %v5889_v46 = vmul.f32 0.03125, %v5881_v35  ;;  %v8216_v62 = vld [vmem:[#allocation10 + $0x10] ss:$20 sps:$4 sm:$0xff]  }
0x1843   :  { %v5893_v36 = vadd.f32 1e-06, %v5889_v46  ;;  %v5957_v46 = vrot.slane %v5941_v54, %v8863_v37 }
0x1844   :  { %v5884_v27 = vpop.xlane.xlu0 %5883  ;;  %v5887_v7 = vpop.xlane.xlu1 %5886 }
0x1845   :  { %v5890_v47 = vmul.f32 0.03125, %v5884_v27  ;;  %v5891_v38 = vmul.f32 0.03125, %v5887_v7  ;;  %v8212_v27 = vld [vmem:[#allocation11 + $0x10] sm:$0xff]   ;;  %v8213_v7 = vld [vmem:[#allocation11 + $0x8] sm:$0xff]  }
0x1847   :  { %v5894_v13 = vadd.f32 1e-06, %v5890_v47  ;;  %v5895_v17 = vadd.f32 1e-06, %v5891_v38  ;;  %v5961_v47 = vrot.slane %v5941_v54, %v9017_v6  ;;  %v7417_v38 = vld [vmem:[%s10172_s6 + $0x5] ss:$0 sm:$0xff] }
0x1848   :  { %v1911_v1 = vpop.xlane.xlu0 %1910  ;;  %v1914_v51 = vpop.xlane.xlu1 %1913 }
0x1849   :  { %8393 = vrsqrt.f32 %v5894_v13  ;;  %v1915_v25 = vmul.f32 0.03125, %v1911_v1  ;;  %v1916_v26 = vmul.f32 0.03125, %v1914_v51  ;;  %v8453_v1 = vld [vmem:[#allocation2] sm:$0xff]  ;;  %v8454_v51 = vld [vmem:[#allocation2 + $0x8] sm:$0xff] }
0x184a   :  { %8395 = vrsqrt.f32 %v5895_v17 }
0x184b   :  { %v1917_v29 = vadd.f32 1e-06, %v1915_v25  ;;  %8397 = vrsqrt.f32 %v5893_v36  ;;  %v1918_v50 = vadd.f32 1e-06, %v1916_v26 }
0x184c   :  { %v5975_v8 = vpop.permute.xlu0 %5974 }
0x184d   :  { %8005 = vmatprep.subr.bf16.mxu0 %v5975_v8  ;;  %8399 = vrsqrt.f32 %v1917_v29 }
0x184e   :  { %v8392_v15 = vpop.eup %8391  ;;  %8006 = vmatpush3.bf16.msra.mxu0 %v5975_v8  ;;  %8401 = vrsqrt.f32 %v1918_v50 }
0x184f   :  { %v5900_v61 = vmul.f32 %v8392_v15, %v9865_v59 }
0x1851   :  { %5914 = vrot.lane.b32.xlu1 %v5900_v61, %s8641_s13 }
0x1856   :  { %v8394_v20 = vpop.eup %8393 }
0x1857   :  { %v8396_v58 = vpop.eup %8395  ;;  %v5902_v49 = vmul.f32 %v8394_v20, %v9874_v21 }
0x1858   :  { %v5903_v40 = vmul.f32 %v8396_v58, %v9876_v63  ;;  %v8398_v12 = vpop.eup %8397 }
0x1859   :  { %5918 = vrot.lane.b32.xlu0 %v5902_v49, %s8641_s13  ;;  %v5901_v42 = vmul.f32 %v8398_v12, %v9869_v57 }
0x185a   :  { %5920 = vrot.lane.b32.xlu1 %v5903_v40, %s8641_s13  ;;  %v8400_v59 = vpop.eup %8399 }
0x185b   :  { %v1921_v21 = vmul.f32 %v8400_v59, %v9883_v44  ;;  %v8402_v63 = vpop.eup %8401 }
0x185c   :  { %v1922_v19 = vmul.f32 %v8402_v63, %v9885_v3 }
0x185d   :  { %5930 = vrot.lane.b32.xlu0 %v9911_v28, %s8648_s20 }
0x185e   :  { %5916 = vrot.lane.b32.xlu1 %v5901_v42, %s8641_s13 }
0x1861   :  { %1926 = vrot.lane.b32.xlu0 %v1921_v21, %s8641_s13 }
0x1862   :  { %5972 = vrot.lane.b32.xlu1 %v8210_v23, %s8641_s13 }
0x1866   :  { %1928 = vrot.lane.b32.xlu1 %v1922_v19, %s8641_s13 }
0x18c3   :  { %v5915_v24 = vpop.permute.xlu1 %5914 }
0x18c4   :  { %v5926_v52 = vmul.f32 %v9911_v28, %v5915_v24 }
0x18cb   :  { %v5919_v48 = vpop.permute.xlu0 %5918 }
0x18cc   :  { %v5921_v57 = vpop.permute.xlu1 %5920  ;;  %v5928_v60 = vmul.f32 %v9911_v28, %v5919_v48 }
0x18cd   :  { %v5929_v44 = vmul.f32 %v9911_v28, %v5921_v57 }
0x18cf   :  { %v9922_v30 = vpop.permute.xlu0 %5930 }
0x18d0   :  { %v5917_v56 = vpop.permute.xlu1 %5916  ;;  %v9929_v34 = vadd.f32 %v9922_v30, %v5926_v52  ;;  %v9935_v16 = vadd.f32 %v9922_v30, %v5928_v60  ;;  %v9938_v5 = vadd.f32 %v9922_v30, %v5929_v44 }
0x18d1   :  { %v5927_v14 = vmul.f32 %v9911_v28, %v5917_v56 }
0x18d2   :  { %v5952_v10 = vpack.c.bf16 %v9938_v5, %v9935_v16 }
0x18d3   :  { %v9932_v3 = vadd.f32 %v9922_v30, %v5927_v14  ;;  %v1927_v18 = vpop.permute.xlu0 %1926  ;;  %v9996_v14 = vld [vmem:[%s10172_s6 + $0x7] ss:$0 sm:$0xff] }
0x18d4   :  { %v1932_v55 = vmul.f32 %v8452_v9, %v1927_v18  ;;  %v5973_v41 = vpop.permute.xlu1 %5972 }
0x18d5   :  { %v5951_v43 = vpack.c.bf16 %v9932_v3, %v9929_v34  ;;  %8007 = vmatprep.subr.bf16.mxu0 %v5973_v41 }
0x18d6   :  { %v1934_v11 = vadd.f32 %v1932_v55, %v8999_v22  ;;  %8008 = vmatpush3.bf16.msra.mxu0 %v5973_v41 }
0x18d7   :  { %8009 = vmatprep.mubr.msk.bf16.mxu0 %vm191_vm1, %v5951_v43  ;;  %8025 = vmatprep.subr.bf16.mxu0 %v8643_v0 }
0x18d8   :  { %v1929_v32 = vpop.permute.xlu1 %1928  ;;  %6222 = vrot.lane.b32.xlu0 %v1934_v11, %s8648_s20 }
0x18d9   :  { %v1933_v31 = vmul.f32 %v8452_v9, %v1929_v32  ;;  %8010 = vmatmul.mubr.msk.bf16.vlgmr.msra.gmra.mxu0 %vm191_vm1, %v5952_v10 }
0x18da   :  { %8026 = vmatpush3.bf16.msra.mxu0 %v8215_v2  ;;  %8029 = vmatprep.mubr.msk.bf16.mxu0 %vm8644_vm0, %v8643_v0 }
0x18db   :  { %v1935_v35 = vadd.f32 %v1933_v31, %v8999_v22  ;;  %8027 = vmatprep.subr.bf16.mxu0 %v8643_v0  ;;  %v8214_v22 = vld [vmem:[#allocation11] sm:$0xff]  }
0x18dc   :  { %6076 = vrot.lane.b32.xlu0 %v8211_v33, %s8648_s20 }
0x18dd   :  { %6224 = vrot.lane.b32.xlu1 %v1935_v35, %s8648_s20 }
0x18de   :  { %8028 = vmatpush3.bf16.msra.mxu0 %v8216_v62 }
0x18df   :  { %8033 = vmatprep.subr.bf16.mxu0 %v8643_v0 }
0x18e0   :  { %5978 = vrot.lane.b32.xlu0 %v5957_v46, %s8650_s21 }
0x18e1   :  { %6074 = vrot.lane.b32.xlu1 %v8212_v27, %s8648_s20 }
0x18e4   :  { %6072 = vrot.lane.b32.xlu0 %v8213_v7, %s8648_s20 }
0x18e5   :  { %5980 = vrot.lane.b32.xlu1 %v5961_v47, %s8650_s21 }
0x18e8   :  { %6323 = vrot.lane.b32.xlu0 %v8215_v2, %s8648_s20 }
0x18e9   :  { %6070 = vrot.lane.b32.xlu1 %v8214_v22, %s8648_s20 }
0x18ec   :  { %6082 = vrot.lane.b32.xlu0 %v7417_v38, %s8648_s20 }
0x18ed   :  { %6321 = vrot.lane.b32.xlu1 %v8216_v62, %s8648_s20 }
0x194a   :  { %v6223_v13 = vpop.permute.xlu0 %6222 }
0x194b   :  { %v9975_v25 = vadd.f32 %v8453_v1, %v6223_v13 }
0x194e   :  { %v6077_v17 = vpop.permute.xlu0 %6076 }
0x194f   :  { %v6225_v36 = vpop.permute.xlu1 %6224  ;;  %8013 = vmatprep.subr.bf16.mxu1 %v6077_v17 }
0x1950   :  { %v9977_v29 = vadd.f32 %v8454_v51, %v6225_v36  ;;  %8014 = vmatpush3.bf16.msra.mxu1 %v6077_v17 }
0x1952   :  { %v6255_v26 = vpack.c.bf16 %v9977_v29, %v9975_v25  ;;  %v5979_v8 = vpop.permute.xlu0 %5978 }
0x1953   :  { %v6075_v15 = vpop.permute.xlu1 %6074 }
0x1954   :  { %8030 = vmatmul.mubr.msk.bf16.vlgmr.msra.gmra.mxu0 %vm191_vm1, %v6255_v26  ;;  %8015 = vmatprep.subr.bf16.mxu1 %v6075_v15 }
0x1955   :  { %8016 = vmatpush3.bf16.msra.mxu1 %v6075_v15  ;;  %8037 = vmatprep.mubr.msk.bf16.mxu0 %vm8644_vm0, %v8643_v0 }
0x1956   :  { %v6073_v61 = vpop.permute.xlu0 %6072 }
0x1957   :  { %v5981_v50 = vpop.permute.xlu1 %5980  ;;  %8017 = vmatprep.subr.bf16.mxu1 %v6073_v61 }
0x1958   :  { %v5982_v20 = vsel %vm191_vm1, %v5979_v8, %v5981_v50 }
0x1959   :  { %8018 = vmatpush3.bf16.msra.mxu1 %v6073_v61 }
0x195a   :  { %v6324_v49 = vpop.permute.xlu0 %6323 }
0x195b   :  { %v6071_v58 = vpop.permute.xlu1 %6070  ;;  %8034 = vmatpush3.bf16.msra.mxu0 %v6324_v49 }
0x195c   :  { %8019 = vmatprep.subr.bf16.mxu1 %v6071_v58  ;;  %8035 = vmatprep.subr.bf16.mxu0 %v8643_v0 }
0x195d   :  { %8020 = vmatpush3.bf16.msra.mxu1 %v6071_v58 }
0x195e   :  { %8041 = vmatprep.subr.mxu1 %v8643_v0  ;;  %v6083_v33 = vpop.permute.xlu0 %6082 }
0x195f   :  { %v6322_v59 = vpop.permute.xlu1 %6321 }
0x1960   :  { %8036 = vmatpush3.bf16.msra.mxu0 %v6322_v59 }
0x1961   :  { %8046 = vmatprep.subr.mxu0 %v8643_v0 }
0x1999   :  { %v8011_v40 = vpop.f32.mrf.mxu0 }
0x199a   :  { %v6033_v63 = vadd.f32 %v8011_v40, %v5982_v20 }
0x199b   :  { %v6024_v12 = vpop.f32.mrf.mxu0 }
0x199c   :  { %v6025_v23 = vadd.f32 %v6024_v12, %v5982_v20  ;;  %v6041_v52 = vmax.f32 %v6033_v63, 0.0 }
0x199d   :  { %v8012_v42 = vpop.f32.mrf.mxu0 }
0x199e   :  { %v6036_v21 = vadd.f32 %v8012_v42, %v5982_v20  ;;  %v6039_v57 = vmax.f32 %v6025_v23, 0.0 }
0x199f   :  { %v6027_v19 = vpop.f32.mrf.mxu0 }
0x19a0   :  { %v6028_v24 = vadd.f32 %v6027_v19, %v5982_v20  ;;  %v6042_v48 = vmax.f32 %v6036_v21, 0.0 }
0x19a2   :  { %v6040_v56 = vmax.f32 %v6028_v24, 0.0  ;;  %v6044_v44 = vpack.c.bf16 %v6042_v48, %v6041_v52 }
0x19a4   :  { %v6043_v60 = vpack.c.bf16 %v6040_v56, %v6039_v57 }
0x19a6   :  { %8021 = vmatprep.mubr.msk.bf16.mxu1 %vm1826_vm6, %v6043_v60 }
0x19a7   :  { %8022 = vmatmul.mubr.msk.bf16.vlgmr.msra.gmra.mxu1 %vm1826_vm6, %v6044_v44 }
0x19a8   :  { %8042 = vmatpush3.msra.mxu1 %v9975_v25  ;;  %8043 = vmatprep.mubr.msk.f32.mxu1 %vm8644_vm0, %v8643_v0 }
0x1a14   :  { %v6311_v18 = vpop.f32.mrf.mxu0 }
0x1a15   :  { %v6312_v55 = vadd.f32 %v9996_v14, %v6311_v18 }
0x1a16   :  { %v8031_v9 = vpop.f32.mrf.mxu0 }
0x1a17   :  { %v6318_v2 = vmax.f32 %v6312_v55, 0.0 }
0x1a18   :  { %v6314_v41 = vpop.f32.mrf.mxu0 }
0x1a19   :  { %v6315_v43 = vadd.f32 %v9996_v14, %v6314_v41 }
0x1a1a   :  { %v8032_v11 = vpop.f32.mrf.mxu0 }
0x1a1b   :  { %v6319_v10 = vmax.f32 %v6315_v43, 0.0 }
0x1a1d   :  { %v6320_v32 = vpack.c.bf16 %v6319_v10, %v6318_v2 }
0x1a1f   :  { %8038 = vmatmul.mubr.msk.bf16.vlgmr.msra.gmra.mxu0 %vm191_vm1, %v6320_v32 }
0x1a20   :  { %8047 = vmatpush3.msra.mxu0 %v9977_v29  ;;  %8048 = vmatprep.mubr.msk.f32.mxu0 %vm8644_vm0, %v8643_v0 }
0x1a67   :  { %v8023_v31 = vpop.f32.mrf.mxu1 }
0x1a68   :  { %v6134_v54 = vadd.f32 %v8023_v31, %v6083_v33 }
0x1a69   :  { %v6125_v62 = vpop.f32.mrf.mxu1 }
0x1a6a   :  { %v6142_v35 = vadd.f32 %v6134_v54, %v9935_v16  ;;  %v6126_v46 = vadd.f32 %v6125_v62, %v6083_v33 }
0x1a6b   :  { %v8024_v27 = vpop.f32.mrf.mxu1 }
0x1a6c   :  { %v6140_v7 = vadd.f32 %v6126_v46, %v9929_v34  ;;  %v6137_v47 = vadd.f32 %v8024_v27, %v6083_v33  ;;  %v6150_v22 = vsel %vm191_vm1, %v6142_v35, 0.0 }
0x1a6d   :  { %6151 = vadd.xlane.f32.xlu0 %v6150_v22  ;;  %v6128_v38 = vpop.f32.mrf.mxu1 }
0x1a6e   :  { %v6143_v13 = vadd.f32 %v6137_v47, %v9938_v5  ;;  %v6129_v17 = vadd.f32 %v6128_v38, %v6083_v33  ;;  %v6144_v0 = vsel %vm191_vm1, %v6140_v7, 0.0  ;;  %v10027_v47 = vld [vmem:[#allocation10 + $0x38] ss:$20 sps:$4 sm:$0xff]  }
0x1a6f   :  { %6145 = vadd.xlane.f32.xlu1 %v6144_v0 }
0x1a70   :  { %v6141_v36 = vadd.f32 %v6129_v17, %v9932_v3  ;;  %v6153_v16 = vsel %vm191_vm1, %v6143_v13, 0.0 }
0x1a72   :  { %v6147_v1 = vsel %vm191_vm1, %v6141_v36, 0.0 }
0x1a73   :  { %6148 = vadd.xlane.f32.xlu0 %v6147_v1  ;;  %6154 = vadd.xlane.f32.xlu1 %v6153_v16 }
0x1a89   :  { %6327 = vrot.lane.b32.xlu0 %v9996_v14, %s8648_s20 }
0x1adf   :  { %v6367_v34 = vpop.f32.mrf.mxu0 }
0x1ae1   :  { %v8039_v51 = vpop.f32.mrf.mxu0 }
0x1ae3   :  { %v10014_v26 = vpop.f32.mrf.mxu0 }
0x1ae5   :  { %v8040_v5 = vpop.f32.mrf.mxu0 }
0x1ae6   :  { %v8218_v5 = vld [vmem:[#allocation10 + $0x10] ss:$20 sps:$4 sm:$0xff]  }
0x1af6   :  { %v6152_v8 = vpop.xlane.xlu0 %6151 }
0x1af7   :  { %v6158_v15 = vmul.f32 0.03125, %v6152_v8 }
0x1af8   :  { %v6146_v61 = vpop.xlane.xlu1 %6145 }
0x1af9   :  { %v6156_v50 = vmul.f32 0.03125, %v6146_v61  ;;  %v6162_v20 = vsub.f32 %v6142_v35, %v6158_v15 }
0x1afb   :  { %v6160_v3 = vsub.f32 %v6140_v7, %v6156_v50  ;;  %v6166_v23 = vmul.f32 %v6162_v20, %v6162_v20 }
0x1afc   :  { %v6149_v58 = vpop.xlane.xlu0 %6148  ;;  %v6155_v49 = vpop.xlane.xlu1 %6154 }
0x1afd   :  { %v6159_v40 = vmul.f32 0.03125, %v6155_v49  ;;  %v6164_v12 = vmul.f32 %v6160_v3, %v6160_v3  ;;  %v6174_v19 = vsel %vm191_vm1, %v6166_v23, 0.0  ;;  %v6157_v57 = vmul.f32 0.03125, %v6149_v58 }
0x1aff   :  { %v6163_v59 = vsub.f32 %v6143_v13, %v6159_v40  ;;  %v6168_v42 = vsel %vm191_vm1, %v6164_v12, 0.0  ;;  %v6161_v56 = vsub.f32 %v6141_v36, %v6157_v57 }
0x1b00   :  { %v10017_v21 = vpop.permute.xlu0 %6327  ;;  %6169 = vadd.xlane.f32.xlu0 %v6168_v42 }
0x1b01   :  { %v6368_v63 = vadd.f32 %v6367_v34, %v10017_v21  ;;  %v6167_v24 = vmul.f32 %v6163_v59, %v6163_v59  ;;  %v6165_v52 = vmul.f32 %v6161_v56, %v6161_v56  ;;  %v6371_v23 = vadd.f32 %v10014_v26, %v10017_v21 }
0x1b03   :  { %6374 = vxpose.xlu1.b32.start.end [1/1] (short) (narrow) %v6368_v63, 8  ;;  %v6177_v48 = vsel %vm191_vm1, %v6167_v24, 0.0  ;;  %v6171_v60 = vsel %vm191_vm1, %v6165_v52, 0.0  ;;  %v8455_v52 = vld [vmem:[#allocation5] sm:$0xff] }
0x1b04   :  { %6175 = vadd.xlane.f32.xlu0 %v6174_v19 }
0x1b08   :  { %6178 = vadd.xlane.f32.xlu0 %v6177_v48 }
0x1b2a   :  { %6172 = vadd.xlane.f32.xlu1 %v6171_v60  ;;  %v8456_v60 = vld [vmem:[#allocation5 + $0x8] sm:$0xff] }
0x1b7f   :  { %v6390_v44 = vpop.trf.xlu1 }
0x1b80   :  { %v6438_v18 = vadd.f32 %v6390_v44, %v8866_v39 }
0x1b82   :  { %v6440_v9 = vsel %vm252_vm2, %v6438_v18, -inf }
0x1b83   :  { %6441 = vmax.xlane.f32.xlu0 %v6440_v9 }
0x1b89   :  { %v6170_v55 = vpop.xlane.xlu0 %6169 }
0x1b8a   :  { %v6180_v41 = vmul.f32 0.03125, %v6170_v55  ;;  %v8458_v55 = vld [vmem:[#allocation5 + $0x18] sm:$0xff] }
0x1b8c   :  { %v6184_v43 = vadd.f32 1e-06, %v6180_v41 }
0x1b8d   :  { %v6176_v11 = vpop.xlane.xlu0 %6175 }
0x1b8e   :  { %8403 = vrsqrt.f32 %v6184_v43  ;;  %v6182_v39 = vmul.f32 0.03125, %v6176_v11 }
0x1b90   :  { %v6186_v27 = vadd.f32 1e-06, %v6182_v39 }
0x1b91   :  { %v6179_v2 = vpop.xlane.xlu0 %6178 }
0x1b92   :  { %v6183_v10 = vmul.f32 0.03125, %v6179_v2 }
0x1b94   :  { %v6187_v32 = vadd.f32 1e-06, %v6183_v10 }
0x1b96   :  { %8405 = vrsqrt.f32 %v6187_v32 }
0x1b9b   :  { %v8404_v33 = vpop.eup %8403 }
0x1b9c   :  { %v6192_v31 = vmul.f32 %v8404_v33, %v6160_v3 }
0x1b9e   :  { %6200 = vrot.lane.b32.xlu0 %v6192_v31, %s8641_s13 }
0x1ba3   :  { %v8406_v54 = vpop.eup %8405 }
0x1ba4   :  { %v6195_v62 = vmul.f32 %v8406_v54, %v6163_v59 }
0x1ba6   :  { %6206 = vrot.lane.b32.xlu1 %v6195_v62, %s8641_s13 }
0x1baa   :  { %6632 = vrot.lane.b32.xlu1 %v10027_v47, %s8653_s24 }
0x1bb3   :  { %v6173_v35 = vpop.xlane.xlu1 %6172 }
0x1bb4   :  { %v6181_v46 = vmul.f32 0.03125, %v6173_v35 }
0x1bb6   :  { %v6185_v7 = vadd.f32 1e-06, %v6181_v46 }
0x1bb8   :  { %8407 = vrsqrt.f32 %v6185_v7 }
0x1bb9   :  { %8409 = vrsqrt.f32 %v6186_v27 }
0x1bc5   :  { %v8408_v22 = vpop.eup %8407 }
0x1bc6   :  { %v6193_v38 = vmul.f32 %v8408_v22, %v6161_v56  ;;  %v8410_v13 = vpop.eup %8409 }
0x1bc7   :  { %v6194_v17 = vmul.f32 %v8410_v13, %v6162_v20 }
0x1bc8   :  { %6202 = vrot.lane.b32.xlu0 %v6193_v38, %s8641_s13 }
0x1bcc   :  { %6204 = vrot.lane.b32.xlu0 %v6194_v17, %s8641_s13 }
0x1c0c   :  { %v6442_v0 = vpop.xlane.xlu0 %6441 }
0x1c0d   :  { %v6446_v36 = vsub.f32 %v6438_v18, %v6442_v0  ;;  %v8457_v18 = vld [vmem:[#allocation5 + $0x10] sm:$0xff] }
0x1c0f   :  { %v6448_v1 = vmul.f32 1.442695, %v6446_v36 }
0x1c10   :  { %v6201_v15 = vpop.permute.xlu0 %6200 }
0x1c11   :  { %8411 = vpow2.f32 %v6448_v1  ;;  %v6212_v3 = vmul.f32 %v9911_v28, %v6201_v15 }
0x1c13   :  { %v6216_v49 = vadd.f32 %v6212_v3, %v9922_v30 }
0x1c18   :  { %v6207_v51 = vpop.permute.xlu1 %6206 }
0x1c19   :  { %v6215_v12 = vmul.f32 %v9911_v28, %v6207_v51 }
0x1c1b   :  { %v6219_v42 = vadd.f32 %v6215_v12, %v9922_v30 }
0x1c1c   :  { %v6633_v8 = vpop.permute.xlu1 %6632 }
0x1c1d   :  { %8051 = vmatprep.subr.bf16.mxu1 %v6633_v8 }
0x1c1e   :  { %v8412_v16 = vpop.eup %8411 }
0x1c1f   :  { %v6452_v34 = vsel %vm252_vm2, %v8412_v16, 0.0 }
0x1c20   :  { %6453 = vadd.xlane.f32.xlu0 %v6452_v34 }
0x1c36   :  { %6630 = vrot.lane.b32.xlu0 %v8218_v5, %s8653_s24 }
0x1c3a   :  { %v6203_v61 = vpop.permute.xlu0 %6202 }
0x1c3b   :  { %v6213_v40 = vmul.f32 %v9911_v28, %v6203_v61 }
0x1c3d   :  { %v6217_v59 = vadd.f32 %v6213_v40, %v9922_v30 }
0x1c3e   :  { %v6205_v50 = vpop.permute.xlu0 %6204 }
0x1c3f   :  { %v6214_v20 = vmul.f32 %v9911_v28, %v6205_v50 }
0x1c41   :  { %v6218_v58 = vadd.f32 %v6214_v20, %v9922_v30 }
0x1c43   :  { %6238 = vrot.lane.b32.xlu1 %v6218_v58, %s8641_s13 }
0x1c47   :  { %6234 = vrot.lane.b32.xlu1 %v6216_v49, %s8641_s13 }
0x1c4b   :  { %6236 = vrot.lane.b32.xlu1 %v6217_v59, %s8641_s13 }
0x1c4f   :  { %6240 = vrot.lane.b32.xlu1 %v6219_v42, %s8641_s13  ;;  %s8654_s13 = smov 56  }
0x1c78   :  { %6406 = vxpose.xlu1.b32.start.end [1/1] (short) (narrow) %v6371_v23, 8 }
0x1ca9   :  { %v6454_v63 = vpop.xlane.xlu0 %6453 }
0x1caa   :  { %8413 = vrcp.f32 %v6454_v63 }
0x1cad   :  { %v6631_v56 = vpop.permute.xlu0 %6630 }
0x1cb5   :  { %v6239_v19 = vpop.permute.xlu1 %6238 }
0x1cb6   :  { %v10057_v9 = vadd.f32 %v8457_v18, %v6239_v19 }
0x1cb7   :  { %v8414_v24 = vpop.eup %8413 }
0x1cb8   :  { %v6460_v48 = vmul.f32 %v8414_v24, %v8412_v16 }
0x1cb9   :  { %v6235_v57 = vpop.permute.xlu1 %6234 }
0x1cba   :  { %8044 = vmatmul.mubr.msk.f32.vlgmr.msra.gmra.mxu1 %vm252_vm2, %v6460_v48  ;;  %v10050_v30 = vadd.f32 %v8455_v52, %v6235_v57 }
0x1cbb   :  { %8052 = vmatpush3.bf16.msra.mxu1 %v6633_v8 }
0x1cbc   :  { %8053 = vmatprep.subr.bf16.mxu1 %v6631_v56 }
0x1cbd   :  { %v6237_v28 = vpop.permute.xlu1 %6236 }
0x1cbe   :  { %v10052_v44 = vadd.f32 %v8456_v60, %v6237_v28 }
0x1cbf   :  { %8054 = vmatpush3.bf16.msra.mxu1 %v6631_v56 }
0x1cc0   :  { %8067 = vmatprep.subr.mxu1 %v10052_v44  ;;  %v6613_v26 = vpack.c.bf16 %v10052_v44, %v10050_v30 }
0x1cc1   :  { %v6241_v21 = vpop.permute.xlu1 %6240 }
0x1cc2   :  { %v10059_v41 = vadd.f32 %v8458_v55, %v6241_v21  ;;  %8055 = vmatprep.mubr.msk.bf16.mxu1 %vm191_vm1, %v6613_v26 }
0x1cc4   :  { %v6614_v43 = vpack.c.bf16 %v10059_v41, %v10057_v9 }
0x1cc6   :  { %8056 = vmatmul.mubr.msk.bf16.vlgmr.msra.gmra.mxu1 %vm191_vm1, %v6614_v43 }
0x1cc7   :  { %8068 = vmatpush3.msra.mxu1 %v10052_v44 }
0x1cc8   :  { %8069 = vmatprep.subr.mxu1 %v10050_v30 }
0x1cc9   :  { %8070 = vmatpush3.msra.mxu1 %v10050_v30 }
0x1cf4   :  { %v6422_v11 = vpop.trf.xlu1 }
0x1cf5   :  { %v6439_v2 = vadd.f32 %v6422_v11, %v8871_v45 }
0x1cf7   :  { %v6443_v10 = vsel %vm252_vm2, %v6439_v2, -inf }
0x1cf8   :  { %6444 = vmax.xlane.f32.xlu0 %v6443_v10 }
0x1d0e   :  { %6702 = vrot.lane.b32.xlu0 %v10027_v47, %s8654_s13 }
0x1d12   :  { %6636 = vrot.lane.b32.xlu0 %v9996_v14, %s8653_s24 }
0x1d16   :  { %6700 = vrot.lane.b32.xlu0 %v8218_v5, %s8654_s13 }
0x1d7a   :  { %v6531_v32 = vpop.f32.mrf.mxu1 }
0x1d7b   :  { %v10084_v56 = vadd.f32 %v6531_v32, %v9975_v25 }
0x1d7c   :  { %v8045_v33 = vpop.f32.mrf.mxu1 }
0x1d7d   :  { %v7042_v55 = vsel %vm191_vm1, %v10084_v56, 0.0 }
0x1d81   :  { %v6445_v31 = vpop.xlane.xlu0 %6444 }
0x1d82   :  { %v6447_v54 = vsub.f32 %v6439_v2, %v6445_v31 }
0x1d84   :  { %v6450_v62 = vmul.f32 1.442695, %v6447_v54 }
0x1d85   :  { %v6703_v39 = vpop.permute.xlu0 %6702 }
0x1d86   :  { %8415 = vpow2.f32 %v6450_v62  ;;  %8059 = vmatprep.subr.bf16.mxu0 %v6703_v39  ;;  %v8057_v46 = vpop.f32.mrf.mxu1 }
0x1d88   :  { %v6679_v27 = vpop.f32.mrf.mxu1 }
0x1d89   :  { %v6637_v38 = vpop.permute.xlu0 %6636 }
0x1d8a   :  { %v8058_v47 = vpop.f32.mrf.mxu1  ;;  %v6680_v17 = vadd.f32 %v6679_v27, %v6637_v38  ;;  %v6688_v16 = vadd.f32 %v8057_v46, %v6637_v38 }
0x1d8b   :  { %v6691_v34 = vadd.f32 %v8058_v47, %v6637_v38 }
0x1d8c   :  { %v6682_v22 = vpop.f32.mrf.mxu1  ;;  %v6694_v1 = vmax.f32 %v6680_v17, 0.0  ;;  %v6696_v15 = vmax.f32 %v6688_v16, 0.0 }
0x1d8d   :  { %v6683_v13 = vadd.f32 %v6682_v22, %v6637_v38  ;;  %v6701_v8 = vpop.permute.xlu0 %6700  ;;  %v6697_v61 = vmax.f32 %v6691_v34, 0.0 }
0x1d8f   :  { %v6695_v0 = vmax.f32 %v6683_v13, 0.0  ;;  %v6699_v50 = vpack.c.bf16 %v6697_v61, %v6696_v15 }
0x1d91   :  { %v6698_v5 = vpack.c.bf16 %v6695_v0, %v6694_v1 }
0x1d93   :  { %v8416_v35 = vpop.eup %8415 }
0x1d94   :  { %v6455_v45 = vsel %vm252_vm2, %v8416_v35, 0.0 }
0x1d95   :  { %6456 = vadd.xlane.f32.xlu1 %v6455_v45 }
0x1da6   :  { %6706 = vrot.lane.b32.xlu1 %v9996_v14, %s8654_s13 }
0x1e1e   :  { %v6457_v7 = vpop.xlane.xlu1 %6456 }
0x1e1f   :  { %8417 = vrcp.f32 %v6457_v7 }
0x1e22   :  { %v6707_v58 = vpop.permute.xlu1 %6706 }
0x1e2c   :  { %v8418_v36 = vpop.eup %8417 }
0x1e2d   :  { %v6461_v51 = vmul.f32 %v8418_v36, %v8416_v35 }
0x1e2f   :  { %8049 = vmatmul.mubr.msk.f32.vlgmr.msra.gmra.mxu0 %vm252_vm2, %v6461_v51 }
0x1e30   :  { %8060 = vmatpush3.bf16.msra.mxu0 %v6703_v39  ;;  %8063 = vmatprep.mubr.msk.bf16.mxu0 %vm191_vm1, %v6698_v5 }
0x1e31   :  { %8061 = vmatprep.subr.bf16.mxu0 %v6701_v8 }
0x1e34   :  { %8062 = vmatpush3.bf16.msra.mxu0 %v6701_v8 }
0x1e35   :  { %8074 = vmatprep.subr.mxu0 %v10059_v41 }
0x1e37   :  { %8064 = vmatmul.mubr.msk.bf16.vlgmr.msra.gmra.mxu0 %vm191_vm1, %v6699_v50 }
0x1e38   :  { %8075 = vmatpush3.msra.mxu0 %v10059_v41 }
0x1e39   :  { %8076 = vmatprep.subr.mxu0 %v10057_v9 }
0x1e3a   :  { %8077 = vmatpush3.msra.mxu0 %v10057_v9 }
0x1eef   :  { %v6604_v20 = vpop.f32.mrf.mxu0 }
0x1ef0   :  { %v7039_v17 = vadd.f32 %v6604_v20, %v9977_v29 }
0x1ef1   :  { %v8050_v3 = vpop.f32.mrf.mxu0 }
0x1ef2   :  { %v7045_v36 = vsel %vm191_vm1, %v7039_v17, 0.0 }
0x1ef7   :  { %v8065_v49 = vpop.f32.mrf.mxu0 }
0x1ef8   :  { %v6758_v40 = vadd.f32 %v8065_v49, %v6707_v58 }
0x1ef9   :  { %v6749_v12 = vpop.f32.mrf.mxu0 }
0x1efa   :  { %v6750_v59 = vadd.f32 %v6749_v12, %v6707_v58  ;;  %6796 = vxpose.xlu1.b32.start [1/2] (short) (narrow) %v6758_v40, 16 }
0x1efb   :  { %v8066_v42 = vpop.f32.mrf.mxu0 }
0x1efc   :  { %v6761_v23 = vadd.f32 %v8066_v42, %v6707_v58  ;;  %6764 = vxpose.xlu0.b32.start [1/2] (short) (narrow) %v6750_v59, 16 }
0x1efd   :  { %v6752_v63 = vpop.f32.mrf.mxu0 }
0x1efe   :  { %v6753_v19 = vadd.f32 %v6752_v63, %v6707_v58  ;;  %6797 = vxpose.xlu1.b32.end [2/2] (short) (narrow) %v6761_v23, 16 }
0x1f00   :  { %6765 = vxpose.xlu0.b32.end [2/2] (short) (narrow) %v6753_v19, 16 }
0x1f76   :  { %v6812_v24 = vpop.trf.xlu1 }
0x1f77   :  { %v6830_v48 = vadd.f32 %v6812_v24, %v9184_v53 }
0x1f78   :  { %v6780_v57 = vpop.trf.xlu0 }
0x1f79   :  { %v6828_v28 = vadd.f32 %v6780_v57, %v9187_v4  ;;  %v6838_v52 = vsel %vm1607_vm4, %v6830_v48, -inf }
0x1f7a   :  { %6839 = vmax.xlane.f32.xlu1 %v6838_v52  ;;  %v6813_v60 = vpop.trf.xlu1 }
0x1f7b   :  { %v6832_v26 = vsel %vm1607_vm4, %v6828_v28, -inf  ;;  %v6831_v43 = vadd.f32 %v6813_v60, %v9184_v53 }
0x1f7c   :  { %6833 = vmax.xlane.f32.xlu0 %v6832_v26  ;;  %v6781_v21 = vpop.trf.xlu0 }
0x1f7d   :  { %v6829_v18 = vadd.f32 %v6781_v21, %v9187_v4  ;;  %v6841_v11 = vsel %vm1607_vm4, %v6831_v43, -inf }
0x1f7e   :  { %7043 = vadd.xlane.f32.xlu1 %v7042_v55 }
0x1f7f   :  { %v6835_v25 = vsel %vm1607_vm4, %v6829_v18, -inf }
0x1f80   :  { %6836 = vmax.xlane.f32.xlu0 %v6835_v25 }
0x1f84   :  { %6842 = vmax.xlane.f32.xlu0 %v6841_v11 }
0x2003   :  { %v6840_v2 = vpop.xlane.xlu1 %6839 }
0x2004   :  { %v6846_v10 = vsub.f32 %v6830_v48, %v6840_v2 }
0x2005   :  { %v6834_v32 = vpop.xlane.xlu0 %6833 }
0x2006   :  { %v6852_v33 = vmul.f32 1.442695, %v6846_v10  ;;  %v6844_v31 = vsub.f32 %v6828_v28, %v6834_v32 }
0x2007   :  { %v7044_v49 = vpop.xlane.xlu1 %7043 }
0x2008   :  { %8419 = vpow2.f32 %v6852_v33  ;;  %v6848_v54 = vmul.f32 1.442695, %v6844_v31  ;;  %v7048_v59 = vmul.f32 0.03125, %v7044_v49 }
0x2009   :  { %v6837_v4 = vpop.xlane.xlu0 %6836 }
0x200a   :  { %8421 = vpow2.f32 %v6848_v54  ;;  %v6845_v62 = vsub.f32 %v6829_v18, %v6837_v4  ;;  %v7050_v57 = vsub.f32 %v10084_v56, %v7048_v59 }
0x200c   :  { %v6850_v39 = vmul.f32 1.442695, %v6845_v62  ;;  %v7052_v18 = vmul.f32 %v7050_v57, %v7050_v57 }
0x200d   :  { %v6843_v35 = vpop.xlane.xlu0 %6842 }
0x200e   :  { %8423 = vpow2.f32 %v6850_v39  ;;  %v6847_v53 = vsub.f32 %v6831_v43, %v6843_v35  ;;  %v7054_v56 = vsel %vm191_vm1, %v7052_v18, 0.0 }
0x2010   :  { %v6854_v45 = vmul.f32 1.442695, %v6847_v53 }
0x2012   :  { %8425 = vpow2.f32 %v6854_v45 }
0x2015   :  { %v8420_v46 = vpop.eup %8419 }
0x2016   :  { %v6862_v27 = vsel %vm1607_vm4, %v8420_v46, 0.0 }
0x2017   :  { %v8422_v7 = vpop.eup %8421  ;;  %6863 = vadd.xlane.f32.xlu0 %v6862_v27 }
0x2018   :  { %v6856_v47 = vsel %vm1607_vm4, %v8422_v7, 0.0 }
0x201b   :  { %v8424_v22 = vpop.eup %8423  ;;  %6857 = vadd.xlane.f32.xlu0 %v6856_v47 }
0x201c   :  { %v6859_v38 = vsel %vm1607_vm4, %v8424_v22, 0.0 }
0x201f   :  { %v8426_v13 = vpop.eup %8425  ;;  %6860 = vadd.xlane.f32.xlu0 %v6859_v38 }
0x2020   :  { %v6865_v0 = vsel %vm1607_vm4, %v8426_v13, 0.0 }
0x2023   :  { %6866 = vadd.xlane.f32.xlu0 %v6865_v0 }
0x2027   :  { %7046 = vadd.xlane.f32.xlu0 %v7045_v36 }
0x20a0   :  { %v6864_v1 = vpop.xlane.xlu0 %6863 }
0x20a1   :  { %8427 = vrcp.f32 %v6864_v1 }
0x20a4   :  { %v6858_v16 = vpop.xlane.xlu0 %6857 }
0x20a5   :  { %8429 = vrcp.f32 %v6858_v16 }
0x20a8   :  { %v6861_v34 = vpop.xlane.xlu0 %6860 }
0x20a9   :  { %8431 = vrcp.f32 %v6861_v34  ;;  %v7041_v34 = vld [vmem:[%s10172_s6 + $0x7] sm:$0x3] }
0x20ac   :  { %v6867_v51 = vpop.xlane.xlu0 %6866 }
0x20ad   :  { %8433 = vrcp.f32 %v6867_v51 }
0x20ae   :  { %v8428_v5 = vpop.eup %8427 }
0x20af   :  { %v6874_v8 = vmul.f32 %v8428_v5, %v8420_v46  ;;  %v7088_v5 = vrot.slane %v7041_v34, %v8863_v37 }
0x20b0   :  { %v7047_v58 = vpop.xlane.xlu0 %7046 }
0x20b1   :  { %8078 = vmatprep.mubr.msk.f32.mxu0 %vm1607_vm4, %v6874_v8  ;;  %v7049_v40 = vmul.f32 0.03125, %v7047_v58 }
0x20b2   :  { %v8430_v15 = vpop.eup %8429 }
0x20b3   :  { %v6872_v29 = vmul.f32 %v8430_v15, %v8422_v7  ;;  %v7051_v63 = vsub.f32 %v7039_v17, %v7049_v40 }
0x20b5   :  { %8071 = vmatprep.mubr.msk.f32.mxu1 %vm1607_vm4, %v6872_v29  ;;  %v7053_v21 = vmul.f32 %v7051_v63, %v7051_v63 }
0x20b6   :  { %v8432_v61 = vpop.eup %8431 }
0x20b7   :  { %v6873_v50 = vmul.f32 %v8432_v61, %v8424_v22  ;;  %v7057_v55 = vsel %vm191_vm1, %v7053_v21, 0.0 }
0x20b9   :  { %8072 = vmatmul.mubr.msk.f32.vlgmr.msra.gmra.mxu1 %vm1607_vm4, %v6873_v50 }
0x20ba   :  { %v8434_v20 = vpop.eup %8433 }
0x20bb   :  { %v6875_v3 = vmul.f32 %v8434_v20, %v8426_v13 }
0x20bd   :  { %8079 = vmatmul.mubr.msk.f32.vlgmr.msra.gmra.mxu0 %vm1607_vm4, %v6875_v3 }
0x2179   :  { %v8073_v12 = vpop.f32.mrf.mxu1 }
0x217a   :  { %v7113_v42 = vadd.f32 %v8073_v12, %v10052_v44 }
0x217b   :  { %v6948_v23 = vpop.f32.mrf.mxu1 }
0x217c   :  { %v7112_v19 = vadd.f32 %v6948_v23, %v10050_v30  ;;  %v7120_v24 = vsel %vm191_vm1, %v7113_v42, 0.0 }
0x217d   :  { %7121 = vadd.xlane.f32.xlu0 %v7120_v24  ;;  %v8080_v48 = vpop.f32.mrf.mxu0 }
0x217e   :  { %v7115_v28 = vadd.f32 %v8080_v48, %v10059_v41  ;;  %v7117_v52 = vsel %vm191_vm1, %v7112_v19, 0.0 }
0x217f   :  { %7118 = vadd.xlane.f32.xlu1 %v7117_v52  ;;  %v7029_v60 = vpop.f32.mrf.mxu0  ;;  %v7092_v52 = vrot.slane %v7041_v34, %v9017_v6 }
0x2180   :  { %v7114_v26 = vadd.f32 %v7029_v60, %v10057_v9  ;;  %v7126_v44 = vsel %vm191_vm1, %v7115_v28, 0.0 }
0x2181   :  { %7127 = vadd.xlane.f32.xlu0 %v7126_v44 }
0x2182   :  { %v7123_v30 = vsel %vm191_vm1, %v7114_v26, 0.0 }
0x2183   :  { %7124 = vadd.xlane.f32.xlu1 %v7123_v30 }
0x2185   :  { %7058 = vadd.xlane.f32.xlu0 %v7057_v55 }
0x2187   :  { %7055 = vadd.xlane.f32.xlu1 %v7054_v56 }
0x2206   :  { %v7122_v41 = vpop.xlane.xlu0 %7121 }
0x2207   :  { %v7130_v43 = vmul.f32 0.03125, %v7122_v41 }
0x2208   :  { %v7119_v25 = vpop.xlane.xlu1 %7118 }
0x2209   :  { %v7134_v11 = vsub.f32 %v7113_v42, %v7130_v43  ;;  %v7129_v2 = vmul.f32 0.03125, %v7119_v25 }
0x220a   :  { %v7128_v9 = vpop.xlane.xlu0 %7127 }
0x220b   :  { %v10116_v10 = vsub.f32 %v7112_v19, %v7129_v2  ;;  %v7132_v32 = vmul.f32 0.03125, %v7128_v9  ;;  %v7138_v33 = vmul.f32 %v7134_v11, %v7134_v11 }
0x220c   :  { %v7125_v31 = vpop.xlane.xlu1 %7124 }
0x220d   :  { %v7136_v54 = vsub.f32 %v7115_v28, %v7132_v32  ;;  %v7131_v4 = vmul.f32 0.03125, %v7125_v31  ;;  %v7144_v62 = vsel %vm191_vm1, %v7138_v33, 0.0  ;;  %v7137_v39 = vmul.f32 %v10116_v10, %v10116_v10 }
0x220e   :  { %7145 = vadd.xlane.f32.xlu0 %v7144_v62  ;;  %v7059_v35 = vpop.xlane.xlu0 %7058 }
0x220f   :  { %v7135_v53 = vsub.f32 %v7114_v26, %v7131_v4  ;;  %v7061_v45 = vmul.f32 0.03125, %v7059_v35  ;;  %v7141_v46 = vsel %vm191_vm1, %v7137_v39, 0.0  ;;  %v7140_v27 = vmul.f32 %v7136_v54, %v7136_v54 }
0x2210   :  { %7142 = vadd.xlane.f32.xlu1 %v7141_v46  ;;  %v7056_v7 = vpop.xlane.xlu1 %7055 }
0x2211   :  { %v7060_v47 = vmul.f32 0.03125, %v7056_v7  ;;  %v7150_v22 = vsel %vm191_vm1, %v7140_v27, 0.0  ;;  %v7139_v38 = vmul.f32 %v7135_v53, %v7135_v53  ;;  %v7063_v13 = vadd.f32 1e-06, %v7061_v45 }
0x2212   :  { %7151 = vadd.xlane.f32.xlu0 %v7150_v22 }
0x2213   :  { %v7062_v17 = vadd.f32 1e-06, %v7060_v47  ;;  %v7147_v0 = vsel %vm191_vm1, %v7139_v38, 0.0 }
0x2214   :  { %7148 = vadd.xlane.f32.xlu1 %v7147_v0 }
0x2215   :  { %8435 = vrsqrt.f32 %v7062_v17 }
0x2216   :  { %8437 = vrsqrt.f32 %v7063_v13 }
0x2222   :  { %v8436_v36 = vpop.eup %8435 }
0x2223   :  { %v8438_v1 = vpop.eup %8437  ;;  %v7066_v16 = vmul.f32 %v8436_v36, %v7050_v57  ;;  %v7443_v57 = vld [vmem:[%s10172_s6 + $0x8] ss:$0 sm:$0xff]  ;;  %s8655_s6 = smov 40  }
0x2224   :  { %v7067_v51 = vmul.f32 %v8438_v1, %v7051_v63 }
0x2225   :  { %7076 = vrot.lane.b32.xlu1 %v7066_v16, %s8653_s24 }
0x2228   :  { %7078 = vrot.lane.b32.xlu0 %v7067_v51, %s8653_s24 }
0x222c   :  { %7093 = vrot.lane.b32.xlu0 %v7088_v5, %s8648_s20 }
0x2297   :  { %v7146_v8 = vpop.xlane.xlu0 %7145 }
0x2298   :  { %v7154_v15 = vmul.f32 0.03125, %v7146_v8 }
0x2299   :  { %v7143_v29 = vpop.xlane.xlu1 %7142 }
0x229a   :  { %v7158_v20 = vadd.f32 1e-06, %v7154_v15  ;;  %v7153_v58 = vmul.f32 0.03125, %v7143_v29 }
0x229b   :  { %v7152_v61 = vpop.xlane.xlu0 %7151 }
0x229c   :  { %v7156_v50 = vmul.f32 0.03125, %v7152_v61  ;;  %v7157_v59 = vadd.f32 1e-06, %v7153_v58 }
0x229d   :  { %v7149_v3 = vpop.xlane.xlu1 %7148 }
0x229e   :  { %v7160_v49 = vadd.f32 1e-06, %v7156_v50  ;;  %v7155_v40 = vmul.f32 0.03125, %v7149_v3 }
0x229f   :  { %v7079_v26 = vpop.permute.xlu0 %7078 }
0x22a0   :  { %8439 = vrsqrt.f32 %v7160_v49  ;;  %v7159_v12 = vadd.f32 1e-06, %v7155_v40  ;;  %v7083_v56 = vmul.f32 %v9996_v14, %v7079_v26 }
0x22a1   :  { %8441 = vrsqrt.f32 %v7158_v20  ;;  %v7077_v60 = vpop.permute.xlu1 %7076 }
0x22a2   :  { %8443 = vrsqrt.f32 %v7159_v12  ;;  %v7082_v41 = vmul.f32 %v9996_v14, %v7077_v60 }
0x22a3   :  { %8445 = vrsqrt.f32 %v7157_v59  ;;  %v7094_v21 = vpop.permute.xlu0 %7093 }
0x22ad   :  { %v8440_v42 = vpop.eup %8439 }
0x22ae   :  { %v8442_v37 = vpop.eup %8441  ;;  %v7168_v23 = vmul.f32 %v8440_v42, %v7136_v54 }
0x22af   :  { %v8444_v63 = vpop.eup %8443  ;;  %v7166_v24 = vmul.f32 %v8442_v37, %v7134_v11 }
0x22b0   :  { %7185 = vrot.lane.b32.xlu1 %v7168_v23, %s8652_s22  ;;  %v7167_v19 = vmul.f32 %v8444_v63, %v7135_v53  ;;  %v8446_v48 = vpop.eup %8445 }
0x22b1   :  { %v7165_v28 = vmul.f32 %v8446_v48, %v10116_v10 }
0x22b2   :  { %7183 = vrot.lane.b32.xlu0 %v7167_v19, %s8652_s22 }
0x22b4   :  { %7181 = vrot.lane.b32.xlu1 %v7166_v24, %s8652_s22 }
0x22b6   :  { %7195 = vrot.lane.b32.xlu0 %v7443_v57, %s8648_s20 }
0x22b8   :  { %7179 = vrot.lane.b32.xlu1 %v7165_v28, %s8652_s22 }
0x22bc   :  { %7095 = vrot.lane.b32.xlu1 %v7092_v52, %s8648_s20  ;;  %s8656_s20 = smov [#allocation13]  }
0x22bd   :  { %s7227_s22 = sshll.u32 %s8656_s20, 4  ;;  %s7228_s22 = int_to_ptr.vmem [resolvable:$true] %s7227_s22 }
0x22be   :  { %s8579_s28 = scalar_lea.vmem %s7228_s22, 256  ;;  %p8584_p3 = scmp.lt.s32.totalorder %s7228_s22, %s7228_s22 }
0x22bf   :  { %p8580_p2 = scmp.ne.s32.totalorder %s7228_s22, %s8579_s28  ;;  %p8585_p4 = scmp.lt.s32.totalorder %s8579_s28, %s8579_s28 }
0x22c1   :  { %p8586_p5 = por %p8585_p4, %p8584_p3 }
0x22c3   :  { %p8587_p6 = pnand %p8586_p5, %p8580_p2 }
0x2322   :  { %v7186_v44 = vpop.permute.xlu1 %7185 }
0x2323   :  { %v7194_v31 = vmul.f32 %v7443_v57, %v7186_v44 }
0x2324   :  { %v7184_v55 = vpop.permute.xlu0 %7183 }
0x2325   :  { %v7193_v54 = vmul.f32 %v7443_v57, %v7184_v55 }
0x2326   :  { %v7182_v30 = vpop.permute.xlu1 %7181 }
0x2327   :  { %v7192_v11 = vmul.f32 %v7443_v57, %v7182_v30 }
0x2328   :  { %v7196_v10 = vpop.permute.xlu0 %7195 }
0x2329   :  { %v7199_v32 = vadd.f32 %v7196_v10, %v7192_v11  ;;  %v7200_v4 = vadd.f32 %v7196_v10, %v7193_v54  ;;  %v7201_v14 = vadd.f32 %v7196_v10, %v7194_v31 }
0x232a   :  { %v7180_v18 = vpop.permute.xlu1 %7179 }
0x232b   :  { %v7191_v2 = vmul.f32 %v7443_v57, %v7180_v18 }
0x232d   :  { %v7198_v33 = vadd.f32 %v7196_v10, %v7191_v2 }
0x232e   :  { %v7096_v43 = vpop.permute.xlu1 %7095 }
0x232f   :  { %v7098_v25 = vsel %vm7097_vm8, %v7094_v21, %v7096_v43 }
0x2330   :  { %v7100_v9 = vadd.f32 %v7098_v25, %v7082_v41  ;;  %v7101_v6 = vadd.f32 %v7098_v25, %v7083_v56 }
0x2332   :  { %7106 = vrot.lane.b32.xlu0 %v7101_v6, %s8655_s6  ;;  %7104 = vrot.lane.b32.xlu1 %v7100_v9, %s8655_s6 }
0x2336   :  { %7208 = vrot.lane.b32.xlu0 %v7199_v32, %s8647_s19  ;;  %7206 = vrot.lane.b32.xlu1 %v7198_v33, %s8647_s19 }
0x233a   :  { %7212 = vrot.lane.b32.xlu0 %v7201_v14, %s8647_s19  ;;  %7210 = vrot.lane.b32.xlu1 %v7200_v4, %s8647_s19 }
0x23a4   :  { %v7105_v62 = vpop.permute.xlu1 %7104  ;;  %v7107_v39 = vpop.permute.xlu0 %7106 }
0x23a5   :  { %7110 = vst.msk [vmem:[#allocation13] sm:$0xff] %vm191_vm1, %v7105_v62  ;;  %7111 = vst.msk [vmem:[#allocation13 + $0x8] sm:$0xff] %vm191_vm1, %v7107_v39 }
0x23a6   :  { %8590 = shalt.err (!%p8587_p6)
}
0x23a7   :  { %7233 = dma.vmem_to_hbm [thread:$0]  %s7228_s22, 256, %s10173_s7, [#allocation4], %s8633_s10, %s8633_s10, %s8634_s11  }
0x23a8   :  { %v7207_v35 = vpop.permute.xlu1 %7206  ;;  %v7209_v53 = vpop.permute.xlu0 %7208  ;;  %s8657_s30 = smov [#allocation14]  }
0x23a9   :  { %s7239_s9 = sshll.u32 %s8657_s30, 4  ;;  %7218 = vst.msk [vmem:[#allocation14] sm:$0xff] %vm191_vm1, %v7207_v35  ;;  %7219 = vst.msk [vmem:[#allocation14 + $0x8] sm:$0xff] %vm191_vm1, %v7209_v53  ;;  %s7240_s9 = int_to_ptr.vmem [resolvable:$true] %s7239_s9 }
0x23aa   :  { %s8599_s12 = scalar_lea.vmem %s7240_s9, 512  ;;  %p8604_p8 = scmp.lt.s32.totalorder %s7240_s9, %s7240_s9 }
0x23ab   :  { %p8600_p7 = scmp.ne.s32.totalorder %s7240_s9, %s8599_s12  ;;  %p8605_p9 = scmp.lt.s32.totalorder %s8599_s12, %s8599_s12 }
0x23ac   :  { %v7211_v45 = vpop.permute.xlu1 %7210  ;;  %v7213_v46 = vpop.permute.xlu0 %7212 }
0x23ad   :  { %7220 = vst.msk [vmem:[#allocation14 + $0x10] sm:$0xff] %vm191_vm1, %v7211_v45  ;;  %7221 = vst.msk [vmem:[#allocation14 + $0x18] sm:$0xff] %vm191_vm1, %v7213_v46  ;;  %p8606_p10 = por %p8605_p9, %p8604_p8 }
0x23af   :  { %p8607_p11 = pnand %p8606_p10, %p8600_p7 }
0x23b1   :  { %8610 = shalt.err (!%p8607_p11)
}
0x23b2   :  { %7245 = dma.vmem_to_hbm [thread:$0]  %s7240_s9, 512, %s10174_s8, [#allocation15], %s8633_s10, %s8633_s10, %s8634_s11  }
0x23b3   :  { %8627 = dma.done.wait [#allocation4], 256  }
0x23b4   :  { %8628 = vsyncadd [#allocation4], 4294967040 }
0x23b5   :  { %8629 = dma.done.wait [#allocation15], 512  }
0x23b6   :  { %8630 = vsyncadd [#allocation15], 4294966784 }
0x23b7   :  { %7252 = vsyncpa [#allocation3], 1 }
0x23b8   :  { %7253 = vsyncpa [#allocation6], 1 }
0x23b9   :  { %7254 = vsyncpa [#allocation9], 1 }
0x23ba   :  { %7255 = vsyncpa [#allocation12], 1 }
0x23bb   :  { %7256 = vsyncpa [#allocation4], 1 }
0x23bc   :  { %7257 = vsyncpa [#allocation15], 1 }

</bundles_post_ra>
